<compile_context>
chip_gen: v7x
topology: tpu7x:2x2x1
jax: 0.10.0
libtpu: 0.0.40
codegen_flags: <defaults>
</compile_context>

<pallas_src>
import functools
import math

import jax
import jax.numpy as jnp
from jax.experimental import pallas as pl
from jax.experimental.pallas import tpu as pltpu

F32 = jnp.float32
BF16 = jnp.bfloat16
NEG_INF = -1e30  # large-negative bias; exp(x - max) underflows to exactly 0.0 in f32


def _round_up(n, m):
    return ((n + m - 1) // m) * m


def _ln(x, g, b, eps):
    """fp32 LayerNorm over the last axis (matches the fp16-safe LayerNorm subclass)."""
    x = x.astype(F32)
    mu = jnp.mean(x, axis=-1, keepdims=True)
    xc = x - mu
    var = jnp.mean(xc * xc, axis=-1, keepdims=True)
    return xc * jax.lax.rsqrt(var + eps) * g + b


def _attn_bias(seq, kv_len, causal):
    """(seq, seq) additive bias: key-padding (col >= kv_len) and optional causal mask."""
    r = jnp.arange(seq, dtype=jnp.int32)[:, None]
    c = jnp.arange(seq, dtype=jnp.int32)[None, :]
    bad = c >= kv_len
    if causal:
        bad = jnp.logical_or(bad, c > r)
    return jnp.where(bad, NEG_INF, 0.0).astype(F32)


# --------------------------- vision patch embed ---------------------------

def _vit_embed_kernel(p_ref, w_ref, cls_ref, posc_ref, posp_ref, g_ref, b_ref, o_ref,
                      *, n_patch, seq_pad, eps):
    E = w_ref.shape[1]
    pt = jnp.dot(p_ref[...].astype(BF16), w_ref[...], preferred_element_type=F32)  # (Np, E)
    cls_row = cls_ref[...].astype(F32) + posc_ref[...].astype(F32)                  # (1, E)
    body = pt + posp_ref[...].astype(F32)                                           # (Np, E)
    pad = jnp.zeros((seq_pad - n_patch - 1, E), F32)
    tokens = jnp.concatenate([cls_row, body, pad], axis=0)                          # (Lp, E)
    # Padding rows become beta after LayerNorm; they are masked as keys downstream.
    o_ref[...] = _ln(tokens, g_ref[...], b_ref[...], eps).astype(o_ref.dtype)


def pallas_vit_embed(patches, conv_w, cls_emb, pos_emb, ln_g, ln_b, *,
                     batch, n_patch, seq_pad, eps=1e-5):
    Cpp = patches.shape[1]
    E = conv_w.shape[1]
    kern = functools.partial(_vit_embed_kernel, n_patch=n_patch, seq_pad=seq_pad, eps=eps)
    return pl.pallas_call(
        kern,
        out_shape=jax.ShapeDtypeStruct((batch * seq_pad, E), F32),
        grid=(batch,),
        in_specs=[
            pl.BlockSpec((n_patch, Cpp), lambda b: (b, 0)),
            pl.BlockSpec((Cpp, E), lambda b: (0, 0)),
            pl.BlockSpec((1, E), lambda b: (0, 0)),
            pl.BlockSpec((1, E), lambda b: (0, 0)),
            pl.BlockSpec((n_patch, E), lambda b: (0, 0)),
            pl.BlockSpec((1, E), lambda b: (0, 0)),
            pl.BlockSpec((1, E), lambda b: (0, 0)),
        ],
        out_specs=pl.BlockSpec((seq_pad, E), lambda b: (b, 0)),
        compiler_params=pltpu.CompilerParams(dimension_semantics=("parallel",)),
    )(patches, conv_w, cls_emb, pos_emb[:1], pos_emb[1:], ln_g, ln_b)


# ---------------------- fused residual transformer tower ----------------------

def _split_heads(z, batch, seq, n_head, dh):
    """(batch*seq, n_head*dh) -> (batch*n_head, seq, dh) via minor transposes only."""
    if n_head == 1:
        return z.reshape(batch, seq, dh)
    z = z.reshape(batch, seq, n_head * dh)
    z = jnp.swapaxes(z, 1, 2)                 # (B, E, L)   minor-dims transpose
    z = z.reshape(batch * n_head, dh, seq)    # (B*H, Dh, L) 8-aligned sublane split
    return jnp.swapaxes(z, 1, 2)              # (B*H, L, Dh)


def _merge_heads(z, batch, seq, n_head, dh):
    """(batch*n_head, seq, dh) -> (batch*seq, n_head*dh), lane-dense."""
    if n_head == 1:
        return z.reshape(batch * seq, dh)
    z = jnp.swapaxes(z, 1, 2)                 # (B*H, Dh, L)
    z = z.reshape(batch, n_head * dh, seq)    # (B, E, L)
    z = jnp.swapaxes(z, 1, 2)                 # (B, L, E)
    return z.reshape(batch * seq, n_head * dh)


def _transformer_layer_kernel(x_ref, bias_ref,
                              ln1g_ref, ln1b_ref, wqkv_ref, bqkv_ref, wo_ref, bo_ref,
                              ln2g_ref, ln2b_ref, wfc_ref, bfc_ref, wpr_ref, bpr_ref,
                              o_ref, res_ref, *, batch, seq, n_head, eps):
    E = x_ref.shape[-1]
    dh = E // n_head
    scale = 1.0 / math.sqrt(dh)
    layer = pl.program_id(1)

    @pl.when(layer == 0)
    def _():
        res_ref[...] = x_ref[...].astype(F32)

    x = res_ref[...]                                              # residual stream (B*L, E)

    # ---- multi-head self-attention (heads batched through single einsums) ----
    h = _ln(x, ln1g_ref[0], ln1b_ref[0], eps)
    qkv = jnp.dot(h.astype(BF16), wqkv_ref[0],
                  preferred_element_type=F32) + bqkv_ref[0]       # (B*L, 3E) f32
    q = _split_heads(qkv[:, :E], batch, seq, n_head, dh).astype(BF16)
    k = _split_heads(qkv[:, E:2 * E], batch, seq, n_head, dh).astype(BF16)
    v = _split_heads(qkv[:, 2 * E:], batch, seq, n_head, dh).astype(BF16)

    s = jnp.einsum('bqd,bkd->bqk', q, k, preferred_element_type=F32) * scale
    s = s + bias_ref[...][None, :, :]                             # padding / causal bias
    s = s - jnp.max(s, axis=-1, keepdims=True)
    p = jnp.exp(s)
    p = p * pl.reciprocal(jnp.sum(p, axis=-1, keepdims=True), approx=True)
    ctx = jnp.einsum('bqk,bkd->bqd', p.astype(BF16), v,
                     preferred_element_type=F32)                  # (B*H, L, Dh)
    ctx = _merge_heads(ctx, batch, seq, n_head, dh)               # lane-dense (B*L, E)
    x = x + jnp.dot(ctx.astype(BF16), wo_ref[0],
                    preferred_element_type=F32) + bo_ref[0]

    # ---- MLP (QuickGELU) ----
    h = _ln(x, ln2g_ref[0], ln2b_ref[0], eps)
    m = jnp.dot(h.astype(BF16), wfc_ref[0], preferred_element_type=F32) + bfc_ref[0]
    m = m * pl.reciprocal(1.0 + jnp.exp(-1.702 * m), approx=False)   # x * sigmoid(1.702 x)
    x = x + jnp.dot(m.astype(BF16), wpr_ref[0], preferred_element_type=F32) + bpr_ref[0]

    res_ref[...] = x

    @pl.when(layer == pl.num_programs(1) - 1)
    def _():
        o_ref[...] = x.astype(o_ref.dtype)


def pallas_transformer(x, bias, blk, *, batch, seq, n_head, eps=1e-5):
    BL, E = x.shape
    assert BL == batch * seq and seq % 8 == 0
    n_layers = blk["wqkv"].shape[0]
    bblk = 1                                   # one batch element per grid step
    assert batch % bblk == 0
    nb = batch // bblk

    def wspec(d1, d2):
        return pl.BlockSpec((1, d1, d2), lambda b, l: (l, 0, 0))

    act = pl.BlockSpec((bblk * seq, E), lambda b, l: (b, 0))
    bias_spec = pl.BlockSpec(bias.shape, lambda b, l: (0, 0))

    # Scoped-VMEM budget: resident activations/scratch + double-buffered bf16 layer weights.
    # TODO(synk): at real CLIP widths on v7x (64 MiB VMEM) stream wfc/wpr via an inner
    # pltpu.emit_pipeline instead of holding the full MLP weights per layer.
    resident = (3 * bblk * seq * E * 4            # x in, o out, residual scratch (f32)
                + seq * seq * 4                   # attention bias
                + bblk * seq * (3 * E + 4 * E) * 4)   # qkv / mlp intermediates
    per_layer_w = 12 * E * E * 2 + 13 * E * 4     # bf16 matmul weights + f32 biases/LN
    vmem_limit = int(min(100 << 20, max(32 << 20, 2 * (resident + 2 * per_layer_w))))

    kern = functools.partial(_transformer_layer_kernel, batch=bblk, seq=seq,
                             n_head=n_head, eps=eps)
    return pl.pallas_call(
        kern,
        out_shape=jax.ShapeDtypeStruct((BL, E), x.dtype),
        grid=(nb, n_layers),
        in_specs=[
            act, bias_spec,
            wspec(1, E), wspec(1, E),            # ln1 gamma / beta
            wspec(E, 3 * E), wspec(1, 3 * E),    # in_proj W (bf16) / b
            wspec(E, E), wspec(1, E),            # out_proj W (bf16) / b
            wspec(1, E), wspec(1, E),            # ln2 gamma / beta
            wspec(E, 4 * E), wspec(1, 4 * E),    # mlp c_fc W (bf16) / b
            wspec(4 * E, E), wspec(1, E),        # mlp c_proj W (bf16) / b
        ],
        out_specs=act,
        scratch_shapes=[pltpu.VMEM((bblk * seq, E), F32)],   # layer-carried residual
        compiler_params=pltpu.CompilerParams(
            dimension_semantics=("parallel", "arbitrary"),
            vmem_limit_bytes=vmem_limit),
    )(x, bias,
      blk["ln1_g"], blk["ln1_b"], blk["wqkv"], blk["bqkv"], blk["wo"], blk["bo"],
      blk["ln2_g"], blk["ln2_b"], blk["wfc"], blk["bfc"], blk["wpr"], blk["bpr"])


# --------------------------------- CLIP head ---------------------------------

def _clip_head_kernel(img_ref, vg_ref, vb_ref, vproj_ref,
                      txt_ref, tg_ref, tb_ref, tproj_ref, ls_ref, o_ref, *, eps):
    img = _ln(img_ref[...], vg_ref[...], vb_ref[...], eps)
    imgf = jnp.dot(img, vproj_ref[...], preferred_element_type=F32)        # (B, D)
    txt = _ln(txt_ref[...], tg_ref[...], tb_ref[...], eps)
    txtf = jnp.dot(txt, tproj_ref[...], preferred_element_type=F32)        # (Bt, D)
    imgf = imgf * jax.lax.rsqrt(jnp.sum(imgf * imgf, axis=-1, keepdims=True) + 1e-12)
    txtf = txtf * jax.lax.rsqrt(jnp.sum(txtf * txtf, axis=-1, keepdims=True) + 1e-12)
    scale = jnp.exp(ls_ref[...].astype(F32))                               # (1, 1)
    logits = jax.lax.dot_general(imgf, txtf, (((1,), (1,)), ((), ())),
                                 preferred_element_type=F32)               # (B, Bt)
    o_ref[...] = (scale * logits).astype(o_ref.dtype)


def pallas_clip_head(img_cls, vis_g, vis_b, vis_proj,
                     txt_eot, txt_g, txt_b, txt_proj, logit_scale, eps=1e-5):
    B = img_cls.shape[0]
    Bt = txt_eot.shape[0]
    return pl.pallas_call(
        functools.partial(_clip_head_kernel, eps=eps),
        out_shape=jax.ShapeDtypeStruct((B, Bt), F32),
    )(img_cls, vis_g, vis_b, vis_proj,
      txt_eot, txt_g, txt_b, txt_proj, logit_scale.reshape(1, 1))


# --------------------------------- model glue ---------------------------------

CFG = dict(
    embed_dim=32,
    image_resolution=16,
    vision_layers=2,        # int -> VisionTransformer branch of CLIP
    vision_width=64,        # vision_heads = 64 // 64 = 1
    vision_patch_size=4,
    context_length=8,
    vocab_size=64,
    transformer_width=32,
    transformer_heads=4,
    transformer_layers=2,
)


def init_blocks(key, width, n_layers):
    proj_std = width ** -0.5 * (2 * n_layers) ** -0.5
    attn_std = width ** -0.5
    fc_std = (2 * width) ** -0.5
    ks = jax.random.split(key, 4)
    return {
        "ln1_g": jnp.ones((n_layers, 1, width), F32),
        "ln1_b": jnp.zeros((n_layers, 1, width), F32),
        "ln2_g": jnp.ones((n_layers, 1, width), F32),
        "ln2_b": jnp.zeros((n_layers, 1, width), F32),
        # matmul weights stored pre-transposed (in, out), stacked over layers, bf16
        "wqkv": (attn_std * jax.random.normal(ks[0], (n_layers, width, 3 * width), F32)).astype(BF16),
        "bqkv": jnp.zeros((n_layers, 1, 3 * width), F32),
        "wo": (proj_std * jax.random.normal(ks[1], (n_layers, width, width), F32)).astype(BF16),
        "bo": jnp.zeros((n_layers, 1, width), F32),
        "wfc": (fc_std * jax.random.normal(ks[2], (n_layers, width, 4 * width), F32)).astype(BF16),
        "bfc": jnp.zeros((n_layers, 1, 4 * width), F32),
        "wpr": (proj_std * jax.random.normal(ks[3], (n_layers, 4 * width, width), F32)).astype(BF16),
        "bpr": jnp.zeros((n_layers, 1, width), F32),
    }


def init_params(key, cfg):
    k = jax.random.split(key, 6)
    width = cfg["vision_width"]
    p = cfg["vision_patch_size"]
    R = cfg["image_resolution"]
    n_patches = (R // p) ** 2
    scale = width ** -0.5

    vk = jax.random.split(k[0], 5)
    visual = {
        # PyTorch conv1 weight (width, 3, p, p) flattened & transposed -> (3*p*p, width)
        "conv1_w": (0.02 * jax.random.normal(vk[0], (3 * p * p, width), F32)).astype(BF16),
        "class_embedding": scale * jax.random.normal(vk[1], (1, width), F32),
        "pos_emb": scale * jax.random.normal(vk[2], (n_patches + 1, width), F32),
        "ln_pre_g": jnp.ones((1, width), F32), "ln_pre_b": jnp.zeros((1, width), F32),
        "ln_post_g": jnp.ones((1, width), F32), "ln_post_b": jnp.zeros((1, width), F32),
        "proj": scale * jax.random.normal(vk[3], (width, cfg["embed_dim"]), F32),
        "blocks": init_blocks(vk[4], width, cfg["vision_layers"]),
    }

    tw = cfg["transformer_width"]
    return {
        "visual": visual,
        "token_embedding": 0.02 * jax.random.normal(k[1], (cfg["vocab_size"], tw), F32),
        "positional_embedding": 0.01 * jax.random.normal(k[2], (cfg["context_length"], tw), F32),
        "ln_final_g": jnp.ones((1, tw), F32), "ln_final_b": jnp.zeros((1, tw), F32),
        "text_projection": tw ** -0.5 * jax.random.normal(k[3], (tw, cfg["embed_dim"]), F32),
        "logit_scale": jnp.array(math.log(1.0 / 0.07), F32),
        "text_blocks": init_blocks(k[4], tw, cfg["transformer_layers"]),
    }


def encode_image_tokens(params, image, cfg):
    vp = params["visual"]
    B, C, R, _ = image.shape
    p = cfg["vision_patch_size"]
    g = R // p
    Np = g * g
    width = cfg["vision_width"]
    Lp = _round_up(Np + 1, 8)
    # stride=kernel conv == matmul over flattened (C, ph, pw) patches.
    # TODO(synk): fuse this reshape/transpose into the embed kernel via a strided
    # index_map to avoid the extra HBM round trip at real resolutions.
    patches = image.reshape(B, C, g, p, g, p).transpose(0, 2, 4, 1, 3, 5)
    patches = patches.reshape(B * Np, C * p * p)
    x = pallas_vit_embed(patches, vp["conv1_w"], vp["class_embedding"], vp["pos_emb"],
                         vp["ln_pre_g"], vp["ln_pre_b"],
                         batch=B, n_patch=Np, seq_pad=Lp)          # (B*Lp, width)
    n_head = max(width // 64, 1)                                   # vision_heads = width // 64
    bias = _attn_bias(Lp, kv_len=Np + 1, causal=False)             # mask padded keys only
    x = pallas_transformer(x, bias, vp["blocks"], batch=B, seq=Lp, n_head=n_head)
    return x.reshape(B, Lp, width)[:, 0, :]                        # CLS (row 0), pre-ln_post


def encode_text_tokens(params, text, cfg):
    B, L = text.shape
    tw = cfg["transformer_width"]
    Lp = _round_up(L, 8)
    x = jnp.take(params["token_embedding"], text, axis=0)          # (B, L, tw)
    x = x + params["positional_embedding"][None]
    if Lp != L:
        x = jnp.pad(x, ((0, 0), (0, Lp - L), (0, 0)))
    x = x.reshape(B * Lp, tw)
    bias = _attn_bias(Lp, kv_len=L, causal=True)
    x = pallas_transformer(x, bias, params["text_blocks"], batch=B, seq=Lp,
                           n_head=cfg["transformer_heads"])
    x = x.reshape(B, Lp, tw)
    # TODO(synk): argmax(text) is only a true EOT gather if EOT has the largest token id.
    eot = jnp.argmax(text, axis=-1)
    return x[jnp.arange(B), eot]                                   # (B, tw), pre-ln_final


def clip_forward(params, image, text, cfg):
    vp = params["visual"]
    img_cls = encode_image_tokens(params, image, cfg)
    txt_eot = encode_text_tokens(params, text, cfg)
    logits_per_image = pallas_clip_head(
        img_cls, vp["ln_post_g"], vp["ln_post_b"], vp["proj"],
        txt_eot, params["ln_final_g"], params["ln_final_b"], params["text_projection"],
        params["logit_scale"])
    return logits_per_image, logits_per_image.T


if __name__ == "__main__":
    key = jax.random.PRNGKey(0)
    kp, ki, kt = jax.random.split(key, 3)
    params = init_params(kp, CFG)
    image = jax.random.normal(
        ki, (2, 3, CFG["image_resolution"], CFG["image_resolution"]), F32)
    text = jax.random.randint(
        kt, (2, CFG["context_length"]), 0, CFG["vocab_size"], jnp.int32)

    fwd = jax.jit(functools.partial(clip_forward, cfg=CFG))
    logits_per_image, logits_per_text = fwd(params, image, text)
    jax.block_until_ready((logits_per_image, logits_per_text))

    assert logits_per_image.shape == (2, 2)
    assert logits_per_text.shape == (2, 2)
    assert bool(jnp.all(jnp.isfinite(logits_per_image)))
    print("KERNEL_OK")
</pallas_src>

<mosaic_0001>
module attributes {stable_mosaic.version = 11 : i64} {
  func.func @_vit_embed_kernel(%arg0: i32, %arg1: memref<16x48xf32, #tpu.memory_space<vmem>>, %arg2: memref<48x64xbf16, #tpu.memory_space<vmem>>, %arg3: memref<1x64xf32, #tpu.memory_space<vmem>>, %arg4: memref<1x64xf32, #tpu.memory_space<vmem>>, %arg5: memref<16x64xf32, #tpu.memory_space<vmem>>, %arg6: memref<1x64xf32, #tpu.memory_space<vmem>>, %arg7: memref<1x64xf32, #tpu.memory_space<vmem>>, %arg8: memref<24x64xf32, #tpu.memory_space<vmem>>) attributes {dimension_semantics = [#tpu.dimension_semantics<parallel>], iteration_bounds = array<i64: 2>, scalar_prefetch = 0 : i64, scratch_operands = 0 : i64, tpu.core_type = #tpu.core_type<tc>, window_params = [{transform_indices = @transform_0, window_bounds = array<i64: 16, 48>}, {pipeline_mode = #tpu.pipeline_mode<synchronous>, transform_indices = @transform_1, window_bounds = array<i64: 48, 64>}, {pipeline_mode = #tpu.pipeline_mode<synchronous>, transform_indices = @transform_2, window_bounds = array<i64: 1, 64>}, {pipeline_mode = #tpu.pipeline_mode<synchronous>, transform_indices = @transform_3, window_bounds = array<i64: 1, 64>}, {pipeline_mode = #tpu.pipeline_mode<synchronous>, transform_indices = @transform_4, window_bounds = array<i64: 16, 64>}, {pipeline_mode = #tpu.pipeline_mode<synchronous>, transform_indices = @transform_5, window_bounds = array<i64: 1, 64>}, {pipeline_mode = #tpu.pipeline_mode<synchronous>, transform_indices = @transform_6, window_bounds = array<i64: 1, 64>}, {transform_indices = @transform_7, window_bounds = array<i64: 24, 64>}]} {
    %c0 = arith.constant 0 : index
    %c0_0 = arith.constant 0 : index
    %0 = vector.load %arg1[%c0, %c0_0] : memref<16x48xf32, #tpu.memory_space<vmem>>, vector<16x48xf32>
    %1 = arith.truncf %0 : vector<16x48xf32> to vector<16x48xbf16>
    %c0_1 = arith.constant 0 : index
    %c0_2 = arith.constant 0 : index
    %2 = vector.load %arg2[%c0_1, %c0_2] : memref<48x64xbf16, #tpu.memory_space<vmem>>, vector<48x64xbf16>
    %cst = arith.constant dense<0.000000e+00> : vector<16x64xf32>
    %3 = tpu.matmul %1, %2, %cst {dimension_numbers = #tpu.dot_dimension_numbers<[1], [0], [0], [1], [0, 0, 1, 1], [], []>} : vector<16x48xbf16>, vector<48x64xbf16>, vector<16x64xf32> -> vector<16x64xf32>
    %c0_3 = arith.constant 0 : index
    %c0_4 = arith.constant 0 : index
    %4 = vector.load %arg3[%c0_3, %c0_4] : memref<1x64xf32, #tpu.memory_space<vmem>>, vector<1x64xf32>
    %c0_5 = arith.constant 0 : index
    %c0_6 = arith.constant 0 : index
    %5 = vector.load %arg4[%c0_5, %c0_6] : memref<1x64xf32, #tpu.memory_space<vmem>>, vector<1x64xf32>
    %6 = arith.addf %4, %5 : vector<1x64xf32>
    %c0_7 = arith.constant 0 : index
    %c0_8 = arith.constant 0 : index
    %7 = vector.load %arg5[%c0_7, %c0_8] : memref<16x64xf32, #tpu.memory_space<vmem>>, vector<16x64xf32>
    %8 = arith.addf %3, %7 : vector<16x64xf32>
    %cst_9 = arith.constant 0.000000e+00 : f32
    %9 = vector.broadcast %cst_9 : f32 to vector<7x64xf32>
    %10 = tpu.concatenate %6, %8, %9 in 0 : vector<1x64xf32>, vector<16x64xf32>, vector<7x64xf32> -> vector<24x64xf32>
    %c0_10 = arith.constant 0 : index
    %c0_11 = arith.constant 0 : index
    %11 = vector.load %arg6[%c0_10, %c0_11] : memref<1x64xf32, #tpu.memory_space<vmem>>, vector<1x64xf32>
    %c0_12 = arith.constant 0 : index
    %c0_13 = arith.constant 0 : index
    %12 = vector.load %arg7[%c0_12, %c0_13] : memref<1x64xf32, #tpu.memory_space<vmem>>, vector<1x64xf32>
    %cst_14 = arith.constant dense<0.000000e+00> : vector<24xf32>
    %13 = vector.multi_reduction <add>, %10, %cst_14 [1] : vector<24x64xf32> to vector<24xf32>
    %14 = vector.shape_cast %13 : vector<24xf32> to vector<24x1xf32>
    %cst_15 = arith.constant 6.400000e+01 : f32
    %15 = vector.broadcast %cst_15 : f32 to vector<24x1xf32>
    %16 = arith.divf %14, %15 : vector<24x1xf32>
    %17 = vector.broadcast %16 : vector<24x1xf32> to vector<24x64xf32>
    %18 = arith.subf %10, %17 : vector<24x64xf32>
    %19 = arith.mulf %18, %18 : vector<24x64xf32>
    %cst_16 = arith.constant dense<0.000000e+00> : vector<24xf32>
    %20 = vector.multi_reduction <add>, %19, %cst_16 [1] : vector<24x64xf32> to vector<24xf32>
    %21 = vector.shape_cast %20 : vector<24xf32> to vector<24x1xf32>
    %cst_17 = arith.constant 6.400000e+01 : f32
    %22 = vector.broadcast %cst_17 : f32 to vector<24x1xf32>
    %23 = arith.divf %21, %22 : vector<24x1xf32>
    %cst_18 = arith.constant 9.99999974E-6 : f32
    %24 = vector.broadcast %cst_18 : f32 to vector<24x1xf32>
    %25 = arith.addf %23, %24 : vector<24x1xf32>
    %26 = math.rsqrt %25 : vector<24x1xf32>
    %27 = vector.broadcast %26 : vector<24x1xf32> to vector<24x64xf32>
    %28 = arith.mulf %18, %27 : vector<24x64xf32>
    %29 = vector.broadcast %11 : vector<1x64xf32> to vector<24x64xf32>
    %30 = arith.mulf %28, %29 : vector<24x64xf32>
    %31 = vector.broadcast %12 : vector<1x64xf32> to vector<24x64xf32>
    %32 = arith.addf %30, %31 : vector<24x64xf32>
    %c0_19 = arith.constant 0 : index
    %c0_20 = arith.constant 0 : index
    %33 = vector.load %arg8[%c0_19, %c0_20] : memref<24x64xf32, #tpu.memory_space<vmem>>, vector<24x64xf32>
    tpu.vector_store %arg8[%c0_19, %c0_20], %32 {strides = array<i32>} : memref<24x64xf32, #tpu.memory_space<vmem>>, vector<24x64xf32>,
    return
  }
  func.func @transform_0(%arg0: i32) -> (i32, i32) {
    %c0_i32 = arith.constant 0 : i32
    %c0_i32_0 = arith.constant 0 : i32
    return %arg0, %c0_i32 : i32, i32
  }
  func.func @transform_1(%arg0: i32) -> (i32, i32) {
    %c0_i32 = arith.constant 0 : i32
    %c0_i32_0 = arith.constant 0 : i32
    %c0_i32_1 = arith.constant 0 : i32
    return %c0_i32, %c0_i32_0 : i32, i32
  }
  func.func @transform_2(%arg0: i32) -> (i32, i32) {
    %c0_i32 = arith.constant 0 : i32
    %c0_i32_0 = arith.constant 0 : i32
    %c0_i32_1 = arith.constant 0 : i32
    return %c0_i32, %c0_i32_0 : i32, i32
  }
  func.func @transform_3(%arg0: i32) -> (i32, i32) {
    %c0_i32 = arith.constant 0 : i32
    %c0_i32_0 = arith.constant 0 : i32
    %c0_i32_1 = arith.constant 0 : i32
    return %c0_i32, %c0_i32_0 : i32, i32
  }
  func.func @transform_4(%arg0: i32) -> (i32, i32) {
    %c0_i32 = arith.constant 0 : i32
    %c0_i32_0 = arith.constant 0 : i32
    %c0_i32_1 = arith.constant 0 : i32
    return %c0_i32, %c0_i32_0 : i32, i32
  }
  func.func @transform_5(%arg0: i32) -> (i32, i32) {
    %c0_i32 = arith.constant 0 : i32
    %c0_i32_0 = arith.constant 0 : i32
    %c0_i32_1 = arith.constant 0 : i32
    return %c0_i32, %c0_i32_0 : i32, i32
  }
  func.func @transform_6(%arg0: i32) -> (i32, i32) {
    %c0_i32 = arith.constant 0 : i32
    %c0_i32_0 = arith.constant 0 : i32
    %c0_i32_1 = arith.constant 0 : i32
    return %c0_i32, %c0_i32_0 : i32, i32
  }
  func.func @transform_7(%arg0: i32) -> (i32, i32) {
    %c0_i32 = arith.constant 0 : i32
    %c0_i32_0 = arith.constant 0 : i32
    return %arg0, %c0_i32 : i32, i32
  }
}

module attributes {stable_mosaic.version = 11 : i64} {
  func.func @_transformer_layer_kernel(%arg0: i32, %arg1: i32, %arg2: memref<24x64xf32, #tpu.memory_space<vmem>>, %arg3: memref<1x24xf32, #tpu.memory_space<vmem>>, %arg4: memref<1x1x64xf32, #tpu.memory_space<vmem>>, %arg5: memref<1x1x64xf32, #tpu.memory_space<vmem>>, %arg6: memref<1x64x192xbf16, #tpu.memory_space<vmem>>, %arg7: memref<1x1x192xf32, #tpu.memory_space<vmem>>, %arg8: memref<1x64x64xbf16, #tpu.memory_space<vmem>>, %arg9: memref<1x1x64xf32, #tpu.memory_space<vmem>>, %arg10: memref<1x1x64xf32, #tpu.memory_space<vmem>>, %arg11: memref<1x1x64xf32, #tpu.memory_space<vmem>>, %arg12: memref<1x64x256xbf16, #tpu.memory_space<vmem>>, %arg13: memref<1x1x256xf32, #tpu.memory_space<vmem>>, %arg14: memref<1x256x64xbf16, #tpu.memory_space<vmem>>, %arg15: memref<1x1x64xf32, #tpu.memory_space<vmem>>, %arg16: memref<24x64xf32, #tpu.memory_space<vmem>>, %arg17: memref<24x64xf32, #tpu.memory_space<vmem>>) attributes {dimension_semantics = [#tpu.dimension_semantics<parallel>, #tpu.dimension_semantics<arbitrary>], iteration_bounds = array<i64: 2, 2>, scalar_prefetch = 0 : i64, scratch_operands = 1 : i64, tpu.core_type = #tpu.core_type<tc>, window_params = [{transform_indices = @transform_0, window_bounds = array<i64: 24, 64>}, {pipeline_mode = #tpu.pipeline_mode<synchronous>, transform_indices = @transform_1, window_bounds = array<i64: 1, 24>}, {transform_indices = @transform_2, window_bounds = array<i64: 1, 1, 64>}, {transform_indices = @transform_3, window_bounds = array<i64: 1, 1, 64>}, {transform_indices = @transform_4, window_bounds = array<i64: 1, 64, 192>}, {transform_indices = @transform_5, window_bounds = array<i64: 1, 1, 192>}, {transform_indices = @transform_6, window_bounds = array<i64: 1, 64, 64>}, {transform_indices = @transform_7, window_bounds = array<i64: 1, 1, 64>}, {transform_indices = @transform_8, window_bounds = array<i64: 1, 1, 64>}, {transform_indices = @transform_9, window_bounds = array<i64: 1, 1, 64>}, {transform_indices = @transform_10, window_bounds = array<i64: 1, 64, 256>}, {transform_indices = @transform_11, window_bounds = array<i64: 1, 1, 256>}, {transform_indices = @transform_12, window_bounds = array<i64: 1, 256, 64>}, {transform_indices = @transform_13, window_bounds = array<i64: 1, 1, 64>}, {transform_indices = @transform_14, window_bounds = array<i64: 24, 64>}]} {
    %c0_i32 = arith.constant 0 : i32
    %0 = arith.cmpi eq, %arg1, %c0_i32 : i32
    %1 = arith.extui %0 : i1 to i32
    %c0_i32_0 = arith.constant 0 : i32
    %2 = arith.cmpi ne, %1, %c0_i32_0 : i32
    scf.if %2 {
      %c0_63 = arith.constant 0 : index
      %c0_64 = arith.constant 0 : index
      %126 = vector.load %arg2[%c0_63, %c0_64] : memref<24x64xf32, #tpu.memory_space<vmem>>, vector<24x64xf32>
      %c0_65 = arith.constant 0 : index
      %c0_66 = arith.constant 0 : index
      %127 = vector.load %arg17[%c0_65, %c0_66] : memref<24x64xf32, #tpu.memory_space<vmem>>, vector<24x64xf32>
      tpu.vector_store %arg17[%c0_65, %c0_66], %126 {strides = array<i32>} : memref<24x64xf32, #tpu.memory_space<vmem>>, vector<24x64xf32>,
    } else {
    }
    %c0 = arith.constant 0 : index
    %c0_1 = arith.constant 0 : index
    %3 = vector.load %arg17[%c0, %c0_1] : memref<24x64xf32, #tpu.memory_space<vmem>>, vector<24x64xf32>
    %c0_2 = arith.constant 0 : index
    %c0_3 = arith.constant 0 : index
    %c0_4 = arith.constant 0 : index
    %4 = vector.load %arg4[%c0_2, %c0_3, %c0_4] : memref<1x1x64xf32, #tpu.memory_space<vmem>>, vector<1x1x64xf32>
    %5 = vector.shape_cast %4 : vector<1x1x64xf32> to vector<1x64xf32>
    %c0_5 = arith.constant 0 : index
    %c0_6 = arith.constant 0 : index
    %c0_7 = arith.constant 0 : index
    %6 = vector.load %arg5[%c0_5, %c0_6, %c0_7] : memref<1x1x64xf32, #tpu.memory_space<vmem>>, vector<1x1x64xf32>
    %7 = vector.shape_cast %6 : vector<1x1x64xf32> to vector<1x64xf32>
    %cst = arith.constant dense<0.000000e+00> : vector<24xf32>
    %8 = vector.multi_reduction <add>, %3, %cst [1] : vector<24x64xf32> to vector<24xf32>
    %9 = vector.shape_cast %8 : vector<24xf32> to vector<24x1xf32>
    %cst_8 = arith.constant 6.400000e+01 : f32
    %10 = vector.broadcast %cst_8 : f32 to vector<24x1xf32>
    %11 = arith.divf %9, %10 : vector<24x1xf32>
    %12 = vector.broadcast %11 : vector<24x1xf32> to vector<24x64xf32>
    %13 = arith.subf %3, %12 : vector<24x64xf32>
    %14 = arith.mulf %13, %13 : vector<24x64xf32>
    %cst_9 = arith.constant dense<0.000000e+00> : vector<24xf32>
    %15 = vector.multi_reduction <add>, %14, %cst_9 [1] : vector<24x64xf32> to vector<24xf32>
    %16 = vector.shape_cast %15 : vector<24xf32> to vector<24x1xf32>
    %cst_10 = arith.constant 6.400000e+01 : f32
    %17 = vector.broadcast %cst_10 : f32 to vector<24x1xf32>
    %18 = arith.divf %16, %17 : vector<24x1xf32>
    %cst_11 = arith.constant 9.99999974E-6 : f32
    %19 = vector.broadcast %cst_11 : f32 to vector<24x1xf32>
    %20 = arith.addf %18, %19 : vector<24x1xf32>
    %21 = math.rsqrt %20 : vector<24x1xf32>
    %22 = vector.broadcast %21 : vector<24x1xf32> to vector<24x64xf32>
    %23 = arith.mulf %13, %22 : vector<24x64xf32>
    %24 = vector.broadcast %5 : vector<1x64xf32> to vector<24x64xf32>
    %25 = arith.mulf %23, %24 : vector<24x64xf32>
    %26 = vector.broadcast %7 : vector<1x64xf32> to vector<24x64xf32>
    %27 = arith.addf %25, %26 : vector<24x64xf32>
    %28 = arith.truncf %27 : vector<24x64xf32> to vector<24x64xbf16>
    %c0_12 = arith.constant 0 : index
    %c0_13 = arith.constant 0 : index
    %c0_14 = arith.constant 0 : index
    %29 = vector.load %arg6[%c0_12, %c0_13, %c0_14] : memref<1x64x192xbf16, #tpu.memory_space<vmem>>, vector<1x64x192xbf16>
    %30 = vector.shape_cast %29 : vector<1x64x192xbf16> to vector<64x192xbf16>
    %cst_15 = arith.constant dense<0.000000e+00> : vector<24x192xf32>
    %31 = tpu.matmul %28, %30, %cst_15 {dimension_numbers = #tpu.dot_dimension_numbers<[1], [0], [0], [1], [0, 0, 1, 1], [], []>} : vector<24x64xbf16>, vector<64x192xbf16>, vector<24x192xf32> -> vector<24x192xf32>
    %c0_16 = arith.constant 0 : index
    %c0_17 = arith.constant 0 : index
    %c0_18 = arith.constant 0 : index
    %32 = vector.load %arg7[%c0_16, %c0_17, %c0_18] : memref<1x1x192xf32, #tpu.memory_space<vmem>>, vector<1x1x192xf32>
    %33 = vector.shape_cast %32 : vector<1x1x192xf32> to vector<1x192xf32>
    %34 = vector.broadcast %33 : vector<1x192xf32> to vector<24x192xf32>
    %35 = arith.addf %31, %34 : vector<24x192xf32>
    %36 = vector.extract_strided_slice %35 {offsets = [0, 0], sizes = [24, 64], strides = [1, 1]} : vector<24x192xf32> to vector<24x64xf32>
    %37 = vector.shape_cast %36 : vector<24x64xf32> to vector<1x24x64xf32>
    %38 = arith.truncf %37 : vector<1x24x64xf32> to vector<1x24x64xbf16>
    %39 = vector.extract_strided_slice %35 {offsets = [0, 64], sizes = [24, 64], strides = [1, 1]} : vector<24x192xf32> to vector<24x64xf32>
    %40 = vector.shape_cast %39 : vector<24x64xf32> to vector<1x24x64xf32>
    %41 = arith.truncf %40 : vector<1x24x64xf32> to vector<1x24x64xbf16>
    %42 = vector.extract_strided_slice %35 {offsets = [0, 128], sizes = [24, 64], strides = [1, 1]} : vector<24x192xf32> to vector<24x64xf32>
    %43 = vector.shape_cast %42 : vector<24x64xf32> to vector<1x24x64xf32>
    %44 = arith.truncf %43 : vector<1x24x64xf32> to vector<1x24x64xbf16>
    "tpu.trace_start"() <{level = 10 : i32, message = "bqd,bkd->bqk"}> : () -> ()
    %cst_19 = arith.constant dense<0.000000e+00> : vector<1x24x24xf32>
    %45 = tpu.matmul %38, %41, %cst_19 {dimension_numbers = #tpu.dot_dimension_numbers<[2], [2], [1], [1], [0, 0, 0, 1, 1, 1], [0], [0]>} : vector<1x24x64xbf16>, vector<1x24x64xbf16>, vector<1x24x24xf32> -> vector<1x24x24xf32>
    "tpu.trace_stop"() : () -> ()
    %cst_20 = arith.constant 1.250000e-01 : f32
    %46 = vector.broadcast %cst_20 : f32 to vector<1x24x24xf32>
    %47 = arith.mulf %45, %46 : vector<1x24x24xf32>
    %c0_21 = arith.constant 0 : index
    %c0_22 = arith.constant 0 : index
    %48 = vector.load %arg3[%c0_21, %c0_22] : memref<1x24xf32, #tpu.memory_space<vmem>>, vector<1x24xf32>
    %49 = vector.shape_cast %48 : vector<1x24xf32> to vector<1x1x24xf32>
    %50 = vector.broadcast %49 : vector<1x1x24xf32> to vector<1x24x24xf32>
    %51 = arith.addf %47, %50 : vector<1x24x24xf32>
    %cst_23 = arith.constant dense<0xFF800000> : vector<1x24xf32>
    %52 = vector.multi_reduction <maximumf>, %51, %cst_23 [2] : vector<1x24x24xf32> to vector<1x24xf32>
    %53 = vector.shape_cast %52 : vector<1x24xf32> to vector<1x24x1xf32>
    %54 = vector.broadcast %53 : vector<1x24x1xf32> to vector<1x24x24xf32>
    %55 = arith.subf %51, %54 : vector<1x24x24xf32>
    %56 = math.exp %55 : vector<1x24x24xf32>
    %cst_24 = arith.constant dense<0.000000e+00> : vector<1x24xf32>
    %57 = vector.multi_reduction <add>, %56, %cst_24 [2] : vector<1x24x24xf32> to vector<1x24xf32>
    %58 = vector.shape_cast %57 : vector<1x24xf32> to vector<1x24x1xf32>
    %59 = tpu.reciprocal %58 {approx = true} : vector<1x24x1xf32> -> vector<1x24x1xf32>
    %60 = vector.broadcast %59 : vector<1x24x1xf32> to vector<1x24x24xf32>
    %61 = arith.mulf %56, %60 : vector<1x24x24xf32>
    %62 = arith.truncf %61 : vector<1x24x24xf32> to vector<1x24x24xbf16>
    "tpu.trace_start"() <{level = 10 : i32, message = "bqk,bkd->bqd"}> : () -> ()
    %cst_25 = arith.constant dense<0.000000e+00> : vector<1x24x64xf32>
    %63 = tpu.matmul %62, %44, %cst_25 {dimension_numbers = #tpu.dot_dimension_numbers<[2], [1], [1], [2], [0, 0, 0, 1, 1, 2], [0], [0]>} : vector<1x24x24xbf16>, vector<1x24x64xbf16>, vector<1x24x64xf32> -> vector<1x24x64xf32>
    "tpu.trace_stop"() : () -> ()
    %64 = vector.shape_cast %63 : vector<1x24x64xf32> to vector<24x64xf32>
    %65 = arith.truncf %64 : vector<24x64xf32> to vector<24x64xbf16>
    %c0_26 = arith.constant 0 : index
    %c0_27 = arith.constant 0 : index
    %c0_28 = arith.constant 0 : index
    %66 = vector.load %arg8[%c0_26, %c0_27, %c0_28] : memref<1x64x64xbf16, #tpu.memory_space<vmem>>, vector<1x64x64xbf16>
    %67 = vector.shape_cast %66 : vector<1x64x64xbf16> to vector<64x64xbf16>
    %cst_29 = arith.constant dense<0.000000e+00> : vector<24x64xf32>
    %68 = tpu.matmul %65, %67, %cst_29 {dimension_numbers = #tpu.dot_dimension_numbers<[1], [0], [0], [1], [0, 0, 1, 1], [], []>} : vector<24x64xbf16>, vector<64x64xbf16>, vector<24x64xf32> -> vector<24x64xf32>
    %69 = arith.addf %3, %68 : vector<24x64xf32>
    %c0_30 = arith.constant 0 : index
    %c0_31 = arith.constant 0 : index
    %c0_32 = arith.constant 0 : index
    %70 = vector.load %arg9[%c0_30, %c0_31, %c0_32] : memref<1x1x64xf32, #tpu.memory_space<vmem>>, vector<1x1x64xf32>
    %71 = vector.shape_cast %70 : vector<1x1x64xf32> to vector<1x64xf32>
    %72 = vector.broadcast %71 : vector<1x64xf32> to vector<24x64xf32>
    %73 = arith.addf %69, %72 : vector<24x64xf32>
    %c0_33 = arith.constant 0 : index
    %c0_34 = arith.constant 0 : index
    %c0_35 = arith.constant 0 : index
    %74 = vector.load %arg10[%c0_33, %c0_34, %c0_35] : memref<1x1x64xf32, #tpu.memory_space<vmem>>, vector<1x1x64xf32>
    %75 = vector.shape_cast %74 : vector<1x1x64xf32> to vector<1x64xf32>
    %c0_36 = arith.constant 0 : index
    %c0_37 = arith.constant 0 : index
    %c0_38 = arith.constant 0 : index
    %76 = vector.load %arg11[%c0_36, %c0_37, %c0_38] : memref<1x1x64xf32, #tpu.memory_space<vmem>>, vector<1x1x64xf32>
    %77 = vector.shape_cast %76 : vector<1x1x64xf32> to vector<1x64xf32>
    %cst_39 = arith.constant dense<0.000000e+00> : vector<24xf32>
    %78 = vector.multi_reduction <add>, %73, %cst_39 [1] : vector<24x64xf32> to vector<24xf32>
    %79 = vector.shape_cast %78 : vector<24xf32> to vector<24x1xf32>
    %cst_40 = arith.constant 6.400000e+01 : f32
    %80 = vector.broadcast %cst_40 : f32 to vector<24x1xf32>
    %81 = arith.divf %79, %80 : vector<24x1xf32>
    %82 = vector.broadcast %81 : vector<24x1xf32> to vector<24x64xf32>
    %83 = arith.subf %73, %82 : vector<24x64xf32>
    %84 = arith.mulf %83, %83 : vector<24x64xf32>
    %cst_41 = arith.constant dense<0.000000e+00> : vector<24xf32>
    %85 = vector.multi_reduction <add>, %84, %cst_41 [1] : vector<24x64xf32> to vector<24xf32>
    %86 = vector.shape_cast %85 : vector<24xf32> to vector<24x1xf32>
    %cst_42 = arith.constant 6.400000e+01 : f32
    %87 = vector.broadcast %cst_42 : f32 to vector<24x1xf32>
    %88 = arith.divf %86, %87 : vector<24x1xf32>
    %cst_43 = arith.constant 9.99999974E-6 : f32
    %89 = vector.broadcast %cst_43 : f32 to vector<24x1xf32>
    %90 = arith.addf %88, %89 : vector<24x1xf32>
    %91 = math.rsqrt %90 : vector<24x1xf32>
    %92 = vector.broadcast %91 : vector<24x1xf32> to vector<24x64xf32>
    %93 = arith.mulf %83, %92 : vector<24x64xf32>
    %94 = vector.broadcast %75 : vector<1x64xf32> to vector<24x64xf32>
    %95 = arith.mulf %93, %94 : vector<24x64xf32>
    %96 = vector.broadcast %77 : vector<1x64xf32> to vector<24x64xf32>
    %97 = arith.addf %95, %96 : vector<24x64xf32>
    %98 = arith.truncf %97 : vector<24x64xf32> to vector<24x64xbf16>
    %c0_44 = arith.constant 0 : index
    %c0_45 = arith.constant 0 : index
    %c0_46 = arith.constant 0 : index
    %99 = vector.load %arg12[%c0_44, %c0_45, %c0_46] : memref<1x64x256xbf16, #tpu.memory_space<vmem>>, vector<1x64x256xbf16>
    %100 = vector.shape_cast %99 : vector<1x64x256xbf16> to vector<64x256xbf16>
    %cst_47 = arith.constant dense<0.000000e+00> : vector<24x256xf32>
    %101 = tpu.matmul %98, %100, %cst_47 {dimension_numbers = #tpu.dot_dimension_numbers<[1], [0], [0], [1], [0, 0, 1, 1], [], []>} : vector<24x64xbf16>, vector<64x256xbf16>, vector<24x256xf32> -> vector<24x256xf32>
    %c0_48 = arith.constant 0 : index
    %c0_49 = arith.constant 0 : index
    %c0_50 = arith.constant 0 : index
    %102 = vector.load %arg13[%c0_48, %c0_49, %c0_50] : memref<1x1x256xf32, #tpu.memory_space<vmem>>, vector<1x1x256xf32>
    %103 = vector.shape_cast %102 : vector<1x1x256xf32> to vector<1x256xf32>
    %104 = vector.broadcast %103 : vector<1x256xf32> to vector<24x256xf32>
    %105 = arith.addf %101, %104 : vector<24x256xf32>
    %cst_51 = arith.constant -1.702000e+00 : f32
    %106 = vector.broadcast %cst_51 : f32 to vector<24x256xf32>
    %107 = arith.mulf %106, %105 : vector<24x256xf32>
    %108 = math.exp %107 : vector<24x256xf32>
    %cst_52 = arith.constant 1.000000e+00 : f32
    %109 = vector.broadcast %cst_52 : f32 to vector<24x256xf32>
    %110 = arith.addf %109, %108 : vector<24x256xf32>
    %111 = tpu.reciprocal %110 : vector<24x256xf32> -> vector<24x256xf32>
    %112 = arith.mulf %105, %111 : vector<24x256xf32>
    %113 = arith.truncf %112 : vector<24x256xf32> to vector<24x256xbf16>
    %c0_53 = arith.constant 0 : index
    %c0_54 = arith.constant 0 : index
    %c0_55 = arith.constant 0 : index
    %114 = vector.load %arg14[%c0_53, %c0_54, %c0_55] : memref<1x256x64xbf16, #tpu.memory_space<vmem>>, vector<1x256x64xbf16>
    %115 = vector.shape_cast %114 : vector<1x256x64xbf16> to vector<256x64xbf16>
    %cst_56 = arith.constant dense<0.000000e+00> : vector<24x64xf32>
    %116 = tpu.matmul %113, %115, %cst_56 {dimension_numbers = #tpu.dot_dimension_numbers<[1], [0], [0], [1], [0, 0, 1, 1], [], []>} : vector<24x256xbf16>, vector<256x64xbf16>, vector<24x64xf32> -> vector<24x64xf32>
    %117 = arith.addf %73, %116 : vector<24x64xf32>
    %c0_57 = arith.constant 0 : index
    %c0_58 = arith.constant 0 : index
    %c0_59 = arith.constant 0 : index
    %118 = vector.load %arg15[%c0_57, %c0_58, %c0_59] : memref<1x1x64xf32, #tpu.memory_space<vmem>>, vector<1x1x64xf32>
    %119 = vector.shape_cast %118 : vector<1x1x64xf32> to vector<1x64xf32>
    %120 = vector.broadcast %119 : vector<1x64xf32> to vector<24x64xf32>
    %121 = arith.addf %117, %120 : vector<24x64xf32>
    %c0_60 = arith.constant 0 : index
    %c0_61 = arith.constant 0 : index
    %122 = vector.load %arg17[%c0_60, %c0_61] : memref<24x64xf32, #tpu.memory_space<vmem>>, vector<24x64xf32>
    tpu.vector_store %arg17[%c0_60, %c0_61], %121 {strides = array<i32>} : memref<24x64xf32, #tpu.memory_space<vmem>>, vector<24x64xf32>,
    %c1_i32 = arith.constant 1 : i32
    %123 = arith.cmpi eq, %arg1, %c1_i32 : i32
    %124 = arith.extui %123 : i1 to i32
    %c0_i32_62 = arith.constant 0 : i32
    %125 = arith.cmpi ne, %124, %c0_i32_62 : i32
    scf.if %125 {
      %c0_63 = arith.constant 0 : index
      %c0_64 = arith.constant 0 : index
      %126 = vector.load %arg16[%c0_63, %c0_64] : memref<24x64xf32, #tpu.memory_space<vmem>>, vector<24x64xf32>
      tpu.vector_store %arg16[%c0_63, %c0_64], %121 {strides = array<i32>} : memref<24x64xf32, #tpu.memory_space<vmem>>, vector<24x64xf32>,
    } else {
    }
    return
  }
  func.func @transform_0(%arg0: i32, %arg1: i32) -> (i32, i32) {
    %c0_i32 = arith.constant 0 : i32
    %c0_i32_0 = arith.constant 0 : i32
    return %arg0, %c0_i32 : i32, i32
  }
  func.func @transform_1(%arg0: i32, %arg1: i32) -> (i32, i32) {
    %c0_i32 = arith.constant 0 : i32
    %c0_i32_0 = arith.constant 0 : i32
    %c0_i32_1 = arith.constant 0 : i32
    return %c0_i32, %c0_i32_0 : i32, i32
  }
  func.func @transform_2(%arg0: i32, %arg1: i32) -> (i32, i32, i32) {
    %c0_i32 = arith.constant 0 : i32
    %c0_i32_0 = arith.constant 0 : i32
    %c0_i32_1 = arith.constant 0 : i32
    return %arg1, %c0_i32, %c0_i32_0 : i32, i32, i32
  }
  func.func @transform_3(%arg0: i32, %arg1: i32) -> (i32, i32, i32) {
    %c0_i32 = arith.constant 0 : i32
    %c0_i32_0 = arith.constant 0 : i32
    %c0_i32_1 = arith.constant 0 : i32
    return %arg1, %c0_i32, %c0_i32_0 : i32, i32, i32
  }
  func.func @transform_4(%arg0: i32, %arg1: i32) -> (i32, i32, i32) {
    %c0_i32 = arith.constant 0 : i32
    %c0_i32_0 = arith.constant 0 : i32
    %c0_i32_1 = arith.constant 0 : i32
    return %arg1, %c0_i32, %c0_i32_0 : i32, i32, i32
  }
  func.func @transform_5(%arg0: i32, %arg1: i32) -> (i32, i32, i32) {
    %c0_i32 = arith.constant 0 : i32
    %c0_i32_0 = arith.constant 0 : i32
    %c0_i32_1 = arith.constant 0 : i32
    return %arg1, %c0_i32, %c0_i32_0 : i32, i32, i32
  }
  func.func @transform_6(%arg0: i32, %arg1: i32) -> (i32, i32, i32) {
    %c0_i32 = arith.constant 0 : i32
    %c0_i32_0 = arith.constant 0 : i32
    %c0_i32_1 = arith.constant 0 : i32
    return %arg1, %c0_i32, %c0_i32_0 : i32, i32, i32
  }
  func.func @transform_7(%arg0: i32, %arg1: i32) -> (i32, i32, i32) {
    %c0_i32 = arith.constant 0 : i32
    %c0_i32_0 = arith.constant 0 : i32
    %c0_i32_1 = arith.constant 0 : i32
    return %arg1, %c0_i32, %c0_i32_0 : i32, i32, i32
  }
  func.func @transform_8(%arg0: i32, %arg1: i32) -> (i32, i32, i32) {
    %c0_i32 = arith.constant 0 : i32
    %c0_i32_0 = arith.constant 0 : i32
    %c0_i32_1 = arith.constant 0 : i32
    return %arg1, %c0_i32, %c0_i32_0 : i32, i32, i32
  }
  func.func @transform_9(%arg0: i32, %arg1: i32) -> (i32, i32, i32) {
    %c0_i32 = arith.constant 0 : i32
    %c0_i32_0 = arith.constant 0 : i32
    %c0_i32_1 = arith.constant 0 : i32
    return %arg1, %c0_i32, %c0_i32_0 : i32, i32, i32
  }
  func.func @transform_10(%arg0: i32, %arg1: i32) -> (i32, i32, i32) {
    %c0_i32 = arith.constant 0 : i32
    %c0_i32_0 = arith.constant 0 : i32
    %c0_i32_1 = arith.constant 0 : i32
    return %arg1, %c0_i32, %c0_i32_0 : i32, i32, i32
  }
  func.func @transform_11(%arg0: i32, %arg1: i32) -> (i32, i32, i32) {
    %c0_i32 = arith.constant 0 : i32
    %c0_i32_0 = arith.constant 0 : i32
    %c0_i32_1 = arith.constant 0 : i32
    return %arg1, %c0_i32, %c0_i32_0 : i32, i32, i32
  }
  func.func @transform_12(%arg0: i32, %arg1: i32) -> (i32, i32, i32) {
    %c0_i32 = arith.constant 0 : i32
    %c0_i32_0 = arith.constant 0 : i32
    %c0_i32_1 = arith.constant 0 : i32
    return %arg1, %c0_i32, %c0_i32_0 : i32, i32, i32
  }
  func.func @transform_13(%arg0: i32, %arg1: i32) -> (i32, i32, i32) {
    %c0_i32 = arith.constant 0 : i32
    %c0_i32_0 = arith.constant 0 : i32
    %c0_i32_1 = arith.constant 0 : i32
    return %arg1, %c0_i32, %c0_i32_0 : i32, i32, i32
  }
  func.func @transform_14(%arg0: i32, %arg1: i32) -> (i32, i32) {
    %c0_i32 = arith.constant 0 : i32
    %c0_i32_0 = arith.constant 0 : i32
    return %arg0, %c0_i32 : i32, i32
  }
}

module attributes {stable_mosaic.version = 11 : i64} {
  func.func @_transformer_layer_kernel(%arg0: i32, %arg1: i32, %arg2: memref<8x32xf32, #tpu.memory_space<vmem>>, %arg3: memref<8x8xf32, #tpu.memory_space<vmem>>, %arg4: memref<1x1x32xf32, #tpu.memory_space<vmem>>, %arg5: memref<1x1x32xf32, #tpu.memory_space<vmem>>, %arg6: memref<1x32x96xbf16, #tpu.memory_space<vmem>>, %arg7: memref<1x1x96xf32, #tpu.memory_space<vmem>>, %arg8: memref<1x32x32xbf16, #tpu.memory_space<vmem>>, %arg9: memref<1x1x32xf32, #tpu.memory_space<vmem>>, %arg10: memref<1x1x32xf32, #tpu.memory_space<vmem>>, %arg11: memref<1x1x32xf32, #tpu.memory_space<vmem>>, %arg12: memref<1x32x128xbf16, #tpu.memory_space<vmem>>, %arg13: memref<1x1x128xf32, #tpu.memory_space<vmem>>, %arg14: memref<1x128x32xbf16, #tpu.memory_space<vmem>>, %arg15: memref<1x1x32xf32, #tpu.memory_space<vmem>>, %arg16: memref<8x32xf32, #tpu.memory_space<vmem>>, %arg17: memref<8x32xf32, #tpu.memory_space<vmem>>) attributes {dimension_semantics = [#tpu.dimension_semantics<parallel>, #tpu.dimension_semantics<arbitrary>], iteration_bounds = array<i64: 2, 2>, scalar_prefetch = 0 : i64, scratch_operands = 1 : i64, tpu.core_type = #tpu.core_type<tc>, window_params = [{transform_indices = @transform_0, window_bounds = array<i64: 8, 32>}, {pipeline_mode = #tpu.pipeline_mode<synchronous>, transform_indices = @transform_1, window_bounds = array<i64: 8, 8>}, {transform_indices = @transform_2, window_bounds = array<i64: 1, 1, 32>}, {transform_indices = @transform_3, window_bounds = array<i64: 1, 1, 32>}, {transform_indices = @transform_4, window_bounds = array<i64: 1, 32, 96>}, {transform_indices = @transform_5, window_bounds = array<i64: 1, 1, 96>}, {transform_indices = @transform_6, window_bounds = array<i64: 1, 32, 32>}, {transform_indices = @transform_7, window_bounds = array<i64: 1, 1, 32>}, {transform_indices = @transform_8, window_bounds = array<i64: 1, 1, 32>}, {transform_indices = @transform_9, window_bounds = array<i64: 1, 1, 32>}, {transform_indices = @transform_10, window_bounds = array<i64: 1, 32, 128>}, {transform_indices = @transform_11, window_bounds = array<i64: 1, 1, 128>}, {transform_indices = @transform_12, window_bounds = array<i64: 1, 128, 32>}, {transform_indices = @transform_13, window_bounds = array<i64: 1, 1, 32>}, {transform_indices = @transform_14, window_bounds = array<i64: 8, 32>}]} {
    %c0_i32 = arith.constant 0 : i32
    %0 = arith.cmpi eq, %arg1, %c0_i32 : i32
    %1 = arith.extui %0 : i1 to i32
    %c0_i32_0 = arith.constant 0 : i32
    %2 = arith.cmpi ne, %1, %c0_i32_0 : i32
    scf.if %2 {
      %c0_63 = arith.constant 0 : index
      %c0_64 = arith.constant 0 : index
      %138 = vector.load %arg2[%c0_63, %c0_64] : memref<8x32xf32, #tpu.memory_space<vmem>>, vector<8x32xf32>
      %c0_65 = arith.constant 0 : index
      %c0_66 = arith.constant 0 : index
      %139 = vector.load %arg17[%c0_65, %c0_66] : memref<8x32xf32, #tpu.memory_space<vmem>>, vector<8x32xf32>
      tpu.vector_store %arg17[%c0_65, %c0_66], %138 {strides = array<i32>} : memref<8x32xf32, #tpu.memory_space<vmem>>, vector<8x32xf32>,
    } else {
    }
    %c0 = arith.constant 0 : index
    %c0_1 = arith.constant 0 : index
    %3 = vector.load %arg17[%c0, %c0_1] : memref<8x32xf32, #tpu.memory_space<vmem>>, vector<8x32xf32>
    %c0_2 = arith.constant 0 : index
    %c0_3 = arith.constant 0 : index
    %c0_4 = arith.constant 0 : index
    %4 = vector.load %arg4[%c0_2, %c0_3, %c0_4] : memref<1x1x32xf32, #tpu.memory_space<vmem>>, vector<1x1x32xf32>
    %5 = vector.shape_cast %4 : vector<1x1x32xf32> to vector<1x32xf32>
    %c0_5 = arith.constant 0 : index
    %c0_6 = arith.constant 0 : index
    %c0_7 = arith.constant 0 : index
    %6 = vector.load %arg5[%c0_5, %c0_6, %c0_7] : memref<1x1x32xf32, #tpu.memory_space<vmem>>, vector<1x1x32xf32>
    %7 = vector.shape_cast %6 : vector<1x1x32xf32> to vector<1x32xf32>
    %cst = arith.constant dense<0.000000e+00> : vector<8xf32>
    %8 = vector.multi_reduction <add>, %3, %cst [1] : vector<8x32xf32> to vector<8xf32>
    %9 = vector.shape_cast %8 : vector<8xf32> to vector<8x1xf32>
    %cst_8 = arith.constant 3.200000e+01 : f32
    %10 = vector.broadcast %cst_8 : f32 to vector<8x1xf32>
    %11 = arith.divf %9, %10 : vector<8x1xf32>
    %12 = vector.broadcast %11 : vector<8x1xf32> to vector<8x32xf32>
    %13 = arith.subf %3, %12 : vector<8x32xf32>
    %14 = arith.mulf %13, %13 : vector<8x32xf32>
    %cst_9 = arith.constant dense<0.000000e+00> : vector<8xf32>
    %15 = vector.multi_reduction <add>, %14, %cst_9 [1] : vector<8x32xf32> to vector<8xf32>
    %16 = vector.shape_cast %15 : vector<8xf32> to vector<8x1xf32>
    %cst_10 = arith.constant 3.200000e+01 : f32
    %17 = vector.broadcast %cst_10 : f32 to vector<8x1xf32>
    %18 = arith.divf %16, %17 : vector<8x1xf32>
    %cst_11 = arith.constant 9.99999974E-6 : f32
    %19 = vector.broadcast %cst_11 : f32 to vector<8x1xf32>
    %20 = arith.addf %18, %19 : vector<8x1xf32>
    %21 = math.rsqrt %20 : vector<8x1xf32>
    %22 = vector.broadcast %21 : vector<8x1xf32> to vector<8x32xf32>
    %23 = arith.mulf %13, %22 : vector<8x32xf32>
    %24 = vector.broadcast %5 : vector<1x32xf32> to vector<8x32xf32>
    %25 = arith.mulf %23, %24 : vector<8x32xf32>
    %26 = vector.broadcast %7 : vector<1x32xf32> to vector<8x32xf32>
    %27 = arith.addf %25, %26 : vector<8x32xf32>
    %28 = arith.truncf %27 : vector<8x32xf32> to vector<8x32xbf16>
    %c0_12 = arith.constant 0 : index
    %c0_13 = arith.constant 0 : index
    %c0_14 = arith.constant 0 : index
    %29 = vector.load %arg6[%c0_12, %c0_13, %c0_14] : memref<1x32x96xbf16, #tpu.memory_space<vmem>>, vector<1x32x96xbf16>
    %30 = vector.shape_cast %29 : vector<1x32x96xbf16> to vector<32x96xbf16>
    %cst_15 = arith.constant dense<0.000000e+00> : vector<8x96xf32>
    %31 = tpu.matmul %28, %30, %cst_15 {dimension_numbers = #tpu.dot_dimension_numbers<[1], [0], [0], [1], [0, 0, 1, 1], [], []>} : vector<8x32xbf16>, vector<32x96xbf16>, vector<8x96xf32> -> vector<8x96xf32>
    %c0_16 = arith.constant 0 : index
    %c0_17 = arith.constant 0 : index
    %c0_18 = arith.constant 0 : index
    %32 = vector.load %arg7[%c0_16, %c0_17, %c0_18] : memref<1x1x96xf32, #tpu.memory_space<vmem>>, vector<1x1x96xf32>
    %33 = vector.shape_cast %32 : vector<1x1x96xf32> to vector<1x96xf32>
    %34 = vector.broadcast %33 : vector<1x96xf32> to vector<8x96xf32>
    %35 = arith.addf %31, %34 : vector<8x96xf32>
    %36 = vector.extract_strided_slice %35 {offsets = [0, 0], sizes = [8, 32], strides = [1, 1]} : vector<8x96xf32> to vector<8x32xf32>
    %37 = vector.shape_cast %36 : vector<8x32xf32> to vector<1x8x32xf32>
    %38 = tpu.transpose %37, [0, 2, 1] : vector<1x8x32xf32> -> vector<1x32x8xf32>
    %39 = vector.shape_cast %38 : vector<1x32x8xf32> to vector<4x8x8xf32>
    %40 = tpu.transpose %39, [0, 2, 1] : vector<4x8x8xf32> -> vector<4x8x8xf32>
    %41 = arith.truncf %40 : vector<4x8x8xf32> to vector<4x8x8xbf16>
    %42 = vector.extract_strided_slice %35 {offsets = [0, 32], sizes = [8, 32], strides = [1, 1]} : vector<8x96xf32> to vector<8x32xf32>
    %43 = vector.shape_cast %42 : vector<8x32xf32> to vector<1x8x32xf32>
    %44 = tpu.transpose %43, [0, 2, 1] : vector<1x8x32xf32> -> vector<1x32x8xf32>
    %45 = vector.shape_cast %44 : vector<1x32x8xf32> to vector<4x8x8xf32>
    %46 = tpu.transpose %45, [0, 2, 1] : vector<4x8x8xf32> -> vector<4x8x8xf32>
    %47 = arith.truncf %46 : vector<4x8x8xf32> to vector<4x8x8xbf16>
    %48 = vector.extract_strided_slice %35 {offsets = [0, 64], sizes = [8, 32], strides = [1, 1]} : vector<8x96xf32> to vector<8x32xf32>
    %49 = vector.shape_cast %48 : vector<8x32xf32> to vector<1x8x32xf32>
    %50 = tpu.transpose %49, [0, 2, 1] : vector<1x8x32xf32> -> vector<1x32x8xf32>
    %51 = vector.shape_cast %50 : vector<1x32x8xf32> to vector<4x8x8xf32>
    %52 = tpu.transpose %51, [0, 2, 1] : vector<4x8x8xf32> -> vector<4x8x8xf32>
    %53 = arith.truncf %52 : vector<4x8x8xf32> to vector<4x8x8xbf16>
    "tpu.trace_start"() <{level = 10 : i32, message = "bqd,bkd->bqk"}> : () -> ()
    %cst_19 = arith.constant dense<0.000000e+00> : vector<4x8x8xf32>
    %54 = tpu.matmul %41, %47, %cst_19 {dimension_numbers = #tpu.dot_dimension_numbers<[2], [2], [1], [1], [0, 0, 0, 1, 1, 1], [0], [0]>} : vector<4x8x8xbf16>, vector<4x8x8xbf16>, vector<4x8x8xf32> -> vector<4x8x8xf32>
    "tpu.trace_stop"() : () -> ()
    %cst_20 = arith.constant 0.353553385 : f32
    %55 = vector.broadcast %cst_20 : f32 to vector<4x8x8xf32>
    %56 = arith.mulf %54, %55 : vector<4x8x8xf32>
    %c0_21 = arith.constant 0 : index
    %c0_22 = arith.constant 0 : index
    %57 = vector.load %arg3[%c0_21, %c0_22] : memref<8x8xf32, #tpu.memory_space<vmem>>, vector<8x8xf32>
    %58 = vector.shape_cast %57 : vector<8x8xf32> to vector<1x8x8xf32>
    %59 = vector.broadcast %58 : vector<1x8x8xf32> to vector<4x8x8xf32>
    %60 = arith.addf %56, %59 : vector<4x8x8xf32>
    %cst_23 = arith.constant dense<0xFF800000> : vector<4x8xf32>
    %61 = vector.multi_reduction <maximumf>, %60, %cst_23 [2] : vector<4x8x8xf32> to vector<4x8xf32>
    %62 = vector.shape_cast %61 : vector<4x8xf32> to vector<4x8x1xf32>
    %63 = vector.broadcast %62 : vector<4x8x1xf32> to vector<4x8x8xf32>
    %64 = arith.subf %60, %63 : vector<4x8x8xf32>
    %65 = math.exp %64 : vector<4x8x8xf32>
    %cst_24 = arith.constant dense<0.000000e+00> : vector<4x8xf32>
    %66 = vector.multi_reduction <add>, %65, %cst_24 [2] : vector<4x8x8xf32> to vector<4x8xf32>
    %67 = vector.shape_cast %66 : vector<4x8xf32> to vector<4x8x1xf32>
    %68 = tpu.reciprocal %67 {approx = true} : vector<4x8x1xf32> -> vector<4x8x1xf32>
    %69 = vector.broadcast %68 : vector<4x8x1xf32> to vector<4x8x8xf32>
    %70 = arith.mulf %65, %69 : vector<4x8x8xf32>
    %71 = arith.truncf %70 : vector<4x8x8xf32> to vector<4x8x8xbf16>
    "tpu.trace_start"() <{level = 10 : i32, message = "bqk,bkd->bqd"}> : () -> ()
    %cst_25 = arith.constant dense<0.000000e+00> : vector<4x8x8xf32>
    %72 = tpu.matmul %71, %53, %cst_25 {dimension_numbers = #tpu.dot_dimension_numbers<[2], [1], [1], [2], [0, 0, 0, 1, 1, 2], [0], [0]>} : vector<4x8x8xbf16>, vector<4x8x8xbf16>, vector<4x8x8xf32> -> vector<4x8x8xf32>
    "tpu.trace_stop"() : () -> ()
    %73 = tpu.transpose %72, [0, 2, 1] : vector<4x8x8xf32> -> vector<4x8x8xf32>
    %74 = vector.shape_cast %73 : vector<4x8x8xf32> to vector<1x32x8xf32>
    %75 = tpu.transpose %74, [0, 2, 1] : vector<1x32x8xf32> -> vector<1x8x32xf32>
    %76 = vector.shape_cast %75 : vector<1x8x32xf32> to vector<8x32xf32>
    %77 = arith.truncf %76 : vector<8x32xf32> to vector<8x32xbf16>
    %c0_26 = arith.constant 0 : index
    %c0_27 = arith.constant 0 : index
    %c0_28 = arith.constant 0 : index
    %78 = vector.load %arg8[%c0_26, %c0_27, %c0_28] : memref<1x32x32xbf16, #tpu.memory_space<vmem>>, vector<1x32x32xbf16>
    %79 = vector.shape_cast %78 : vector<1x32x32xbf16> to vector<32x32xbf16>
    %cst_29 = arith.constant dense<0.000000e+00> : vector<8x32xf32>
    %80 = tpu.matmul %77, %79, %cst_29 {dimension_numbers = #tpu.dot_dimension_numbers<[1], [0], [0], [1], [0, 0, 1, 1], [], []>} : vector<8x32xbf16>, vector<32x32xbf16>, vector<8x32xf32> -> vector<8x32xf32>
    %81 = arith.addf %3, %80 : vector<8x32xf32>
    %c0_30 = arith.constant 0 : index
    %c0_31 = arith.constant 0 : index
    %c0_32 = arith.constant 0 : index
    %82 = vector.load %arg9[%c0_30, %c0_31, %c0_32] : memref<1x1x32xf32, #tpu.memory_space<vmem>>, vector<1x1x32xf32>
    %83 = vector.shape_cast %82 : vector<1x1x32xf32> to vector<1x32xf32>
    %84 = vector.broadcast %83 : vector<1x32xf32> to vector<8x32xf32>
    %85 = arith.addf %81, %84 : vector<8x32xf32>
    %c0_33 = arith.constant 0 : index
    %c0_34 = arith.constant 0 : index
    %c0_35 = arith.constant 0 : index
    %86 = vector.load %arg10[%c0_33, %c0_34, %c0_35] : memref<1x1x32xf32, #tpu.memory_space<vmem>>, vector<1x1x32xf32>
    %87 = vector.shape_cast %86 : vector<1x1x32xf32> to vector<1x32xf32>
    %c0_36 = arith.constant 0 : index
    %c0_37 = arith.constant 0 : index
    %c0_38 = arith.constant 0 : index
    %88 = vector.load %arg11[%c0_36, %c0_37, %c0_38] : memref<1x1x32xf32, #tpu.memory_space<vmem>>, vector<1x1x32xf32>
    %89 = vector.shape_cast %88 : vector<1x1x32xf32> to vector<1x32xf32>
    %cst_39 = arith.constant dense<0.000000e+00> : vector<8xf32>
    %90 = vector.multi_reduction <add>, %85, %cst_39 [1] : vector<8x32xf32> to vector<8xf32>
    %91 = vector.shape_cast %90 : vector<8xf32> to vector<8x1xf32>
    %cst_40 = arith.constant 3.200000e+01 : f32
    %92 = vector.broadcast %cst_40 : f32 to vector<8x1xf32>
    %93 = arith.divf %91, %92 : vector<8x1xf32>
    %94 = vector.broadcast %93 : vector<8x1xf32> to vector<8x32xf32>
    %95 = arith.subf %85, %94 : vector<8x32xf32>
    %96 = arith.mulf %95, %95 : vector<8x32xf32>
    %cst_41 = arith.constant dense<0.000000e+00> : vector<8xf32>
    %97 = vector.multi_reduction <add>, %96, %cst_41 [1] : vector<8x32xf32> to vector<8xf32>
    %98 = vector.shape_cast %97 : vector<8xf32> to vector<8x1xf32>
    %cst_42 = arith.constant 3.200000e+01 : f32
    %99 = vector.broadcast %cst_42 : f32 to vector<8x1xf32>
    %100 = arith.divf %98, %99 : vector<8x1xf32>
    %cst_43 = arith.constant 9.99999974E-6 : f32
    %101 = vector.broadcast %cst_43 : f32 to vector<8x1xf32>
    %102 = arith.addf %100, %101 : vector<8x1xf32>
    %103 = math.rsqrt %102 : vector<8x1xf32>
    %104 = vector.broadcast %103 : vector<8x1xf32> to vector<8x32xf32>
    %105 = arith.mulf %95, %104 : vector<8x32xf32>
    %106 = vector.broadcast %87 : vector<1x32xf32> to vector<8x32xf32>
    %107 = arith.mulf %105, %106 : vector<8x32xf32>
    %108 = vector.broadcast %89 : vector<1x32xf32> to vector<8x32xf32>
    %109 = arith.addf %107, %108 : vector<8x32xf32>
    %110 = arith.truncf %109 : vector<8x32xf32> to vector<8x32xbf16>
    %c0_44 = arith.constant 0 : index
    %c0_45 = arith.constant 0 : index
    %c0_46 = arith.constant 0 : index
    %111 = vector.load %arg12[%c0_44, %c0_45, %c0_46] : memref<1x32x128xbf16, #tpu.memory_space<vmem>>, vector<1x32x128xbf16>
    %112 = vector.shape_cast %111 : vector<1x32x128xbf16> to vector<32x128xbf16>
    %cst_47 = arith.constant dense<0.000000e+00> : vector<8x128xf32>
    %113 = tpu.matmul %110, %112, %cst_47 {dimension_numbers = #tpu.dot_dimension_numbers<[1], [0], [0], [1], [0, 0, 1, 1], [], []>} : vector<8x32xbf16>, vector<32x128xbf16>, vector<8x128xf32> -> vector<8x128xf32>
    %c0_48 = arith.constant 0 : index
    %c0_49 = arith.constant 0 : index
    %c0_50 = arith.constant 0 : index
    %114 = vector.load %arg13[%c0_48, %c0_49, %c0_50] : memref<1x1x128xf32, #tpu.memory_space<vmem>>, vector<1x1x128xf32>
    %115 = vector.shape_cast %114 : vector<1x1x128xf32> to vector<1x128xf32>
    %116 = vector.broadcast %115 : vector<1x128xf32> to vector<8x128xf32>
    %117 = arith.addf %113, %116 : vector<8x128xf32>
    %cst_51 = arith.constant -1.702000e+00 : f32
    %118 = vector.broadcast %cst_51 : f32 to vector<8x128xf32>
    %119 = arith.mulf %118, %117 : vector<8x128xf32>
    %120 = math.exp %119 : vector<8x128xf32>
    %cst_52 = arith.constant 1.000000e+00 : f32
    %121 = vector.broadcast %cst_52 : f32 to vector<8x128xf32>
    %122 = arith.addf %121, %120 : vector<8x128xf32>
    %123 = tpu.reciprocal %122 : vector<8x128xf32> -> vector<8x128xf32>
    %124 = arith.mulf %117, %123 : vector<8x128xf32>
    %125 = arith.truncf %124 : vector<8x128xf32> to vector<8x128xbf16>
    %c0_53 = arith.constant 0 : index
    %c0_54 = arith.constant 0 : index
    %c0_55 = arith.constant 0 : index
    %126 = vector.load %arg14[%c0_53, %c0_54, %c0_55] : memref<1x128x32xbf16, #tpu.memory_space<vmem>>, vector<1x128x32xbf16>
    %127 = vector.shape_cast %126 : vector<1x128x32xbf16> to vector<128x32xbf16>
    %cst_56 = arith.constant dense<0.000000e+00> : vector<8x32xf32>
    %128 = tpu.matmul %125, %127, %cst_56 {dimension_numbers = #tpu.dot_dimension_numbers<[1], [0], [0], [1], [0, 0, 1, 1], [], []>} : vector<8x128xbf16>, vector<128x32xbf16>, vector<8x32xf32> -> vector<8x32xf32>
    %129 = arith.addf %85, %128 : vector<8x32xf32>
    %c0_57 = arith.constant 0 : index
    %c0_58 = arith.constant 0 : index
    %c0_59 = arith.constant 0 : index
    %130 = vector.load %arg15[%c0_57, %c0_58, %c0_59] : memref<1x1x32xf32, #tpu.memory_space<vmem>>, vector<1x1x32xf32>
    %131 = vector.shape_cast %130 : vector<1x1x32xf32> to vector<1x32xf32>
    %132 = vector.broadcast %131 : vector<1x32xf32> to vector<8x32xf32>
    %133 = arith.addf %129, %132 : vector<8x32xf32>
    %c0_60 = arith.constant 0 : index
    %c0_61 = arith.constant 0 : index
    %134 = vector.load %arg17[%c0_60, %c0_61] : memref<8x32xf32, #tpu.memory_space<vmem>>, vector<8x32xf32>
    tpu.vector_store %arg17[%c0_60, %c0_61], %133 {strides = array<i32>} : memref<8x32xf32, #tpu.memory_space<vmem>>, vector<8x32xf32>,
    %c1_i32 = arith.constant 1 : i32
    %135 = arith.cmpi eq, %arg1, %c1_i32 : i32
    %136 = arith.extui %135 : i1 to i32
    %c0_i32_62 = arith.constant 0 : i32
    %137 = arith.cmpi ne, %136, %c0_i32_62 : i32
    scf.if %137 {
      %c0_63 = arith.constant 0 : index
      %c0_64 = arith.constant 0 : index
      %138 = vector.load %arg16[%c0_63, %c0_64] : memref<8x32xf32, #tpu.memory_space<vmem>>, vector<8x32xf32>
      tpu.vector_store %arg16[%c0_63, %c0_64], %133 {strides = array<i32>} : memref<8x32xf32, #tpu.memory_space<vmem>>, vector<8x32xf32>,
    } else {
    }
    return
  }
  func.func @transform_0(%arg0: i32, %arg1: i32) -> (i32, i32) {
    %c0_i32 = arith.constant 0 : i32
    %c0_i32_0 = arith.constant 0 : i32
    return %arg0, %c0_i32 : i32, i32
  }
  func.func @transform_1(%arg0: i32, %arg1: i32) -> (i32, i32) {
    %c0_i32 = arith.constant 0 : i32
    %c0_i32_0 = arith.constant 0 : i32
    %c0_i32_1 = arith.constant 0 : i32
    return %c0_i32, %c0_i32_0 : i32, i32
  }
  func.func @transform_2(%arg0: i32, %arg1: i32) -> (i32, i32, i32) {
    %c0_i32 = arith.constant 0 : i32
    %c0_i32_0 = arith.constant 0 : i32
    %c0_i32_1 = arith.constant 0 : i32
    return %arg1, %c0_i32, %c0_i32_0 : i32, i32, i32
  }
  func.func @transform_3(%arg0: i32, %arg1: i32) -> (i32, i32, i32) {
    %c0_i32 = arith.constant 0 : i32
    %c0_i32_0 = arith.constant 0 : i32
    %c0_i32_1 = arith.constant 0 : i32
    return %arg1, %c0_i32, %c0_i32_0 : i32, i32, i32
  }
  func.func @transform_4(%arg0: i32, %arg1: i32) -> (i32, i32, i32) {
    %c0_i32 = arith.constant 0 : i32
    %c0_i32_0 = arith.constant 0 : i32
    %c0_i32_1 = arith.constant 0 : i32
    return %arg1, %c0_i32, %c0_i32_0 : i32, i32, i32
  }
  func.func @transform_5(%arg0: i32, %arg1: i32) -> (i32, i32, i32) {
    %c0_i32 = arith.constant 0 : i32
    %c0_i32_0 = arith.constant 0 : i32
    %c0_i32_1 = arith.constant 0 : i32
    return %arg1, %c0_i32, %c0_i32_0 : i32, i32, i32
  }
  func.func @transform_6(%arg0: i32, %arg1: i32) -> (i32, i32, i32) {
    %c0_i32 = arith.constant 0 : i32
    %c0_i32_0 = arith.constant 0 : i32
    %c0_i32_1 = arith.constant 0 : i32
    return %arg1, %c0_i32, %c0_i32_0 : i32, i32, i32
  }
  func.func @transform_7(%arg0: i32, %arg1: i32) -> (i32, i32, i32) {
    %c0_i32 = arith.constant 0 : i32
    %c0_i32_0 = arith.constant 0 : i32
    %c0_i32_1 = arith.constant 0 : i32
    return %arg1, %c0_i32, %c0_i32_0 : i32, i32, i32
  }
  func.func @transform_8(%arg0: i32, %arg1: i32) -> (i32, i32, i32) {
    %c0_i32 = arith.constant 0 : i32
    %c0_i32_0 = arith.constant 0 : i32
    %c0_i32_1 = arith.constant 0 : i32
    return %arg1, %c0_i32, %c0_i32_0 : i32, i32, i32
  }
  func.func @transform_9(%arg0: i32, %arg1: i32) -> (i32, i32, i32) {
    %c0_i32 = arith.constant 0 : i32
    %c0_i32_0 = arith.constant 0 : i32
    %c0_i32_1 = arith.constant 0 : i32
    return %arg1, %c0_i32, %c0_i32_0 : i32, i32, i32
  }
  func.func @transform_10(%arg0: i32, %arg1: i32) -> (i32, i32, i32) {
    %c0_i32 = arith.constant 0 : i32
    %c0_i32_0 = arith.constant 0 : i32
    %c0_i32_1 = arith.constant 0 : i32
    return %arg1, %c0_i32, %c0_i32_0 : i32, i32, i32
  }
  func.func @transform_11(%arg0: i32, %arg1: i32) -> (i32, i32, i32) {
    %c0_i32 = arith.constant 0 : i32
    %c0_i32_0 = arith.constant 0 : i32
    %c0_i32_1 = arith.constant 0 : i32
    return %arg1, %c0_i32, %c0_i32_0 : i32, i32, i32
  }
  func.func @transform_12(%arg0: i32, %arg1: i32) -> (i32, i32, i32) {
    %c0_i32 = arith.constant 0 : i32
    %c0_i32_0 = arith.constant 0 : i32
    %c0_i32_1 = arith.constant 0 : i32
    return %arg1, %c0_i32, %c0_i32_0 : i32, i32, i32
  }
  func.func @transform_13(%arg0: i32, %arg1: i32) -> (i32, i32, i32) {
    %c0_i32 = arith.constant 0 : i32
    %c0_i32_0 = arith.constant 0 : i32
    %c0_i32_1 = arith.constant 0 : i32
    return %arg1, %c0_i32, %c0_i32_0 : i32, i32, i32
  }
  func.func @transform_14(%arg0: i32, %arg1: i32) -> (i32, i32) {
    %c0_i32 = arith.constant 0 : i32
    %c0_i32_0 = arith.constant 0 : i32
    return %arg0, %c0_i32 : i32, i32
  }
}

module attributes {stable_mosaic.version = 11 : i64} {
  func.func @_clip_head_kernel(%arg0: memref<2x64xf32, #tpu.memory_space<vmem>>, %arg1: memref<1x64xf32, #tpu.memory_space<vmem>>, %arg2: memref<1x64xf32, #tpu.memory_space<vmem>>, %arg3: memref<64x32xf32, #tpu.memory_space<vmem>>, %arg4: memref<2x32xf32, #tpu.memory_space<vmem>>, %arg5: memref<1x32xf32, #tpu.memory_space<vmem>>, %arg6: memref<1x32xf32, #tpu.memory_space<vmem>>, %arg7: memref<32x32xf32, #tpu.memory_space<vmem>>, %arg8: memref<1x1xf32, #tpu.memory_space<vmem>>, %arg9: memref<2x2xf32, #tpu.memory_space<vmem>>) attributes {dimension_semantics = [], scalar_prefetch = 0 : i64, scratch_operands = 0 : i64, tpu.core_type = #tpu.core_type<tc>} {
    %c0 = arith.constant 0 : index
    %c0_0 = arith.constant 0 : index
    %0 = vector.load %arg0[%c0, %c0_0] : memref<2x64xf32, #tpu.memory_space<vmem>>, vector<2x64xf32>
    %c0_1 = arith.constant 0 : index
    %c0_2 = arith.constant 0 : index
    %1 = vector.load %arg1[%c0_1, %c0_2] : memref<1x64xf32, #tpu.memory_space<vmem>>, vector<1x64xf32>
    %c0_3 = arith.constant 0 : index
    %c0_4 = arith.constant 0 : index
    %2 = vector.load %arg2[%c0_3, %c0_4] : memref<1x64xf32, #tpu.memory_space<vmem>>, vector<1x64xf32>
    %cst = arith.constant dense<0.000000e+00> : vector<2xf32>
    %3 = vector.multi_reduction <add>, %0, %cst [1] : vector<2x64xf32> to vector<2xf32>
    %4 = vector.shape_cast %3 : vector<2xf32> to vector<2x1xf32>
    %cst_5 = arith.constant 6.400000e+01 : f32
    %5 = vector.broadcast %cst_5 : f32 to vector<2x1xf32>
    %6 = arith.divf %4, %5 : vector<2x1xf32>
    %7 = vector.broadcast %6 : vector<2x1xf32> to vector<2x64xf32>
    %8 = arith.subf %0, %7 : vector<2x64xf32>
    %9 = arith.mulf %8, %8 : vector<2x64xf32>
    %cst_6 = arith.constant dense<0.000000e+00> : vector<2xf32>
    %10 = vector.multi_reduction <add>, %9, %cst_6 [1] : vector<2x64xf32> to vector<2xf32>
    %11 = vector.shape_cast %10 : vector<2xf32> to vector<2x1xf32>
    %cst_7 = arith.constant 6.400000e+01 : f32
    %12 = vector.broadcast %cst_7 : f32 to vector<2x1xf32>
    %13 = arith.divf %11, %12 : vector<2x1xf32>
    %cst_8 = arith.constant 9.99999974E-6 : f32
    %14 = vector.broadcast %cst_8 : f32 to vector<2x1xf32>
    %15 = arith.addf %13, %14 : vector<2x1xf32>
    %16 = math.rsqrt %15 : vector<2x1xf32>
    %17 = vector.broadcast %16 : vector<2x1xf32> to vector<2x64xf32>
    %18 = arith.mulf %8, %17 : vector<2x64xf32>
    %19 = vector.broadcast %1 : vector<1x64xf32> to vector<2x64xf32>
    %20 = arith.mulf %18, %19 : vector<2x64xf32>
    %21 = vector.broadcast %2 : vector<1x64xf32> to vector<2x64xf32>
    %22 = arith.addf %20, %21 : vector<2x64xf32>
    %c0_9 = arith.constant 0 : index
    %c0_10 = arith.constant 0 : index
    %23 = vector.load %arg3[%c0_9, %c0_10] : memref<64x32xf32, #tpu.memory_space<vmem>>, vector<64x32xf32>
    %cst_11 = arith.constant dense<0.000000e+00> : vector<2x32xf32>
    %24 = tpu.matmul %22, %23, %cst_11 {dimension_numbers = #tpu.dot_dimension_numbers<[1], [0], [0], [1], [0, 0, 1, 1], [], []>} : vector<2x64xf32>, vector<64x32xf32>, vector<2x32xf32> -> vector<2x32xf32>
    %c0_12 = arith.constant 0 : index
    %c0_13 = arith.constant 0 : index
    %25 = vector.load %arg4[%c0_12, %c0_13] : memref<2x32xf32, #tpu.memory_space<vmem>>, vector<2x32xf32>
    %c0_14 = arith.constant 0 : index
    %c0_15 = arith.constant 0 : index
    %26 = vector.load %arg5[%c0_14, %c0_15] : memref<1x32xf32, #tpu.memory_space<vmem>>, vector<1x32xf32>
    %c0_16 = arith.constant 0 : index
    %c0_17 = arith.constant 0 : index
    %27 = vector.load %arg6[%c0_16, %c0_17] : memref<1x32xf32, #tpu.memory_space<vmem>>, vector<1x32xf32>
    %cst_18 = arith.constant dense<0.000000e+00> : vector<2xf32>
    %28 = vector.multi_reduction <add>, %25, %cst_18 [1] : vector<2x32xf32> to vector<2xf32>
    %29 = vector.shape_cast %28 : vector<2xf32> to vector<2x1xf32>
    %cst_19 = arith.constant 3.200000e+01 : f32
    %30 = vector.broadcast %cst_19 : f32 to vector<2x1xf32>
    %31 = arith.divf %29, %30 : vector<2x1xf32>
    %32 = vector.broadcast %31 : vector<2x1xf32> to vector<2x32xf32>
    %33 = arith.subf %25, %32 : vector<2x32xf32>
    %34 = arith.mulf %33, %33 : vector<2x32xf32>
    %cst_20 = arith.constant dense<0.000000e+00> : vector<2xf32>
    %35 = vector.multi_reduction <add>, %34, %cst_20 [1] : vector<2x32xf32> to vector<2xf32>
    %36 = vector.shape_cast %35 : vector<2xf32> to vector<2x1xf32>
    %cst_21 = arith.constant 3.200000e+01 : f32
    %37 = vector.broadcast %cst_21 : f32 to vector<2x1xf32>
    %38 = arith.divf %36, %37 : vector<2x1xf32>
    %cst_22 = arith.constant 9.99999974E-6 : f32
    %39 = vector.broadcast %cst_22 : f32 to vector<2x1xf32>
    %40 = arith.addf %38, %39 : vector<2x1xf32>
    %41 = math.rsqrt %40 : vector<2x1xf32>
    %42 = vector.broadcast %41 : vector<2x1xf32> to vector<2x32xf32>
    %43 = arith.mulf %33, %42 : vector<2x32xf32>
    %44 = vector.broadcast %26 : vector<1x32xf32> to vector<2x32xf32>
    %45 = arith.mulf %43, %44 : vector<2x32xf32>
    %46 = vector.broadcast %27 : vector<1x32xf32> to vector<2x32xf32>
    %47 = arith.addf %45, %46 : vector<2x32xf32>
    %c0_23 = arith.constant 0 : index
    %c0_24 = arith.constant 0 : index
    %48 = vector.load %arg7[%c0_23, %c0_24] : memref<32x32xf32, #tpu.memory_space<vmem>>, vector<32x32xf32>
    %cst_25 = arith.constant dense<0.000000e+00> : vector<2x32xf32>
    %49 = tpu.matmul %47, %48, %cst_25 {dimension_numbers = #tpu.dot_dimension_numbers<[1], [0], [0], [1], [0, 0, 1, 1], [], []>} : vector<2x32xf32>, vector<32x32xf32>, vector<2x32xf32> -> vector<2x32xf32>
    %50 = arith.mulf %24, %24 : vector<2x32xf32>
    %cst_26 = arith.constant dense<0.000000e+00> : vector<2xf32>
    %51 = vector.multi_reduction <add>, %50, %cst_26 [1] : vector<2x32xf32> to vector<2xf32>
    %52 = vector.shape_cast %51 : vector<2xf32> to vector<2x1xf32>
    %cst_27 = arith.constant 9.99999996E-13 : f32
    %53 = vector.broadcast %cst_27 : f32 to vector<2x1xf32>
    %54 = arith.addf %52, %53 : vector<2x1xf32>
    %55 = math.rsqrt %54 : vector<2x1xf32>
    %56 = vector.broadcast %55 : vector<2x1xf32> to vector<2x32xf32>
    %57 = arith.mulf %24, %56 : vector<2x32xf32>
    %58 = arith.mulf %49, %49 : vector<2x32xf32>
    %cst_28 = arith.constant dense<0.000000e+00> : vector<2xf32>
    %59 = vector.multi_reduction <add>, %58, %cst_28 [1] : vector<2x32xf32> to vector<2xf32>
    %60 = vector.shape_cast %59 : vector<2xf32> to vector<2x1xf32>
    %cst_29 = arith.constant 9.99999996E-13 : f32
    %61 = vector.broadcast %cst_29 : f32 to vector<2x1xf32>
    %62 = arith.addf %60, %61 : vector<2x1xf32>
    %63 = math.rsqrt %62 : vector<2x1xf32>
    %64 = vector.broadcast %63 : vector<2x1xf32> to vector<2x32xf32>
    %65 = arith.mulf %49, %64 : vector<2x32xf32>
    %c0_30 = arith.constant 0 : index
    %c0_31 = arith.constant 0 : index
    %66 = vector.load %arg8[%c0_30, %c0_31] : memref<1x1xf32, #tpu.memory_space<vmem>>, vector<1x1xf32>
    %67 = math.exp %66 : vector<1x1xf32>
    %cst_32 = arith.constant dense<0.000000e+00> : vector<2x2xf32>
    %68 = tpu.matmul %57, %65, %cst_32 {dimension_numbers = #tpu.dot_dimension_numbers<[1], [1], [0], [0], [0, 0, 1, 0], [], []>} : vector<2x32xf32>, vector<2x32xf32>, vector<2x2xf32> -> vector<2x2xf32>
    %69 = vector.broadcast %67 : vector<1x1xf32> to vector<2x2xf32>
    %70 = arith.mulf %69, %68 : vector<2x2xf32>
    %c0_33 = arith.constant 0 : index
    %c0_34 = arith.constant 0 : index
    %71 = vector.load %arg9[%c0_33, %c0_34] : memref<2x2xf32, #tpu.memory_space<vmem>>, vector<2x2xf32>
    tpu.vector_store %arg9[%c0_33, %c0_34], %70 {strides = array<i32>} : memref<2x2xf32, #tpu.memory_space<vmem>>, vector<2x2xf32>,
    return
  }
}

</mosaic_0001>

<bundles_post_ra>
// kernel: clip_forward.4
= control target key start
LH: loop header
LB: loop body
LE: loop exit
PB: predicated region body
PF: predicated region fallthrough
CT: control target
= control target key end

     0   :  { %s590_s24 = smov 0   ;;  %s647_s0 = inlined_call_operand.vmem [shape: f32[32,48], index: 0, kind: input, shape index: {}]   ;;  %s648_s1 = inlined_call_operand.vmem [shape: bf16[48,64], index: 1, kind: input, shape index: {}]   ;;  %s649_s2 = inlined_call_operand.vmem [shape: f32[1,64], index: 2, kind: input, shape index: {}]   ;;  %s650_s3 = inlined_call_operand.vmem [shape: f32[1,64], index: 3, kind: input, shape index: {}]   ;;  %s651_s4 = inlined_call_operand.vmem [shape: f32[16,64], index: 4, kind: input, shape index: {}]   ;;  %s652_s5 = inlined_call_operand.vmem [shape: f32[1,64], index: 5, kind: input, shape index: {}]   ;;  %s653_s6 = inlined_call_operand.vmem [shape: f32[1,64], index: 6, kind: input, shape index: {}]   ;;  %s654_s7 = inlined_call_operand.vmem [shape: f32[48,64], index: 7, kind: output, shape index: {}]  }
   0x1 LB: > { %s491_s25 = sadd.s32 4294967295, %s546_s24   ;;  %p495_p0 = scmp.ge.s32.totalorder %s546_s24, 1  ;;  %s546_s24 = sphi %s590_s24, %s17_s24  }
   0x2   : > { %p238_p1 = scmp.lt.s32.totalorder %s546_s24, 3 }
   0x4   : > { %p239_p2 = pnand %p495_p0, %p238_p1 }
   0x5   : > { %v531_v0 = vld [vmem:[%s648_s1] sm:$0xff] (!%p239_p2)   ;;  %v548_v1 = vmov (!%p239_p2), 0.0   ;;  %v532_v2 = vld [vmem:[%s648_s1 + $0x8] sm:$0xff] (!%p239_p2)   ;;  %vm549_vm0 = vmmov (!%p239_p2), 0   ;;  %s496_s30 = sshll.u32 (!%p239_p2), %s491_s25, 1  ;;  %v533_v3 = vld [vmem:[%s648_s1 + $0x10] sm:$0xff] (!%p239_p2)  }
   0x6   : > { %242 = sbr.rel (%p239_p2) target bundleno = 555 (0x22b), region = 48  ;;  %511 = vmatprep.subr.bf16.mxu0 (!%p239_p2), %v548_v1  ;;  %517 = vmatprep.mubr.msk.bf16.mxu0 (!%p239_p2), %vm549_vm0, %v548_v1  ;;  %p271_p3 = scmp.lt.s32.totalorder (!%p239_p2), %s496_s30, 3  ;;  %vm315_vm1 = vcmask (!%p239_p2), 392192   ;;  %v295_v7 = vld [vmem:[%s651_s4] sm:$0xff] (!%p239_p2)  ;;  %v296_v11 = vld [vmem:[%s651_s4 + $0x8] sm:$0xff] (!%p239_p2)  ;;  %vm362_vm2 = vcmask (!%p239_p2), 1040384  }
   0x7   : > { %512 = vmatpush3.bf16.msra.mxu0 (!%p239_p2), %v531_v0  ;;  %v292_v8 = vld [vmem:[%s649_s2] sm:$0x1] (!%p239_p2)  ;;  %vm373_vm3 = vcmask (!%p239_p2), 523264   ;;  %s276_s22 = smul.u32 (!%p239_p2), 3, %s491_s25 }
   0x8   : > { %513 = vmatprep.subr.bf16.mxu0 (!%p239_p2), %v548_v1  ;;  %v293_v9 = vld [vmem:[%s650_s3] sm:$0x1] (!%p239_p2) }
   0x9   : > { %v294_v14 = vadd.f32 (!%p239_p2), %v293_v9, %v292_v8  ;;  %p277_p4 = scmp.lt.s32.totalorder (!%p239_p2), %s276_s22, 5  ;;  %v503_v51 = vld [vmem:[%s652_s5] ss:$0 sm:$0xff] (!%p239_p2) }
   0xa   : > { %v504_v53 = vld [vmem:[%s653_s6] ss:$0 sm:$0xff] (!%p239_p2) }
   0xb   : > { %514 = vmatpush3.bf16.msra.mxu0 (!%p239_p2), %v532_v2 }
   0xc   : > { %515 = vmatprep.subr.bf16.mxu0 (!%p239_p2), %v548_v1 }
   0xd   : > { %s656_s30 = smov (!%p271_p3, %s496_s30), 3  ;;  %s658_s22 = smov (!%p277_p4, %s276_s22), 5 }
   0xe   : > { %s497_s10 = sshll.u32 %s656_s30, 3  ;;  %s498_s27 = sshll.u32 %s658_s22, 3 }
   0xf   : > { %s274_s13 = scalar_lea.vmem %s647_s0, %s497_s10  ;;  %516 = vmatpush3.bf16.msra.mxu0 %v533_v3  ;;  %s280_s8 = scalar_lea.vmem %s654_s7, %s498_s27 }
  0x10   : > { %v283_v4 = vld [vmem:[%s274_s13] sm:$0xff]  ;;  %v284_v5 = vld [vmem:[%s274_s13 + $0x8] sm:$0xff] }
  0x11   : > { %v285_v6 = vpack.c.bf16 %v284_v5, %v283_v4 }
  0x13   : > { %518 = vmatmul.mubr.msk.bf16.vlgmr.msra.gmra.mrb[0].mxu0 %vm315_vm1, %v285_v6 }
  0xe6   : > { %v353_v10 = vpop.f32.mrb[0].mxu0 }
  0xe7   : > { %v354_v12 = vadd.f32 %v353_v10, %v295_v7  ;;  %v519_v13 = vpop.f32.mrb[1].mxu0 }
  0xe8   : > { %v356_v15 = vpop.f32.mrb[2].mxu0 }
  0xe9   : > { %v363_v16 = vrot.slane %v354_v12, 7  ;;  %v357_v17 = vadd.f32 %v356_v15, %v296_v11  ;;  %v520_v18 = vpop.f32.mrb[3].mxu0 }
  0xeb   : > { %v364_v19 = vrot.slane %v357_v17, 7  ;;  %v369_v20 = vsel %vm362_vm2, %v294_v14, %v363_v16 }
  0xec   : > { %v374_v21 = vsel %vm373_vm3, %v369_v20, 0.0 }
  0xed   : > { %375 = vadd.xlane.f32.xlu0 %v374_v21  ;;  %v370_v22 = vsel %vm362_vm2, %v364_v19, 0.0  ;;  %v365_v23 = vsel %vm362_vm2, %v363_v16, %v364_v19 }
  0xee   : > { %v380_v24 = vsel %vm373_vm3, %v370_v22, 0.0  ;;  %v377_v25 = vsel %vm373_vm3, %v365_v23, 0.0 }
  0xef   : > { %381 = vadd.xlane.f32.xlu1 %v380_v24 }
  0xf1   : > { %378 = vadd.xlane.f32.xlu0 %v377_v25 }
 0x17a   : > { %v376_v26 = vpop.xlane.xlu0 %375 }
 0x17b   : > { %v384_v27 = vmul.f32 0.015625, %v376_v26 }
 0x17c   : > { %v382_v28 = vpop.xlane.xlu1 %381 }
 0x17d   : > { %v387_v29 = vsub.f32 %v369_v20, %v384_v27  ;;  %v386_v30 = vmul.f32 0.015625, %v382_v28 }
 0x17e   : > { %v379_v31 = vpop.xlane.xlu0 %378 }
 0x17f   : > { %v389_v32 = vsub.f32 %v370_v22, %v386_v30  ;;  %v385_v33 = vmul.f32 0.015625, %v379_v31  ;;  %v390_v34 = vmul.f32 %v387_v29, %v387_v29 }
 0x181   : > { %v388_v35 = vsub.f32 %v365_v23, %v385_v33  ;;  %v393_v36 = vsel %vm373_vm3, %v390_v34, 0.0  ;;  %v392_v37 = vmul.f32 %v389_v32, %v389_v32 }
 0x182   : > { %394 = vadd.xlane.f32.xlu1 %v393_v36 }
 0x183   : > { %v391_v38 = vmul.f32 %v388_v35, %v388_v35  ;;  %v399_v39 = vsel %vm373_vm3, %v392_v37, 0.0 }
 0x185   : > { %v396_v40 = vsel %vm373_vm3, %v391_v38, 0.0 }
 0x186   : > { %400 = vadd.xlane.f32.xlu1 %v399_v39  ;;  %397 = vadd.xlane.f32.xlu0 %v396_v40 }
 0x20f   : > { %v395_v41 = vpop.xlane.xlu1 %394 }
 0x210   : > { %v402_v42 = vmul.f32 0.015625, %v395_v41 }
 0x212   : > { %v405_v43 = vadd.f32 1e-05, %v402_v42 }
 0x213   : > { %v401_v44 = vpop.xlane.xlu1 %400  ;;  %v398_v45 = vpop.xlane.xlu0 %397 }
 0x214   : > { %534 = vrsqrt.f32 %v405_v43  ;;  %v404_v46 = vmul.f32 0.015625, %v401_v44  ;;  %v403_v47 = vmul.f32 0.015625, %v398_v45 }
 0x216   : > { %v407_v48 = vadd.f32 1e-05, %v404_v46  ;;  %v406_v49 = vadd.f32 1e-05, %v403_v47 }
 0x218   : > { %536 = vrsqrt.f32 %v407_v48 }
 0x219   : > { %538 = vrsqrt.f32 %v406_v49 }
 0x21e   : > { %v535_v50 = vpop.eup %534 }
 0x21f   : > { %v411_v52 = vmul.f32 %v535_v50, %v387_v29 }
 0x221   : > { %v420_v54 = vmul.f32 %v503_v51, %v411_v52 }
 0x222   : > { %v537_v55 = vpop.eup %536 }
 0x223   : > { %v539_v56 = vpop.eup %538  ;;  %v429_v57 = vadd.f32 %v504_v53, %v420_v54  ;;  %v413_v58 = vmul.f32 %v537_v55, %v389_v32 }
 0x224   : > { %v412_v59 = vmul.f32 %v539_v56, %v388_v35 }
 0x225   : > { %432 = vst.msk [vmem:[%s280_s8] sm:$0xff] %vm373_vm3, %v429_v57  ;;  %v422_v60 = vmul.f32 %v503_v51, %v413_v58 }
 0x226   : > { %v421_v61 = vmul.f32 %v503_v51, %v412_v59 }
 0x227   : > { %v431_v62 = vadd.f32 %v504_v53, %v422_v60 }
 0x228   : > { %v430_v63 = vadd.f32 %v504_v53, %v421_v61 }
 0x229   : > { %434 = vst.msk [vmem:[%s280_s8 + $0x10] sm:$0xff] %vm373_vm3, %v431_v62 }
 0x22a   : > { %433 = vst.msk [vmem:[%s280_s8 + $0x8] sm:$0xff] %vm373_vm3, %v430_v63 }
 0x22b PF: > { %s17_s24 = sadd.s32 1, %s546_s24  }
 0x22c   : > { %p14_p5 = scmp.ge.s32.totalorder %s17_s24, 4  }
 0x22e   :  { %16 = sbr.rel (!%p14_p5) target bundleno = 1 (0x1), region = 78 }

// kernel: clip_forward.5
= control target key start
LH: loop header
LB: loop body
LE: loop exit
PB: predicated region body
PF: predicated region fallthrough
CT: control target
= control target key end

     0   :  { %s2167_s29 = smov 0   ;;  %s2169_s30 = smov 0   ;;  %s2444_s0 = inlined_call_operand.vmem [shape: f32[48,64], index: 0, kind: input, shape index: {}]   ;;  %s2445_s1 = inlined_call_operand.vmem [shape: f32[1,24], index: 1, kind: input, shape index: {}]   ;;  %s2446_s2 = inlined_call_operand.vmem [shape: f32[2,1,64], index: 2, kind: input, shape index: {}]   ;;  %s2447_s3 = inlined_call_operand.vmem [shape: f32[2,1,64], index: 3, kind: input, shape index: {}]   ;;  %s2448_s4 = inlined_call_operand.vmem [shape: bf16[2,64,192], index: 4, kind: input, shape index: {}]   ;;  %s2449_s5 = inlined_call_operand.vmem [shape: f32[2,1,192], index: 5, kind: input, shape index: {}]   ;;  %s2450_s6 = inlined_call_operand.vmem [shape: bf16[2,64,64], index: 6, kind: input, shape index: {}]   ;;  %s2451_s7 = inlined_call_operand.vmem [shape: f32[2,1,64], index: 7, kind: input, shape index: {}]   ;;  %s2452_s8 = inlined_call_operand.vmem [shape: f32[2,1,64], index: 8, kind: input, shape index: {}]   ;;  %s2453_s9 = inlined_call_operand.vmem [shape: f32[2,1,64], index: 9, kind: input, shape index: {}]   ;;  %s2454_s10 = inlined_call_operand.vmem [shape: bf16[2,64,256], index: 10, kind: input, shape index: {}]   ;;  %s2455_s11 = inlined_call_operand.vmem [shape: f32[2,1,256], index: 11, kind: input, shape index: {}]   ;;  %s2456_s12 = inlined_call_operand.vmem [shape: bf16[2,256,64], index: 12, kind: input, shape index: {}]   ;;  %s2457_s13 = inlined_call_operand.vmem [shape: f32[2,1,64], index: 13, kind: input, shape index: {}]   ;;  %s2458_s14 = inlined_call_operand.vmem [shape: f32[48,64], index: 14, kind: output, shape index: {}]  }
   0x1   :  { %2464 = sst [smem:[#allocation10_spill]] %s2444_s0  ;;  %s2171_s15 = smov 0  }
   0x2   :  { %2465 = sst [smem:[#allocation11_spill]] %s2445_s1  ;;  %s2173_s16 = smov 0  }
   0x3   :  { %2466 = sst [smem:[#allocation12_spill]] %s2446_s2  ;;  %s2175_s17 = smov 0  }
   0x4   :  { %2467 = sst [smem:[#allocation13_spill]] %s2447_s3 }
   0x5   :  { %2468 = sst [smem:[#allocation14_spill]] %s2448_s4 }
   0x6   :  { %2469 = sst [smem:[#allocation15_spill]] %s2449_s5 }
   0x7 LB: > { %2470 = sst [smem:[#allocation3_spill]] %s2072_s29  ;;  %s33_s18 = sadd.s32 1, %s2080_s15  ;;  %s2088_s17 = sphi %s2175_s17, %s24_s17   ;;  %s2084_s16 = sphi %s2173_s16, %s2497_s16   ;;  %s2080_s15 = sphi %s2171_s15, %s2496_s15   ;;  %s2076_s30 = sphi %s2169_s30, %s2495_s30   ;;  %s2072_s29 = sphi %s2167_s29, %s2494_s29  }
   0x8   : > { %2471 = sst [smem:[#allocation4_spill]] %s2080_s15  ;;  %s36_s19 = sadd.s32 1, %s2084_s16 }
   0x9   : > { %2472 = sst [smem:[#allocation5_spill]] %s2084_s16  ;;  %p34_p0 = scmp.ge.s32.totalorder %s33_s18, 2 }
   0xa   : > { %2473 = sst [smem:[#allocation6_spill]] %s2088_s17  ;;  %p1769_p1 = scmp.ge.s32.totalorder %s2088_s17, 1 }
   0xb   : > { %p531_p2 = scmp.lt.s32.totalorder %s2088_s17, 5  ;;  %s2499_s18 = smov (%p34_p0, %s33_s18), 0 }
   0xc   : > { %2474 = sst [smem:[#allocation7_spill]] %s2499_s18  ;;  %s2501_s19 = smov (!%p34_p0, %s36_s19), %s2084_s16 }
   0xd   : > { %p532_p3 = pnand %p1769_p1, %p531_p2  ;;  %p38_p4 = scmp.ge.s32.totalorder %s2501_s19, 2 }
   0xf   : > { %s2503_s19 = smov (%p38_p4, %s2501_s19), 0  ;;  %535 = sbr.rel (%p532_p3) target bundleno = 2482 (0x9b2), region = 76 }
  0x10   : > { %2475 = sst [smem:[#allocation8_spill]] %s2503_s19 }
  0x16   : > { %s623_s20 = smul.u32 3, %s2076_s30  ;;  %p629_p5 = scmp.lt.s32.totalorder %s2072_s29, 1 }
  0x17   : > { %s2478_s0 = sld [smem:[#allocation10_spill]]  ;;  %s2479_s4 = sld [smem:[#allocation14_spill]] }
  0x18   : > { %p624_p6 = scmp.lt.s32.totalorder %s623_s20, 5  ;;  %s2481_s5 = sld [smem:[#allocation15_spill]] }
  0x19   : > { %s2201_s21 = scalar_select %p629_p5, %s2072_s29, 1 }
  0x1a   : > { %s2505_s20 = smov (!%p624_p6, %s623_s20), 5  ;;  %s2482_s24 = sld [smem:[#allocation3_spill]] }
  0x1b   : > { %s1770_s28 = sshll.u32 %s2505_s20, 3  ;;  %s1839_s30 = sshll.u32 %s2201_s21, 6 }
  0x1c   : > { %s1773_s29 = sshll.u32 %s2201_s21, 1  ;;  %s1840_s22 = sshll.u32 %s2201_s21, 5 }
  0x1d   : > { %s627_s16 = scalar_lea.vmem %s2478_s0, %s1770_s28  ;;  %s2218_s1 = scalar_lea.vmem %s2479_s4, %s1839_s30 }
  0x1e   : > { %2480 = sst [smem:[#allocation9_spill]] %s2218_s1  ;;  %s2225_s2 = scalar_lea.vmem %s2481_s5, %s1773_s29 }
  0x1f   : > { %s2230_s20 = scalar_lea.vmem %s2450_s6, %s1840_s22  ;;  %s2247_s5 = scalar_lea.vmem %s2454_s10, %s1839_s30 }
  0x20   : > { %s2252_s26 = scalar_lea.vmem %s2455_s11, %s1773_s29  ;;  %s1842_s27 = sshll.u32 %s2201_s21, 7 }
  0x21   : > { %s2258_s0 = scalar_lea.vmem %s2456_s12, %s1842_s27  ;;  %s674_s3 = scalar_lea.vmem %s2457_s13, %s2201_s21 }
  0x22   : > { %s2267_s30 = scalar_lea.vmem %s2458_s14, %s1770_s28  ;;  %p1782_p7 = scmp.ne.s32.totalorder %s2482_s24, 0 }
  0x23   : > { %v686_v0 = vld [vmem:[%s627_s16] sm:$0xff] (!%p1782_p7)  ;;  %vm689_vm0 = vcmask (!%p1782_p7), 523264   ;;  %v687_v1 = vld [vmem:[%s627_s16 + $0x8] sm:$0xff] (!%p1782_p7)  ;;  %v688_v2 = vld [vmem:[%s627_s16 + $0x10] sm:$0xff] (!%p1782_p7) }
  0x24   : > { %685 = sbr.rel (%p1782_p7) target bundleno = 43 (0x2b), region = 80  ;;  %690 = vst.msk [vmem:[#allocation2] sm:$0xff] (!%p1782_p7), %vm689_vm0, %v686_v0  ;;  %691 = vst.msk [vmem:[#allocation2 + $0x8] sm:$0xff] (!%p1782_p7), %vm689_vm0, %v687_v1 }
  0x25   : > { %692 = vst.msk [vmem:[#allocation2 + $0x10] sm:$0xff] (!%p1782_p7), %vm689_vm0, %v688_v2 }
  0x2b PF: > { %v2270_v3 = vld [vmem:[#allocation2] sm:$0xff]  ;;  %vm698_vm1 = vcmask 523264   ;;  %v2274_v5 = vld [vmem:[#allocation2 + $0x8] sm:$0xff]  ;;  %s2483_s1 = sld [smem:[#allocation9_spill]]  ;;  %v2090_v32 = vmov 0   ;;  %s2484_s28 = sld [smem:[#allocation12_spill]]  ;;  %v769_v58 = vlaneseq }
  0x2c   : > { %v2272_v4 = vld [vmem:[#allocation2 + $0x10] sm:$0xff]  ;;  %v699_v6 = vsel %vm698_vm1, %v2270_v3, 0.0  ;;  %v702_v8 = vsel %vm698_vm1, %v2274_v5, 0.0  ;;  %857 = vmatprep.mubr.bf16.mxu1 %v2090_v32  ;;  %s2486_s25 = sld [smem:[#allocation13_spill]]  ;;  %v767_v61 = vld [vmem:[%s2225_s2] sm:$0x3] }
  0x2d   : > { %v705_v7 = vsel %vm698_vm1, %v2272_v4, 0.0  ;;  %700 = vadd.xlane.f32.xlu0 %v699_v6  ;;  %v2310_v59 = vshrl.u32 %v769_v58, 7  ;;  %s2091_s27 = smov 64   ;;  %vm1001_vm2 = vcmask 1043456   ;;  %s2488_s15 = sld [smem:[#allocation11_spill]]  ;;  %vm959_vm3 = vcmask 195584  }
  0x2e   : > { %706 = vadd.xlane.f32.xlu1 %v705_v7  ;;  %v1971_v58 = vld [vmem:[%s2230_s20 + $0x8] sm:$0xff]  }
  0x2f   : > { %v771_v60 = vsub.s32 0, %v2310_v59  ;;  %v775_v62 = vsub.s32 1, %v2310_v59 }
  0x31   : > { %703 = vadd.xlane.f32.xlu0 %v702_v8  ;;  %v1958_v24 = vld [vmem:[%s2483_s1 + $0x4] ss:$8 sps:$4 sm:$0xff]   ;;  %v1960_v25 = vld [vmem:[%s2483_s1] ss:$8 sps:$4 sm:$0xff]   ;;  %v1961_v26 = vld [vmem:[%s2483_s1 + $0x14] ss:$8 sps:$4 sm:$0xff]   ;;  %s2485_s19 = scalar_lea.vmem %s2484_s28, %s2201_s21  ;;  %v772_v63 = vrot.slane %v767_v61, %v771_v60  ;;  %v776_v1 = vrot.slane %v767_v61, %v775_v62 }
  0x32   : > { %825 = vmatprep.subr.bf16.mxu1 %v1958_v24  ;;  %v1963_v27 = vld [vmem:[%s2483_s1 + $0x10] ss:$8 sps:$4 sm:$0xff]   ;;  %v1964_v28 = vld [vmem:[%s2483_s1 + $0x24] ss:$8 sps:$4 sm:$0xff]   ;;  %v1966_v29 = vld [vmem:[%s2483_s1 + $0x20] ss:$8 sps:$4 sm:$0xff]   ;;  %s2487_s22 = scalar_lea.vmem %s2486_s25, %s2201_s21 }
  0x33   : > { %826 = vmatpush1.bf16.msra.mxu1 %v1960_v25  ;;  %v1967_v30 = vld [vmem:[%s2483_s1 + $0x34] ss:$8 sps:$4 sm:$0xff]   ;;  %v1969_v31 = vld [vmem:[%s2483_s1 + $0x30] ss:$8 sps:$4 sm:$0xff]   ;;  %v1783_v44 = vld [vmem:[%s2485_s19] ss:$0 sm:$0xff]  ;;  %s2489_s1 = scalar_lea.vmem %s2451_s7, %s2201_s21  ;;  %s2491_s19 = scalar_lea.vmem %s2453_s9, %s2201_s21 }
  0x34   : > { %827 = vmatprep.subr.bf16.mxu1 %v1961_v26  ;;  %v1784_v49 = vld [vmem:[%s2487_s22] ss:$0 sm:$0xff]  ;;  %v1972_v61 = vld [vmem:[%s2230_s20 + $0x10] sm:$0xff]  }
  0x37   : > { %828 = vmatpush1.bf16.msra.mxu1 %v1963_v27 }
  0x38   : > { %829 = vmatprep.subr.bf16.mxu1 %v1964_v28 }
  0x3b   : > { %830 = vmatpush1.bf16.msra.mxu1 %v1966_v29  ;;  %v1797_v29 = vld [vmem:[%s2488_s15] ss:$0 sm:$0xff] }
  0x3c   : > { %831 = vmatprep.subr.bf16.mxu1 %v1967_v30 }
  0x3f   : > { %832 = vmatpush1.bf16.msra.mxu1 %v1969_v31 }
  0xba   : > { %v701_v9 = vpop.xlane.xlu0 %700 }
  0xbb   : > { %v707_v10 = vpop.xlane.xlu1 %706  ;;  %v709_v11 = vmul.f32 0.015625, %v701_v9 }
  0xbc   : > { %v711_v12 = vmul.f32 0.015625, %v707_v10 }
  0xbd   : > { %v712_v13 = vsub.f32 %v2270_v3, %v709_v11 }
  0xbe   : > { %v714_v14 = vsub.f32 %v2272_v4, %v711_v12  ;;  %v704_v15 = vpop.xlane.xlu0 %703 }
  0xbf   : > { %v710_v16 = vmul.f32 0.015625, %v704_v15  ;;  %v715_v17 = vmul.f32 %v712_v13, %v712_v13 }
  0xc0   : > { %v717_v18 = vmul.f32 %v714_v14, %v714_v14 }
  0xc1   : > { %v713_v19 = vsub.f32 %v2274_v5, %v710_v16  ;;  %v718_v20 = vsel %vm698_vm1, %v715_v17, 0.0 }
  0xc2   : > { %719 = vadd.xlane.f32.xlu1 %v718_v20  ;;  %v724_v21 = vsel %vm698_vm1, %v717_v18, 0.0 }
  0xc3   : > { %v716_v22 = vmul.f32 %v713_v19, %v713_v19 }
  0xc5   : > { %v721_v23 = vsel %vm698_vm1, %v716_v22, 0.0 }
  0xc6   : > { %725 = vadd.xlane.f32.xlu1 %v724_v21  ;;  %722 = vadd.xlane.f32.xlu0 %v721_v23 }
 0x14f   : > { %v720_v33 = vpop.xlane.xlu1 %719 }
 0x150   : > { %v727_v34 = vmul.f32 0.015625, %v720_v33 }
 0x152   : > { %v730_v35 = vadd.f32 1e-05, %v727_v34 }
 0x153   : > { %v726_v36 = vpop.xlane.xlu1 %725  ;;  %v723_v37 = vpop.xlane.xlu0 %722 }
 0x154   : > { %2002 = vrsqrt.f32 %v730_v35  ;;  %v729_v38 = vmul.f32 0.015625, %v726_v36  ;;  %v728_v39 = vmul.f32 0.015625, %v723_v37 }
 0x156   : > { %v732_v40 = vadd.f32 1e-05, %v729_v38  ;;  %v731_v41 = vadd.f32 1e-05, %v728_v39 }
 0x158   : > { %2004 = vrsqrt.f32 %v732_v40 }
 0x159   : > { %2006 = vrsqrt.f32 %v731_v41 }
 0x15e   : > { %v2003_v42 = vpop.eup %2002 }
 0x15f   : > { %v736_v43 = vmul.f32 %v2003_v42, %v712_v13 }
 0x161   : > { %v745_v48 = vmul.f32 %v1783_v44, %v736_v43 }
 0x162   : > { %v2005_v45 = vpop.eup %2004 }
 0x163   : > { %v2007_v46 = vpop.eup %2006  ;;  %v738_v51 = vmul.f32 %v2005_v45, %v714_v14  ;;  %v754_v52 = vadd.f32 %v1784_v49, %v745_v48 }
 0x164   : > { %v737_v47 = vmul.f32 %v2007_v46, %v713_v19 }
 0x165   : > { %v747_v55 = vmul.f32 %v1783_v44, %v738_v51 }
 0x166   : > { %v746_v50 = vmul.f32 %v1783_v44, %v737_v47 }
 0x167   : > { %v756_v56 = vadd.f32 %v1784_v49, %v747_v55 }
 0x168   : > { %v755_v53 = vadd.f32 %v1784_v49, %v746_v50 }
 0x169   : > { %v758_v57 = vpack.c.bf16 %v756_v56, %v756_v56 }
 0x16a   : > { %v757_v54 = vpack.c.bf16 %v755_v53, %v754_v52 }
 0x16c   : > { %1793 = vmatmul.mubr.msk.bf16.vlgmr.msra.gmra.mrb[0].mxu1 %vm698_vm1, %v757_v54 }
 0x16d   : > { %867 = vmatprep.mubr.bf16.mxu1 %v2090_v32 }
 0x174   : > { %1794 = vmatmul.mubr.msk.bf16.gmra.mrb[4].mxu1 %vm698_vm1, %v758_v57  ;;  %v1970_v57 = vld [vmem:[%s2230_s20] sm:$0xff]  }
 0x175   : > { %1901 = vmatprep.subr.bf16.mxu0 %v1970_v57 }
 0x176   : > { %1902 = vmatpush3.bf16.msra.mxu0 %v1970_v57 }
 0x177   : > { %1903 = vmatprep.subr.bf16.mxu0 %v1971_v58 }
 0x17a   : > { %1904 = vmatpush3.bf16.msra.mxu0 %v1971_v58 }
 0x17b   : > { %1905 = vmatprep.subr.bf16.mxu0 %v1972_v61 }
 0x17e   : > { %1906 = vmatpush3.bf16.msra.mxu0 %v1972_v61 }
 0x23f   : > { %v859_v0 = vpop.f32.mrb[0].mxu1 }
 0x240   : > { %v861_v2 = vpop.f32.mrb[1].mxu1  ;;  %v860_v7 = vadd.f32 %v859_v0, %v772_v63 }
 0x241   : > { %v863_v6 = vpop.f32.mrb[2].mxu1  ;;  %v862_v10 = vadd.f32 %v861_v2, %v776_v1 }
 0x242   : > { %v864_v8 = vadd.f32 %v863_v6, %v772_v63  ;;  %v865_v9 = vpop.f32.mrb[3].mxu1 }
 0x243   : > { %v866_v11 = vadd.f32 %v865_v9, %v776_v1 }
 0x244   : > { %v876_v12 = vpack.c.bf16 %v864_v8, %v860_v7 }
 0x245   : > { %v878_v13 = vpack.c.bf16 %v866_v11, %v862_v10 }
 0x246   : > { %882 = vrot.lane.b32.xlu0 %v876_v12, %s2091_s27  ;;  %1889 = vmatprep.mubr.msk.bf16.mxu1 %vm698_vm1, %v876_v12 }
 0x247   : > { %v869_v14 = vpop.f32.mrb[4].mxu1 }
 0x248   : > { %v870_v15 = vadd.f32 %v869_v14, %v772_v63  ;;  %v871_v16 = vpop.f32.mrb[5].mxu1 }
 0x249   : > { %v873_v17 = vpop.f32.mrb[6].mxu1  ;;  %v872_v24 = vadd.f32 %v871_v16, %v776_v1 }
 0x24a   : > { %v877_v18 = vpack.c.bf16 %v870_v15, %v870_v15  ;;  %v874_v19 = vpop.f32.mrb[7].mxu1 }
 0x24b   : > { %v879_v25 = vpack.c.bf16 %v872_v24, %v872_v24 }
 0x24c   : > { %884 = vrot.lane.b32.xlu1 %v877_v18, %s2091_s27 }
 0x24d   : > { %v1003_v26 = vsel %vm1001_vm2, %v879_v25, 0 }
 0x2b8   : > { %v883_v20 = vpop.permute.xlu0 %882 }
 0x2b9   : > { %v893_v21 = vsel %vm698_vm1, %v883_v20, 0  ;;  %1913 = vmatprep.subr.msk.bf16.mxu1 %vm698_vm1, %v883_v20 }
 0x2ba   : > { %1886 = vmatpush3.bf16.xpose.msra.mxu1 %v893_v21  ;;  %v1806_v21 = vld [vmem:[%s2489_s1] ss:$0 sm:$0xff] }
 0x2be   : > { %v885_v22 = vpop.permute.xlu1 %884 }
 0x2bf   : > { %1914 = vmatprep.subr.msk.bf16.mxu1 %vm698_vm1, %v885_v22  ;;  %v896_v23 = vsel %vm698_vm1, %v885_v22, 0 }
 0x2c2   : > { %1888 = vmatpush3.bf16.xpose.msra.mxu1 %v896_v23 }
 0x2c3   : > { %1893 = vmatprep.subr.bf16.mxu1 %v878_v13 }
 0x2c9   : > { %1890 = vmatmul.mubr.msk.bf16.vlgmr.msra.gmra.mrb[8].mxu1 %vm698_vm1, %v877_v18 }
 0x2ca   : > { %1894 = vmatpush3.bf16.msra.mxu1 %v878_v13  ;;  %v1973_v13 = vld [vmem:[%s2230_s20 + $0x18] sm:$0xff]  }
 0x2cb   : > { %1915 = vmatprep.subr.msk.bf16.mxu1 %vm1001_vm2, %v879_v25  ;;  %1907 = vmatprep.subr.bf16.mxu0 %v1973_v13 }
 0x2cc   : > { %1908 = vmatpush3.bf16.msra.mxu0 %v1973_v13  ;;  %v1808_v13 = vld [vmem:[%s2491_s19] ss:$0 sm:$0xff] }
 0x2ce   : > { %1896 = vmatpush3.bf16.msra.mxu1 %v1003_v26 }
 0x39c   : > { %v1891_v27 = vpop.f32.mrb[8].mxu1 }
 0x39d   : > { %v932_v28 = vpop.f32.mrb[9].mxu1  ;;  %v948_v34 = vmul.f32 0.125, %v1891_v27 }
 0x39e   : > { %v946_v30 = vmul.f32 0.125, %v932_v28  ;;  %v1892_v31 = vpop.f32.mrb[10].mxu1 }
 0x39f   : > { %v935_v33 = vpop.f32.mrb[11].mxu1  ;;  %v958_v40 = vadd.f32 %v1797_v29, %v948_v34 }
 0x3a0   : > { %v947_v35 = vmul.f32 0.125, %v935_v33  ;;  %v956_v36 = vadd.f32 %v1797_v29, %v946_v30 }
 0x3a1   : > { %v966_v41 = vsel %vm959_vm3, %v958_v40, -inf }
 0x3a2   : > { %v960_v37 = vsel %vm959_vm3, %v956_v36, -inf  ;;  %v957_v38 = vadd.f32 %v1797_v29, %v947_v35 }
 0x3a3   : > { %961 = vmax.xlane.f32.xlu1 %v960_v37 }
 0x3a4   : > { %v963_v39 = vsel %vm959_vm3, %v957_v38, -inf }
 0x3a5   : > { %964 = vmax.xlane.f32.xlu0 %v963_v39 }
 0x3a9   : > { %967 = vmax.xlane.f32.xlu0 %v966_v41 }
 0x430   : > { %v962_v42 = vpop.xlane.xlu1 %961 }
 0x431   : > { %v969_v43 = vsub.f32 %v956_v36, %v962_v42 }
 0x432   : > { %v965_v44 = vpop.xlane.xlu0 %964 }
 0x433   : > { %v972_v45 = vmul.f32 1.442695, %v969_v43  ;;  %v970_v46 = vsub.f32 %v957_v38, %v965_v44 }
 0x435   : > { %2008 = vpow2.f32 %v972_v45  ;;  %v974_v47 = vmul.f32 1.442695, %v970_v46 }
 0x436   : > { %v968_v48 = vpop.xlane.xlu0 %967 }
 0x437   : > { %2010 = vpow2.f32 %v974_v47  ;;  %v971_v49 = vsub.f32 %v958_v40, %v968_v48  ;;  %v1976_v47 = vld [vmem:[%s2247_s5 + $0x4] ss:$8 sps:$4 sm:$0xff]   ;;  %v1974_v48 = vld [vmem:[%s2247_s5] ss:$8 sps:$4 sm:$0xff]  }
 0x438   : > { %1281 = vmatprep.subr.bf16.mxu1 %v1976_v47 }
 0x439   : > { %v976_v50 = vmul.f32 1.442695, %v971_v49  ;;  %v1979_v49 = vld [vmem:[%s2247_s5 + $0x14] ss:$8 sps:$4 sm:$0xff]  }
 0x43b   : > { %2012 = vpow2.f32 %v976_v50  ;;  %v1977_v50 = vld [vmem:[%s2247_s5 + $0x10] ss:$8 sps:$4 sm:$0xff]  }
 0x43f   : > { %v2009_v51 = vpop.eup %2008 }
 0x440   : > { %v978_v52 = vsel %vm959_vm3, %v2009_v51, 0.0 }
 0x441   : > { %v2011_v53 = vpop.eup %2010  ;;  %979 = vadd.xlane.f32.xlu1 %v978_v52  ;;  %v1980_v52 = vld [vmem:[%s2247_s5 + $0x20] ss:$8 sps:$4 sm:$0xff]  }
 0x442   : > { %v981_v54 = vsel %vm959_vm3, %v2011_v53, 0.0 }
 0x443   : > { %982 = vadd.xlane.f32.xlu0 %v981_v54  ;;  %v1985_v54 = vld [vmem:[%s2247_s5 + $0x34] ss:$8 sps:$4 sm:$0xff]  }
 0x445   : > { %v2013_v55 = vpop.eup %2012 }
 0x446   : > { %v984_v56 = vsel %vm959_vm3, %v2013_v55, 0.0 }
 0x447   : > { %985 = vadd.xlane.f32.xlu1 %v984_v56 }
 0x4ce   : > { %v980_v63 = vpop.xlane.xlu1 %979 }
 0x4cf   : > { %2014 = vrcp.f32 %v980_v63 }
 0x4d0   : > { %v983_v0 = vpop.xlane.xlu0 %982 }
 0x4d1   : > { %2016 = vrcp.f32 %v983_v0 }
 0x4d4   : > { %v986_v1 = vpop.xlane.xlu1 %985 }
 0x4d5   : > { %2018 = vrcp.f32 %v986_v1 }
 0x4d9   : > { %v2015_v2 = vpop.eup %2014 }
 0x4da   : > { %v990_v7 = vmul.f32 %v2015_v2, %v2009_v51  ;;  %v1982_v51 = vld [vmem:[%s2247_s5 + $0x24] ss:$8 sps:$4 sm:$0xff]  }
 0x4db   : > { %v2017_v6 = vpop.eup %2016 }
 0x4dc   : > { %v991_v8 = vmul.f32 %v2017_v6, %v2011_v53  ;;  %v1983_v53 = vld [vmem:[%s2247_s5 + $0x30] ss:$8 sps:$4 sm:$0xff]   ;;  %s2490_s5 = scalar_lea.vmem %s2452_s8, %s2201_s21  ;;  %s2492_s21 = sld [smem:[#allocation3_spill]] }
 0x4de   : > { %v993_v9 = vpack.c.bf16 %v991_v8, %v990_v7  ;;  %v1807_v7 = vld [vmem:[%s2490_s5] ss:$0 sm:$0xff] }
 0x4df   : > { %v2019_v10 = vpop.eup %2018 }
 0x4e0   : > { %v992_v11 = vmul.f32 %v2019_v10, %v2013_v55  ;;  %1897 = vmatprep.mubr.msk.bf16.mxu1 %vm959_vm3, %v993_v9 }
 0x4e2   : > { %v994_v12 = vpack.c.bf16 %v992_v11, %v992_v11  ;;  %p1836_p8 = scmp.ne.s32.totalorder %s2492_s21, 1 }
 0x4e4   : > { %1898 = vmatmul.mubr.msk.bf16.vlgmr.msra.gmra.mrb[12].mxu1 %vm959_vm3, %v994_v12 }
 0x4e5   : > { %1313 = vmatprep.mubr.bf16.mxu1 %v2090_v32  ;;  %1282 = vmatpush1.bf16.msra.mxu1 %v1974_v48 }
 0x4e6   : > { %1283 = vmatprep.subr.bf16.mxu1 %v1979_v49 }
 0x4e9   : > { %1284 = vmatpush1.bf16.msra.mxu1 %v1977_v50 }
 0x4ea   : > { %1285 = vmatprep.subr.bf16.mxu1 %v1982_v51 }
 0x4ed   : > { %1286 = vmatpush1.bf16.msra.mxu1 %v1980_v52 }
 0x4ee   : > { %1287 = vmatprep.subr.bf16.mxu1 %v1985_v54 }
 0x4f1   : > { %1288 = vmatpush1.bf16.msra.mxu1 %v1983_v53 }
 0x5b7   : > { %v1899_v14 = vpop.f32.mrb[12].mxu1 }
 0x5b8   : > { %v1039_v15 = vpop.f32.mrb[13].mxu1  ;;  %v1054_v19 = vpack.c.bf16 %v1899_v14, %v1899_v14 }
 0x5b9   : > { %v1900_v16 = vpop.f32.mrb[14].mxu1 }
 0x5ba   : > { %v1042_v17 = vpop.f32.mrb[15].mxu1 }
 0x5bb   : > { %v1053_v18 = vpack.c.bf16 %v1042_v17, %v1039_v15 }
 0x5bd   : > { %1909 = vmatprep.mubr.msk.bf16.mxu0 %vm698_vm1, %v1053_v18 }
 0x5be   : > { %1910 = vmatmul.mubr.msk.bf16.vlgmr.msra.gmra.mrb[0].mxu0 %vm698_vm1, %v1054_v19 }
 0x691   : > { %v1911_v20 = vpop.f32.mrb[0].mxu0 }
 0x692   : > { %v1127_v22 = vpop.f32.mrb[1].mxu0  ;;  %v1143_v23 = vadd.f32 %v1911_v20, %v2272_v4 }
 0x693   : > { %v1141_v24 = vadd.f32 %v1127_v22, %v2270_v3  ;;  %v1912_v25 = vpop.f32.mrb[2].mxu0  ;;  %v1986_v22 = vld [vmem:[%s2258_s0 + $0x40] sm:$0xff]  }
 0x694   : > { %v1130_v26 = vpop.f32.mrb[3].mxu0  ;;  %v2353_v29 = vadd.f32 %v1806_v21, %v1143_v23  ;;  %v1987_v23 = vld [vmem:[%s2258_s0] sm:$0xff]   ;;  %1857 = vmatprep.subr.bf16.mxu0 %v1986_v22  ;;  %v1989_v25 = vld [vmem:[%s2258_s0 + $0x8] sm:$0xff]  }
 0x695   : > { %v2350_v27 = vadd.f32 %v1806_v21, %v1141_v24  ;;  %v1142_v28 = vadd.f32 %v1130_v26, %v2274_v5  ;;  %1858 = vmatpush3.bf16.msra.mxu0 %v1987_v23  ;;  %v1988_v24 = vld [vmem:[%s2258_s0 + $0x48] sm:$0xff]   ;;  %v1990_v26 = vld [vmem:[%s2258_s0 + $0x50] sm:$0xff]  }
 0x696   : > { %v1162_v3 = vsel %vm698_vm1, %v2353_v29, 0.0  ;;  %1859 = vmatprep.subr.bf16.mxu0 %v1988_v24 }
 0x697   : > { %v2355_v30 = vadd.f32 %v1806_v21, %v1142_v28  ;;  %v1156_v31 = vsel %vm698_vm1, %v2350_v27, 0.0  ;;  %v1992_v28 = vld [vmem:[%s2258_s0 + $0x58] sm:$0xff]  }
 0x698   : > { %1157 = vadd.xlane.f32.xlu0 %v1156_v31  ;;  %v1993_v31 = vld [vmem:[%s2258_s0 + $0x18] sm:$0xff]  }
 0x699   : > { %v1159_v33 = vsel %vm698_vm1, %v2355_v30, 0.0  ;;  %1860 = vmatpush3.bf16.msra.mxu0 %v1989_v25 }
 0x69a   : > { %1160 = vadd.xlane.f32.xlu1 %v1159_v33  ;;  %1861 = vmatprep.subr.bf16.mxu0 %v1990_v26  ;;  %v1994_v33 = vld [vmem:[%s2258_s0 + $0x60] sm:$0xff]  }
 0x69c   : > { %1163 = vadd.xlane.f32.xlu0 %v1162_v3  ;;  %v1995_v3 = vld [vmem:[%s2258_s0 + $0x20] sm:$0xff]  }
 0x725   : > { %v1158_v4 = vpop.xlane.xlu0 %1157 }
 0x726   : > { %v1165_v34 = vmul.f32 0.015625, %v1158_v4  ;;  %v1996_v4 = vld [vmem:[%s2258_s0 + $0x68] sm:$0xff]  }
 0x727   : > { %v1161_v35 = vpop.xlane.xlu1 %1160 }
 0x728   : > { %v1168_v5 = vsub.f32 %v2350_v27, %v1165_v34  ;;  %v1166_v36 = vmul.f32 0.015625, %v1161_v35  ;;  %v1997_v34 = vld [vmem:[%s2258_s0 + $0x28] sm:$0xff]   ;;  %v1998_v35 = vld [vmem:[%s2258_s0 + $0x70] sm:$0xff]  }
 0x729   : > { %v1164_v37 = vpop.xlane.xlu0 %1163 }
 0x72a   : > { %v1169_v38 = vsub.f32 %v2355_v30, %v1166_v36  ;;  %v1167_v39 = vmul.f32 0.015625, %v1164_v37  ;;  %v1171_v40 = vmul.f32 %v1168_v5, %v1168_v5  ;;  %v2000_v36 = vld [vmem:[%s2258_s0 + $0x78] sm:$0xff]  }
 0x72b   : > { %v2001_v37 = vld [vmem:[%s2258_s0 + $0x38] sm:$0xff]  }
 0x72c   : > { %v1170_v41 = vsub.f32 %v2353_v29, %v1167_v39  ;;  %v1174_v42 = vsel %vm698_vm1, %v1171_v40, 0.0  ;;  %v1172_v43 = vmul.f32 %v1169_v38, %v1169_v38 }
 0x72d   : > { %1175 = vadd.xlane.f32.xlu1 %v1174_v42 }
 0x72e   : > { %v1177_v44 = vsel %vm698_vm1, %v1172_v43, 0.0  ;;  %v1173_v45 = vmul.f32 %v1170_v41, %v1170_v41 }
 0x72f   : > { %1178 = vadd.xlane.f32.xlu0 %v1177_v44 }
 0x730   : > { %v1180_v46 = vsel %vm698_vm1, %v1173_v45, 0.0 }
 0x731   : > { %1181 = vadd.xlane.f32.xlu1 %v1180_v46 }
 0x7ba   : > { %v1176_v55 = vpop.xlane.xlu1 %1175 }
 0x7bb   : > { %v1183_v56 = vmul.f32 0.015625, %v1176_v55 }
 0x7bc   : > { %v1179_v57 = vpop.xlane.xlu0 %1178 }
 0x7bd   : > { %v1186_v58 = vadd.f32 1e-05, %v1183_v56  ;;  %v1184_v61 = vmul.f32 0.015625, %v1179_v57 }
 0x7be   : > { %v1182_v63 = vpop.xlane.xlu1 %1181 }
 0x7bf   : > { %2020 = vrsqrt.f32 %v1186_v58  ;;  %v1187_v0 = vadd.f32 1e-05, %v1184_v61  ;;  %v1185_v1 = vmul.f32 0.015625, %v1182_v63 }
 0x7c1   : > { %2022 = vrsqrt.f32 %v1187_v0  ;;  %v1188_v2 = vadd.f32 1e-05, %v1185_v1 }
 0x7c3   : > { %2024 = vrsqrt.f32 %v1188_v2 }
 0x7c9   : > { %v2021_v6 = vpop.eup %2020 }
 0x7ca   : > { %v1192_v8 = vmul.f32 %v2021_v6, %v1168_v5  ;;  %v1999_v5 = vld [vmem:[%s2258_s0 + $0x30] sm:$0xff]  }
 0x7cb   : > { %v2023_v9 = vpop.eup %2022 }
 0x7cc   : > { %v1201_v10 = vmul.f32 %v1807_v7, %v1192_v8  ;;  %v1193_v11 = vmul.f32 %v2023_v9, %v1169_v38  ;;  %v1223_v38 = vld [vmem:[%s2252_s26] sm:$0x3] }
 0x7cd   : > { %v2025_v12 = vpop.eup %2024  ;;  %v1228_v39 = vrot.slane %v1223_v38, %v771_v60  ;;  %v1232_v40 = vrot.slane %v1223_v38, %v775_v62  ;;  %v1835_v38 = vld [vmem:[%s674_s3] ss:$0 sm:$0xff] }
 0x7ce   : > { %v1202_v14 = vmul.f32 %v1807_v7, %v1193_v11  ;;  %v1194_v15 = vmul.f32 %v2025_v12, %v1170_v41  ;;  %v1210_v16 = vadd.f32 %v1808_v13, %v1201_v10 }
 0x7d0   : > { %v1211_v17 = vadd.f32 %v1808_v13, %v1202_v14  ;;  %v1203_v19 = vmul.f32 %v1807_v7, %v1194_v15 }
 0x7d2   : > { %v1213_v18 = vpack.c.bf16 %v1211_v17, %v1210_v16  ;;  %v1212_v20 = vadd.f32 %v1808_v13, %v1203_v19 }
 0x7d4   : > { %1817 = vmatmul.mubr.msk.bf16.vlgmr.msra.gmra.mrb[16].mxu1 %vm698_vm1, %v1213_v18  ;;  %v1214_v21 = vpack.c.bf16 %v1212_v20, %v1212_v20 }
 0x7d5   : > { %1323 = vmatprep.mubr.bf16.mxu1 %v2090_v32  ;;  %v1991_v32 = vld [vmem:[%s2258_s0 + $0x10] sm:$0xff]  }
 0x7d6   : > { %1862 = vmatpush3.bf16.msra.mxu0 %v1991_v32 }
 0x7d7   : > { %1863 = vmatprep.subr.bf16.mxu0 %v1992_v28 }
 0x7da   : > { %1864 = vmatpush3.bf16.msra.mxu0 %v1993_v31 }
 0x7db   : > { %1865 = vmatprep.subr.bf16.mxu0 %v1994_v33 }
 0x7dc   : > { %1818 = vmatmul.mubr.msk.bf16.gmra.mrb[20].mxu1 %vm698_vm1, %v1214_v21 }
 0x7de   : > { %1866 = vmatpush3.bf16.msra.mxu0 %v1995_v3 }
 0x7df   : > { %1867 = vmatprep.subr.bf16.mxu0 %v1996_v4 }
 0x7e2   : > { %1868 = vmatpush3.bf16.msra.mxu0 %v1997_v34 }
 0x7e3   : > { %1869 = vmatprep.subr.bf16.mxu0 %v1998_v35 }
 0x7e6   : > { %1870 = vmatpush3.bf16.msra.mxu0 %v1999_v5 }
 0x7e7   : > { %1871 = vmatprep.subr.bf16.mxu0 %v2000_v36 }
 0x7ea   : > { %1872 = vmatpush3.bf16.msra.mxu0 %v2001_v37 }
 0x8a7   : > { %v1315_v41 = vpop.f32.mrb[16].mxu1 }
 0x8a8   : > { %v1316_v42 = vadd.f32 %v1315_v41, %v1228_v39  ;;  %v1317_v43 = vpop.f32.mrb[17].mxu1 }
 0x8a9   : > { %v1318_v44 = vadd.f32 %v1317_v43, %v1232_v40  ;;  %v1319_v45 = vpop.f32.mrb[18].mxu1 }
 0x8aa   : > { %v1332_v46 = vmul.f32 -1.702, %v1316_v42  ;;  %v1320_v47 = vadd.f32 %v1319_v45, %v1228_v39  ;;  %v1321_v48 = vpop.f32.mrb[19].mxu1 }
 0x8ab   : > { %v1333_v49 = vmul.f32 -1.702, %v1318_v44  ;;  %v1322_v50 = vadd.f32 %v1321_v48, %v1232_v40 }
 0x8ac   : > { %v1338_v51 = vmul.f32 1.442695, %v1332_v46  ;;  %v1334_v52 = vmul.f32 -1.702, %v1320_v47 }
 0x8ad   : > { %v1340_v53 = vmul.f32 1.442695, %v1333_v49  ;;  %v1335_v54 = vmul.f32 -1.702, %v1322_v50 }
 0x8ae   : > { %2026 = vpow2.f32 %v1338_v51  ;;  %v1342_v55 = vmul.f32 1.442695, %v1334_v52 }
 0x8af   : > { %2028 = vpow2.f32 %v1340_v53  ;;  %v1344_v60 = vmul.f32 1.442695, %v1335_v54  ;;  %v1325_v59 = vpop.f32.mrb[20].mxu1 }
 0x8b0   : > { %2030 = vpow2.f32 %v1342_v55  ;;  %v1326_v62 = vadd.f32 %v1325_v59, %v1228_v39  ;;  %v1327_v56 = vpop.f32.mrb[21].mxu1 }
 0x8b1   : > { %2032 = vpow2.f32 %v1344_v60  ;;  %v1328_v57 = vadd.f32 %v1327_v56, %v1232_v40  ;;  %v1329_v58 = vpop.f32.mrb[22].mxu1 }
 0x8b2   : > { %v1336_v61 = vmul.f32 -1.702, %v1326_v62  ;;  %v1330_v63 = vpop.f32.mrb[23].mxu1 }
 0x8b3   : > { %v1337_v0 = vmul.f32 -1.702, %v1328_v57 }
 0x8b4   : > { %v1346_v1 = vmul.f32 1.442695, %v1336_v61 }
 0x8b5   : > { %v1348_v2 = vmul.f32 1.442695, %v1337_v0 }
 0x8b6   : > { %2034 = vpow2.f32 %v1346_v1 }
 0x8b7   : > { %2036 = vpow2.f32 %v1348_v2 }
 0x8b8   : > { %v2027_v6 = vpop.eup %2026 }
 0x8b9   : > { %v2029_v7 = vpop.eup %2028  ;;  %v1350_v8 = vadd.f32 1.0, %v2027_v6 }
 0x8ba   : > { %v2031_v9 = vpop.eup %2030  ;;  %v1351_v10 = vadd.f32 1.0, %v2029_v7 }
 0x8bb   : > { %v2033_v11 = vpop.eup %2032  ;;  %2038 = vrcp.f32 %v1350_v8  ;;  %v1352_v12 = vadd.f32 1.0, %v2031_v9 }
 0x8bc   : > { %2040 = vrcp.f32 %v1351_v10  ;;  %v1353_v13 = vadd.f32 1.0, %v2033_v11 }
 0x8bd   : > { %2042 = vrcp.f32 %v1352_v12 }
 0x8be   : > { %2044 = vrcp.f32 %v1353_v13 }
 0x8c0   : > { %v2035_v14 = vpop.eup %2034 }
 0x8c1   : > { %v2037_v15 = vpop.eup %2036  ;;  %v1354_v16 = vadd.f32 1.0, %v2035_v14 }
 0x8c2   : > { %v1355_v17 = vadd.f32 1.0, %v2037_v15 }
 0x8c3   : > { %2046 = vrcp.f32 %v1354_v16 }
 0x8c4   : > { %2048 = vrcp.f32 %v1355_v17 }
 0x8c5   : > { %v2039_v18 = vpop.eup %2038 }
 0x8c6   : > { %v2041_v19 = vpop.eup %2040  ;;  %v1362_v22 = vmul.f32 %v2039_v18, %v1316_v42 }
 0x8c7   : > { %v2043_v20 = vpop.eup %2042  ;;  %v1363_v24 = vmul.f32 %v2041_v19, %v1318_v44 }
 0x8c8   : > { %v2045_v21 = vpop.eup %2044  ;;  %v1364_v23 = vmul.f32 %v2043_v20, %v1320_v47 }
 0x8c9   : > { %v1365_v25 = vmul.f32 %v2045_v21, %v1322_v50 }
 0x8ca   : > { %v1368_v26 = vpack.c.bf16 %v1364_v23, %v1362_v22 }
 0x8cb   : > { %v1369_v32 = vpack.c.bf16 %v1365_v25, %v1363_v24 }
 0x8cd   : > { %v2047_v28 = vpop.eup %2046  ;;  %1532 = vmatprep.mubr.bf16.mxu0 %v1369_v32 }
 0x8ce   : > { %v2049_v31 = vpop.eup %2048  ;;  %1533 = vmatmul.mubr.bf16.vlgmr.msra.gmra.mrb[4].mxu0 %v1368_v26  ;;  %v1366_v3 = vmul.f32 %v2047_v28, %v1326_v62 }
 0x8cf   : > { %v1367_v33 = vmul.f32 %v2049_v31, %v1328_v57 }
 0x8d0   : > { %v1370_v34 = vpack.c.bf16 %v1366_v3, %v1366_v3 }
 0x8d1   : > { %v1371_v4 = vpack.c.bf16 %v1367_v33, %v1367_v33 }
 0x8d3   : > { %1540 = vmatprep.mubr.bf16.mxu0 %v1371_v4 }
 0x8d6   : > { %1541 = vmatmul.mubr.bf16.gmra.mrb[8].mxu0 %v1370_v34 }
 0x9a1   : > { %v1873_v35 = vpop.f32.mrb[4].mxu0 }
 0x9a2   : > { %v1874_v5 = vpop.f32.mrb[5].mxu0 }
 0x9a3   : > { %v1875_v36 = vadd.f32 %v1874_v5, %v1873_v35  ;;  %v1876_v37 = vpop.f32.mrb[6].mxu0 }
 0x9a4   : > { %v1877_v39 = vpop.f32.mrb[7].mxu0 }
 0x9a5   : > { %v1548_v40 = vadd.f32 %v1875_v36, %v2350_v27  ;;  %v1878_v41 = vadd.f32 %v1877_v39, %v1876_v37 }
 0x9a7   : > { %v1558_v42 = vadd.f32 %v1835_v38, %v1548_v40  ;;  %v1549_v43 = vadd.f32 %v1878_v41, %v2355_v30 }
 0x9a9   : > { %1561 = vst.msk [vmem:[#allocation2] sm:$0xff] %vm698_vm1, %v1558_v42  ;;  %v1559_v44 = vadd.f32 %v1835_v38, %v1549_v43  ;;  %v1879_v45 = vpop.f32.mrb[8].mxu0  ;;  %1568 = vst.msk [vmem:[%s2267_s30] sm:$0xff] (!%p1836_p8), %vm698_vm1, %v1558_v42 }
 0x9aa   : > { %v1880_v46 = vpop.f32.mrb[9].mxu0 }
 0x9ab   : > { %1562 = vst.msk [vmem:[#allocation2 + $0x8] sm:$0xff] %vm698_vm1, %v1559_v44  ;;  %v1881_v47 = vadd.f32 %v1880_v46, %v1879_v45  ;;  %v1882_v48 = vpop.f32.mrb[10].mxu0  ;;  %1567 = sbr.rel (%p1836_p8) target bundleno = 2482 (0x9b2), region = 84  ;;  %1569 = vst.msk [vmem:[%s2267_s30 + $0x8] sm:$0xff] (!%p1836_p8), %vm698_vm1, %v1559_v44 }
 0x9ac   : > { %v1883_v49 = vpop.f32.mrb[11].mxu0 }
 0x9ad   : > { %v1550_v50 = vadd.f32 %v1881_v47, %v2353_v29 }
 0x9af   : > { %v1560_v51 = vadd.f32 %v1835_v38, %v1550_v50 }
 0x9b1   : > { %1563 = vst.msk [vmem:[#allocation2 + $0x10] sm:$0xff] %vm698_vm1, %v1560_v51  ;;  %1570 = vst.msk [vmem:[%s2267_s30 + $0x10] sm:$0xff] (!%p1836_p8), %vm698_vm1, %v1560_v51 }
 0x9b2 PF: > { %s2493_s3 = sld [smem:[#allocation6_spill]]  ;;  %s2494_s29 = sld [smem:[#allocation4_spill]] }
 0x9b3   : > { %s2495_s30 = sld [smem:[#allocation5_spill]]  ;;  %s2496_s15 = sld [smem:[#allocation7_spill]] }
 0x9b4   : > { %s2497_s16 = sld [smem:[#allocation8_spill]] }
 0x9b8   : > { %s24_s17 = sadd.s32 1, %s2493_s3  }
 0x9b9   : > { %p21_p9 = scmp.ge.s32.totalorder %s24_s17, 6  }
 0x9bb   :  { %23 = sbr.rel (!%p21_p9) target bundleno = 7 (0x7), region = 150 }

// kernel: clip_forward.7
= control target key start
LH: loop header
LB: loop body
LE: loop exit
PB: predicated region body
PF: predicated region fallthrough
CT: control target
= control target key end

     0   :  { %vm151_vm0 = vcmask 254976   ;;  %vm37_vm1 = vcmask 517120   ;;  %v459_v19 = vmov 0.0|0.0   ;;  %vm460_vm2 = vmmov 0   ;;  %s588_s4 = inlined_call_operand.vmem [shape: f32[2,32], index: 4, kind: input, shape index: {}]   ;;  %s589_s0 = inlined_call_operand.vmem [shape: f32[2,64], index: 0, kind: input, shape index: {}]   ;;  %s590_s3 = inlined_call_operand.vmem [shape: f32[64,32], index: 3, kind: input, shape index: {}]   ;;  %s591_s7 = inlined_call_operand.vmem [shape: f32[32,32], index: 7, kind: input, shape index: {}]   ;;  %s592_s5 = inlined_call_operand.vmem [shape: f32[1,32], index: 5, kind: input, shape index: {}]   ;;  %s593_s6 = inlined_call_operand.vmem [shape: f32[1,32], index: 6, kind: input, shape index: {}]   ;;  %s594_s1 = inlined_call_operand.vmem [shape: f32[1,64], index: 1, kind: input, shape index: {}]   ;;  %s595_s2 = inlined_call_operand.vmem [shape: f32[1,64], index: 2, kind: input, shape index: {}]   ;;  %s596_s8 = inlined_call_operand.<no memory space> [shape: f32[1,1], index: 8, kind: input, shape index: {}]   ;;  %s597_s9 = inlined_call_operand.vmem [shape: f32[2,2], index: 9, kind: output, shape index: {}]  }
   0x1   :  { %v148_v0 = vld [vmem:[%s588_s4] sm:$0x3]  ;;  %v67_v15 = vld [vmem:[%s590_s3 + $0x8] sm:$0xff]  ;;  %v68_v17 = vld [vmem:[%s590_s3 + $0x10] sm:$0xff]  ;;  %426 = vmatprep.subr.bf16.mxu0 %v459_v19  ;;  %438 = vmatprep.subr.bf16.mxu1 %v459_v19  ;;  %v461_v26 = vmov 0.0   ;;  %vm184_vm3 = vcmask 261120   ;;  %v14_v61 = vstv %s596_s8 }
   0x2   :  { %v34_v1 = vld [vmem:[%s589_s0] sm:$0x3]  ;;  %v152_v2 = vsel %vm151_vm0, %v148_v0, 0.0  ;;  %v69_v18 = vld [vmem:[%s590_s3 + $0x18] sm:$0xff]  ;;  %v181_v21 = vld [vmem:[%s591_s7 + $0x8] sm:$0xff]  ;;  %418 = vmatprep.mubr.msk.f32.mxu1 %vm460_vm2, %v461_v26  ;;  %407 = vmatprep.mubr.msk.f32.mxu0 %vm460_vm2, %v461_v26  ;;  %vm74_vm4 = vcmask 523264  }
   0x3   :  { %153 = vadd.xlane.f32.xlu0 %v152_v2  ;;  %v38_v3 = vsel %vm37_vm1, %v34_v1, 0.0  ;;  %v66_v14 = vld [vmem:[%s590_s3] sm:$0xff]  ;;  %v430_v22 = vpack.c.bf16 %v69_v18, %v68_v17  ;;  %v182_v24 = vld [vmem:[%s591_s7 + $0x10] sm:$0xff]  ;;  %v183_v25 = vld [vmem:[%s591_s7 + $0x18] sm:$0xff]  ;;  %v462_v60 = vmov 0   ;;  %vm361_vm5 = vcmask 9216  }
   0x4   :  { %v427_v16 = vpack.c.bf16 %v67_v15, %v66_v14  ;;  %v180_v20 = vld [vmem:[%s591_s7] sm:$0xff]  ;;  %v71_v28 = vld [vmem:[%s590_s3 + $0x28] sm:$0xff]  ;;  %v442_v29 = vpack.c.bf16 %v183_v25, %v182_v24  ;;  %v72_v31 = vld [vmem:[%s590_s3 + $0x30] sm:$0xff]  ;;  %448 = vset.pattern.permute.xlu0 %v462_v60  ;;  %15 = vst [vmem:[#allocation2] sm:$0x1] %v14_v61 }
   0x5   :  { %v439_v23 = vpack.c.bf16 %v181_v21, %v180_v20  ;;  %v70_v27 = vld [vmem:[%s590_s3 + $0x20] sm:$0xff]  ;;  %v73_v32 = vld [vmem:[%s590_s3 + $0x38] sm:$0xff] }
   0x6   :  { %428 = vmatpush3.bf16.msra.mxu0 %v427_v16  ;;  %v433_v30 = vpack.c.bf16 %v71_v28, %v70_v27  ;;  %v436_v33 = vpack.c.bf16 %v73_v32, %v72_v31  ;;  %v370_v41 = vld [vmem:[%s592_s5] ss:$0 sm:$0xff] }
   0x7   :  { %39 = vadd.xlane.f32.xlu0 %v38_v3  ;;  %429 = vmatprep.subr.bf16.mxu0 %v459_v19  ;;  %v371_v43 = vld [vmem:[%s593_s6] ss:$0 sm:$0xff] }
   0x8   :  { %440 = vmatpush3.bf16.msra.mxu1 %v439_v23  ;;  %v367_v46 = vld [vmem:[%s594_s1] ss:$0 sm:$0xff] }
   0x9   :  { %441 = vmatprep.subr.bf16.mxu1 %v459_v19  ;;  %v368_v49 = vld [vmem:[%s595_s2] ss:$0 sm:$0xff] }
   0xa   :  { %431 = vmatpush3.bf16.msra.mxu0 %v430_v22 }
   0xb   :  { %432 = vmatprep.subr.bf16.mxu0 %v459_v19  ;;  %v272_v62 = vld [vmem:[#allocation2] sm:$0x1] }
   0xc   :  { %443 = vmatpush3.bf16.msra.mxu1 %v442_v29  ;;  %v273_v63 = vmul.f32 1.442695, %v272_v62 }
   0xd   :  { %421 = vmatprep.subr.mxu1 %v461_v26 }
   0xe   :  { %434 = vmatpush3.bf16.msra.mxu0 %v433_v30 }
   0xf   :  { %435 = vmatprep.subr.bf16.mxu0 %v459_v19 }
  0x12   :  { %437 = vmatpush3.bf16.msra.mxu0 %v436_v33 }
  0x90   :  { %v154_v4 = vpop.xlane.xlu0 %153 }
  0x91   :  { %v156_v5 = vmul.f32 0.03125, %v154_v4 }
  0x93   :  { %v157_v6 = vsub.f32 %v148_v0, %v156_v5  ;;  %v352_v0 = vlaneseq }
  0x94   :  { %v40_v7 = vpop.xlane.xlu0 %39 }
  0x95   :  { %v42_v8 = vmul.f32 0.015625, %v40_v7  ;;  %v158_v9 = vmul.f32 %v157_v6, %v157_v6 }
  0x97   :  { %v520_v10 = vsub.f32 %v34_v1, %v42_v8  ;;  %v159_v11 = vsel %vm151_vm0, %v158_v9, 0.0  ;;  %v353_v1 = vshrl.u32 %v352_v0, 7 }
  0x98   :  { %160 = vadd.xlane.f32.xlu1 %v159_v11 }
  0x99   :  { %v44_v12 = vmul.f32 %v520_v10, %v520_v10  ;;  %v354_v2 = vsub.s32 0, %v353_v1 }
  0x9b   :  { %v45_v13 = vsel %vm37_vm1, %v44_v12, 0.0 }
  0x9c   :  { %46 = vadd.xlane.f32.xlu1 %v45_v13 }
 0x125   :  { %v161_v34 = vpop.xlane.xlu1 %160 }
 0x126   :  { %v162_v35 = vmul.f32 0.03125, %v161_v34 }
 0x128   :  { %v163_v36 = vadd.f32 1e-05, %v162_v35 }
 0x129   :  { %v47_v37 = vpop.xlane.xlu1 %46 }
 0x12a   :  { %449 = vrsqrt.f32 %v163_v36  ;;  %v48_v38 = vmul.f32 0.015625, %v47_v37 }
 0x12c   :  { %v49_v39 = vadd.f32 1e-05, %v48_v38 }
 0x12e   :  { %451 = vrsqrt.f32 %v49_v39 }
 0x12f   :  { %453 = vpow2.f32 %v273_v63 }
 0x134   :  { %v450_v40 = vpop.eup %449 }
 0x135   :  { %v165_v42 = vmul.f32 %v450_v40, %v157_v6 }
 0x137   :  { %v172_v44 = vmul.f32 %v370_v41, %v165_v42 }
 0x138   :  { %v452_v45 = vpop.eup %451 }
 0x139   :  { %v179_v47 = vadd.f32 %v371_v43, %v172_v44  ;;  %v51_v48 = vmul.f32 %v452_v45, %v520_v10  ;;  %v454_v3 = vpop.eup %453 }
 0x13a   :  { %v355_v4 = vrot.slane %v454_v3, %v354_v2 }
 0x13b   :  { %419 = vmatmul.mubr.msk.f32.vlgmr.msra.gmra.mrb[0].mxu1 %vm184_vm3, %v179_v47  ;;  %v58_v50 = vmul.f32 %v367_v46, %v51_v48 }
 0x13c   :  { %423 = vmatprep.mubr.msk.f32.mxu1 %vm460_vm2, %v461_v26 }
 0x13d   :  { %v65_v51 = vadd.f32 %v368_v49, %v58_v50 }
 0x13f   :  { %408 = vmatmul.mubr.msk.f32.vlgmr.msra.gmra.mrb[0].mxu0 %vm74_vm4, %v65_v51 }
 0x20e   :  { %v254_v52 = vpop.f32.mrb[0].mxu1 }
 0x20f   :  { %v265_v53 = vmul.f32 %v254_v52, %v254_v52  ;;  %v420_v54 = vpop.f32.mrb[1].mxu1 }
 0x211   :  { %v266_v55 = vsel %vm151_vm0, %v265_v53, 0.0 }
 0x212   :  { %267 = vadd.xlane.f32.xlu0 %v266_v55  ;;  %v144_v56 = vpop.f32.mrb[0].mxu0 }
 0x213   :  { %v258_v57 = vmul.f32 %v144_v56, %v144_v56  ;;  %v409_v58 = vpop.f32.mrb[1].mxu0 }
 0x215   :  { %v259_v59 = vsel %vm151_vm0, %v258_v57, 0.0 }
 0x216   :  { %260 = vadd.xlane.f32.xlu1 %v259_v59 }
 0x228   :  { %357 = vperm.xlu0 %448, %v355_v4  }
 0x29f   :  { %v268_v5 = vpop.xlane.xlu0 %267 }
 0x2a0   :  { %v269_v6 = vadd.f32 1e-12, %v268_v5 }
 0x2a2   :  { %455 = vrsqrt.f32 %v269_v6 }
 0x2a3   :  { %v261_v7 = vpop.xlane.xlu1 %260 }
 0x2a4   :  { %v262_v8 = vadd.f32 1e-12, %v261_v7 }
 0x2a6   :  { %457 = vrsqrt.f32 %v262_v8 }
 0x2a7   :  { %v358_v13 = vpop.permute.xlu0 %357 }
 0x2ac   :  { %v456_v9 = vpop.eup %455 }
 0x2ad   :  { %v271_v10 = vmul.f32 %v456_v9, %v254_v52 }
 0x2af   :  { %422 = vmatpush3.xpose.msk.msra.mxu1 %vm184_vm3, %v271_v10 }
 0x2b0   :  { %v458_v11 = vpop.eup %457 }
 0x2b1   :  { %v264_v12 = vmul.f32 %v458_v11, %v144_v56 }
 0x2b3   :  { %424 = vmatmul.mubr.msk.f32.vlgmr.msra.gmra.mrb[2].mxu1 %vm184_vm3, %v264_v12 }
 0x386   :  { %v347_v14 = vpop.f32.mrb[2].mxu1 }
 0x387   :  { %v360_v15 = vmul.f32 %v358_v13, %v347_v14  ;;  %v425_v16 = vpop.f32.mrb[3].mxu1 }
 0x389   :  { %362 = vst.msk [vmem:[%s597_s9] sm:$0x3] %vm361_vm5, %v360_v15 }

// kernel: clip_forward.6
= control target key start
LH: loop header
LB: loop body
LE: loop exit
PB: predicated region body
PF: predicated region fallthrough
CT: control target
= control target key end

     0   :  { %s2732_s29 = smov 0   ;;  %s2734_s30 = smov 0   ;;  %s2999_s0 = inlined_call_operand.vmem [shape: f32[16,32], index: 0, kind: input, shape index: {}]   ;;  %s3000_s1 = inlined_call_operand.vmem [shape: f32[8,8], index: 1, kind: input, shape index: {}]   ;;  %s3001_s2 = inlined_call_operand.vmem [shape: f32[2,1,32], index: 2, kind: input, shape index: {}]   ;;  %s3002_s3 = inlined_call_operand.vmem [shape: f32[2,1,32], index: 3, kind: input, shape index: {}]   ;;  %s3003_s4 = inlined_call_operand.vmem [shape: bf16[2,32,96], index: 4, kind: input, shape index: {}]   ;;  %s3004_s5 = inlined_call_operand.vmem [shape: f32[2,1,96], index: 5, kind: input, shape index: {}]   ;;  %s3005_s6 = inlined_call_operand.vmem [shape: bf16[2,32,32], index: 6, kind: input, shape index: {}]   ;;  %s3006_s7 = inlined_call_operand.vmem [shape: f32[2,1,32], index: 7, kind: input, shape index: {}]   ;;  %s3007_s8 = inlined_call_operand.vmem [shape: f32[2,1,32], index: 8, kind: input, shape index: {}]   ;;  %s3008_s9 = inlined_call_operand.vmem [shape: f32[2,1,32], index: 9, kind: input, shape index: {}]   ;;  %s3009_s10 = inlined_call_operand.vmem [shape: bf16[2,32,128], index: 10, kind: input, shape index: {}]   ;;  %s3010_s11 = inlined_call_operand.vmem [shape: f32[2,1,128], index: 11, kind: input, shape index: {}]   ;;  %s3011_s12 = inlined_call_operand.vmem [shape: bf16[2,128,32], index: 12, kind: input, shape index: {}]   ;;  %s3012_s13 = inlined_call_operand.vmem [shape: f32[2,1,32], index: 13, kind: input, shape index: {}]   ;;  %s3013_s14 = inlined_call_operand.vmem [shape: f32[16,32], index: 14, kind: output, shape index: {}]  }
   0x1   :  { %3018 = sst [smem:[#allocation9_spill]] %s2999_s0  ;;  %s2736_s15 = smov 0  }
   0x2   :  { %3019 = sst [smem:[#allocation10_spill]] %s3000_s1  ;;  %s2738_s16 = smov 0  }
   0x3   :  { %3020 = sst [smem:[#allocation11_spill]] %s3002_s3  ;;  %s2740_s17 = smov 0  }
   0x4   :  { %3021 = sst [smem:[#allocation12_spill]] %s3003_s4 }
   0x5   :  { %3022 = sst [smem:[#allocation13_spill]] %s3005_s6 }
   0x6   :  { %3023 = sst [smem:[#allocation14_spill]] %s3013_s14 }
   0x7 LB: > { %3024 = sst [smem:[#allocation3_spill]] %s2635_s29  ;;  %s33_s18 = sadd.s32 1, %s2643_s15  ;;  %s2651_s17 = sphi %s2740_s17, %s24_s17   ;;  %s2647_s16 = sphi %s2738_s16, %s3049_s16   ;;  %s2643_s15 = sphi %s2736_s15, %s3048_s15   ;;  %s2639_s30 = sphi %s2734_s30, %s3047_s30   ;;  %s2635_s29 = sphi %s2732_s29, %s3046_s29  }
   0x8   : > { %3025 = sst [smem:[#allocation4_spill]] %s2643_s15  ;;  %s36_s19 = sadd.s32 1, %s2647_s16 }
   0x9   : > { %3026 = sst [smem:[#allocation5_spill]] %s2647_s16  ;;  %p34_p0 = scmp.ge.s32.totalorder %s33_s18, 2 }
   0xa   : > { %3027 = sst [smem:[#allocation6_spill]] %s2651_s17  ;;  %p2339_p1 = scmp.ge.s32.totalorder %s2651_s17, 1 }
   0xb   : > { %p527_p2 = scmp.lt.s32.totalorder %s2651_s17, 5  ;;  %s3051_s18 = smov (%p34_p0, %s33_s18), 0 }
   0xc   : > { %3028 = sst [smem:[#allocation7_spill]] %s3051_s18  ;;  %s3053_s19 = smov (!%p34_p0, %s36_s19), %s2647_s16 }
   0xd   : > { %p528_p3 = pnand %p2339_p1, %p527_p2  ;;  %p38_p4 = scmp.ge.s32.totalorder %s3053_s19, 2 }
   0xe   : > { %p615_p5 = scmp.lt.s32.totalorder (!%p528_p3), %s2639_s30, 1  ;;  %p619_p6 = scmp.lt.s32.totalorder (!%p528_p3), %s2635_s29, 1 }
   0xf   : > { %s3055_s19 = smov (%p38_p4, %s3053_s19), 0  ;;  %531 = sbr.rel (%p528_p3) target bundleno = 3130 (0xc3a), region = 76 }
  0x10   : > { %3029 = sst [smem:[#allocation8_spill]] %s3055_s19  ;;  %s3030_s0 = sld [smem:[#allocation9_spill]] (!%p528_p3) }
  0x11   : > { %s3032_s4 = sld [smem:[#allocation12_spill]] (!%p528_p3)  ;;  %s3033_s6 = sld [smem:[#allocation13_spill]] (!%p528_p3) }
  0x16   : > { %s3057_s30 = smov (!%p615_p5, %s2639_s30), 1 }
  0x17   : > { %s2766_s20 = scalar_select %p619_p6, %s2635_s29, 1 }
  0x18   : > { %s2340_s21 = sshll.u32 %s3057_s30, 3 }
  0x19   : > { %s618_s24 = scalar_lea.vmem %s3030_s0, %s2340_s21  ;;  %s2387_s16 = sshll.u32 %s2766_s20, 4 }
  0x1a   : > { %s2783_s1 = scalar_lea.vmem %s3032_s4, %s2387_s16  ;;  %s2792_s0 = scalar_lea.vmem %s3033_s6, %s2387_s16 }
  0x1b   : > { %s2809_s30 = scalar_lea.vmem %s3009_s10, %s2387_s16  ;;  %s654_s14 = scalar_lea.vmem %s3010_s11, %s2766_s20 }
  0x1c   : > { %s2390_s6 = sshll.u32 %s2766_s20, 6  ;;  %s662_s19 = scalar_lea.vmem %s3012_s13, %s2766_s20 }
  0x1d   : > { %s2823_s27 = scalar_lea.vmem %s3011_s12, %s2390_s6  ;;  %s3034_s4 = sld [smem:[#allocation14_spill]] }
  0x1e   : > { %s3035_s16 = sld [smem:[#allocation3_spill]] }
  0x23   : > { %s2828_s3 = scalar_lea.vmem %s3034_s4, %s2340_s21 }
  0x24   : > { %p2350_p7 = scmp.ne.s32.totalorder %s3035_s16, 0 }
  0x25   : > { %v672_v0 = vld [vmem:[%s618_s24] sm:$0xff] (!%p2350_p7)  ;;  %vm673_vm0 = vcmask (!%p2350_p7), 261120  }
  0x26   : > { %671 = sbr.rel (%p2350_p7) target bundleno = 45 (0x2d), region = 80  ;;  %674 = vst.msk [vmem:[#allocation2] sm:$0xff] (!%p2350_p7), %vm673_vm0, %v672_v0 }
  0x2d PF: > { %v2831_v1 = vld [vmem:[#allocation2] sm:$0xff]  ;;  %vm678_vm1 = vcmask 261120   ;;  %v2653_v9 = vmov 0.0   ;;  %vm2654_vm2 = vmmov 0   ;;  %v2576_v10 = vld [vmem:[%s2783_s1 + $0x8] sm:$0xff]   ;;  %s3037_s29 = sld [smem:[#allocation11_spill]]  ;;  %s3039_s26 = scalar_lea.vmem %s3004_s5, %s2766_s20 }
  0x2e   : > { %v679_v2 = vsel %vm678_vm1, %v2831_v1, 0.0  ;;  %v2575_v8 = vld [vmem:[%s2783_s1] sm:$0xff]   ;;  %2425 = vmatprep.subr.bf16.mxu0 %v2653_v9  ;;  %2429 = vmatprep.mubr.msk.bf16.mxu0 %vm2654_vm2, %v2653_v9  ;;  %s3036_s1 = scalar_lea.vmem %s3001_s2, %s2766_s20  ;;  %s2655_s18 = smov 96   ;;  %vm1273_vm3 = vcmask 64512   ;;  %vm1518_vm4 = vcmask 1043456  }
  0x2f   : > { %680 = vadd.xlane.f32.xlu0 %v679_v2  ;;  %2426 = vmatpush3.bf16.msra.mxu0 %v2575_v8  ;;  %v2351_v15 = vld [vmem:[%s3036_s1] ss:$0 sm:$0xff]  ;;  %s3040_s17 = sld [smem:[#allocation10_spill]]  ;;  %s2656_s16 = smov 64  }
  0x30   : > { %2445 = vmatprep.subr.bf16.mxu1 %v2653_v9  ;;  %2427 = vmatprep.subr.bf16.mxu0 %v2653_v9  ;;  %v2353_v21 = vld [vmem:[%s3039_s26] ss:$0 sm:$0xff]  ;;  %s3041_s6 = scalar_lea.vmem %s3006_s7, %s2766_s20  ;;  %s3042_s24 = scalar_lea.vmem %s3007_s8, %s2766_s20 }
  0x31   : > { %2447 = vmatprep.mubr.msk.bf16.mxu1 %vm2654_vm2, %v2653_v9  ;;  %s3043_s23 = scalar_lea.vmem %s3008_s9, %s2766_s20 }
  0x33   : > { %2428 = vmatpush3.bf16.msra.mxu0 %v2576_v10  ;;  %s3038_s22 = scalar_lea.vmem %s3037_s29, %s2766_s20 }
  0x34   : > { %2433 = vmatprep.subr.bf16.mxu0 %v2653_v9  ;;  %v2352_v17 = vld [vmem:[%s3038_s22] ss:$0 sm:$0xff] }
  0x35   : > { %v1462_v61 = vld [vmem:[%s3040_s17] sm:$0xff] }
  0xbc   : > { %v681_v3 = vpop.xlane.xlu0 %680 }
  0xbd   : > { %v683_v4 = vmul.f32 0.03125, %v681_v3 }
  0xbf   : > { %v684_v5 = vsub.f32 %v2831_v1, %v683_v4 }
  0xc1   : > { %v685_v6 = vmul.f32 %v684_v5, %v684_v5 }
  0xc3   : > { %v686_v7 = vsel %vm678_vm1, %v685_v6, 0.0 }
  0xc4   : > { %687 = vadd.xlane.f32.xlu0 %v686_v7 }
 0x151   : > { %v688_v11 = vpop.xlane.xlu0 %687 }
 0x152   : > { %v689_v12 = vmul.f32 0.03125, %v688_v11 }
 0x154   : > { %v690_v13 = vadd.f32 1e-05, %v689_v12 }
 0x156   : > { %2589 = vrsqrt.f32 %v690_v13 }
 0x160   : > { %v2590_v14 = vpop.eup %2589 }
 0x161   : > { %v692_v16 = vmul.f32 %v2590_v14, %v684_v5 }
 0x163   : > { %v699_v18 = vmul.f32 %v2351_v15, %v692_v16 }
 0x165   : > { %v706_v19 = vadd.f32 %v2352_v17, %v699_v18 }
 0x167   : > { %v707_v20 = vpack.c.bf16 %v706_v19, %v706_v19 }
 0x169   : > { %2430 = vmatmul.mubr.msk.bf16.vlgmr.msra.gmra.mrb[0].mxu0 %vm678_vm1, %v707_v20 }
 0x16a   : > { %2435 = vmatprep.mubr.msk.bf16.mxu0 %vm2654_vm2, %v2653_v9 }
 0x23c   : > { %v768_v22 = vpop.f32.mrb[0].mxu0 }
 0x23d   : > { %v2865_v23 = vadd.f32 %v2353_v21, %v768_v22  ;;  %v2431_v24 = vpop.f32.mrb[1].mxu0 }
 0x23e   : > { %v771_v25 = vpop.f32.mrb[2].mxu0 }
 0x23f   : > { %774 = vxpose.xlu0.b32.start.end [1/1] (short) (narrow) %v2865_v23, 32  ;;  %939 = vrot.lane.b32.xlu1 %v2865_v23, %s2655_s18  ;;  %v2432_v26 = vpop.f32.mrb[3].mxu0 }
 0x2b1   : > { %v940_v27 = vpop.permute.xlu1 %939 }
 0x2b2   : > { %942 = vxpose.xlu1.b32.start.end [1/1] (short) (narrow) %v940_v27, 32 }
 0x2bf   : > { %v790_v28 = vpop.trf.xlu0 }
 0x2c3   : > { %v791_v31 = vpop.trf.xlu0 }
 0x2c7   : > { %v792_v34 = vpop.trf.xlu0 }
 0x2cb   : > { %v793_v37 = vpop.trf.xlu0 }
 0x332   : > { %v958_v29 = vpop.trf.xlu1 }
 0x333   : > { %974 = vxpose.xlu1.b32.start.end [1/1] (short) (narrow) %v958_v29, 8 }
 0x336   : > { %v959_v30 = vpop.trf.xlu1 }
 0x337   : > { %v2561_v32 = vpack.i.bf16 %v959_v30, %v790_v28 }
 0x339   : > { %2562 = vxpose.xlu0.b32.start.end [1/1] (short) (narrow) %v2561_v32, 8 }
 0x33a   : > { %v960_v33 = vpop.trf.xlu1 }
 0x33b   : > { %v2568_v35 = vpack.i.bf16 %v791_v31, %v960_v33 }
 0x33d   : > { %2569 = vxpose.xlu1.b32.start.end [1/1] (short) (narrow) %v2568_v35, 8  ;;  %870 = vxpose.xlu0.b32.start.end [1/1] (short) (narrow) %v792_v34, 8 }
 0x33e   : > { %v961_v36 = vpop.trf.xlu1 }
 0x341   : > { %1070 = vxpose.xlu1.b32.start.end [1/1] (short) (narrow) %v961_v36, 8 }
 0x345   : > { %902 = vxpose.xlu1.b32.start.end [1/1] (short) (narrow) %v793_v37, 8 }
 0x3b3   : > { %v990_v38 = vpop.trf.xlu1 }
 0x3b4   : > { %v1102_v39 = vpack.c.bf16 %v990_v38, %v990_v38 }
 0x3b6   : > { %v1278_v40 = vsel %vm1273_vm3, %v1102_v39, 0 }
 0x3b7   : > { %2434 = vmatpush3.bf16.xpose.msra.mxu0 %v1278_v40 }
 0x3b8   : > { %2439 = vmatprep.subr.bf16.mxu0 %v2653_v9 }
 0x3b9   : > { %v2563_v41 = vpop.trf.xlu0 }
 0x3ba   : > { %v2567_v42 = vunpack.i.h.bf16 %v2563_v41  ;;  %v2564_v43 = vunpack.i.l.bf16 %v2563_v41 }
 0x3bc   : > { %v934_v44 = vpack.c.bf16 %v2564_v43, %v2564_v43  ;;  %v1103_v45 = vpack.c.bf16 %v2567_v42, %v2567_v42 }
 0x3bd   : > { %v2570_v46 = vpop.trf.xlu1  ;;  %v886_v56 = vpop.trf.xlu0 }
 0x3be   : > { %2436 = vmatmul.mubr.msk.bf16.vlgmr.msra.gmra.mrb[4].mxu0 %vm1273_vm3, %v934_v44  ;;  %v1324_v47 = vsel %vm1273_vm3, %v1103_v45, 0  ;;  %v2571_v48 = vunpack.i.l.bf16 %v2570_v46  ;;  %v2574_v49 = vunpack.i.h.bf16 %v2570_v46  ;;  %v936_v57 = vpack.c.bf16 %v886_v56, %v886_v56 }
 0x3bf   : > { %2440 = vmatpush3.bf16.xpose.msra.mxu0 %v1324_v47  ;;  %2441 = vmatprep.mubr.msk.bf16.mxu0 %vm2654_vm2, %v2653_v9 }
 0x3c0   : > { %2451 = vmatprep.subr.bf16.mxu0 %v2653_v9  ;;  %v1104_v51 = vpack.c.bf16 %v2571_v48, %v2571_v48  ;;  %v935_v54 = vpack.c.bf16 %v2574_v49, %v2574_v49 }
 0x3c1   : > { %v1086_v50 = vpop.trf.xlu1 }
 0x3c2   : > { %v1105_v52 = vpack.c.bf16 %v1086_v50, %v1086_v50  ;;  %v1370_v53 = vsel %vm1273_vm3, %v1104_v51, 0 }
 0x3c3   : > { %2446 = vmatpush3.bf16.xpose.msra.mxu1 %v1370_v53 }
 0x3c4   : > { %v1416_v55 = vsel %vm1273_vm3, %v1105_v52, 0  ;;  %2457 = vmatprep.subr.bf16.mxu1 %v2653_v9 }
 0x3c5   : > { %v918_v58 = vpop.trf.xlu1 }
 0x3c6   : > { %2442 = vmatmul.mubr.msk.bf16.vlgmr.msra.gmra.mrb[8].mxu0 %vm1273_vm3, %v935_v54  ;;  %v937_v59 = vpack.c.bf16 %v918_v58, %v918_v58 }
 0x3c7   : > { %2452 = vmatpush3.bf16.xpose.msra.mxu0 %v1416_v55  ;;  %2453 = vmatprep.mubr.msk.bf16.mxu0 %vm2654_vm2, %v2653_v9 }
 0x3c8   : > { %2463 = vmatprep.subr.bf16.mxu0 %v2653_v9 }
 0x3ca   : > { %2448 = vmatmul.mubr.msk.bf16.vlgmr.msra.gmra.mrb[0].mxu1 %vm1273_vm3, %v936_v57 }
 0x3cb   : > { %2459 = vmatprep.mubr.msk.bf16.mxu1 %vm2654_vm2, %v2653_v9 }
 0x3ce   : > { %2454 = vmatmul.mubr.msk.bf16.vlgmr.msra.gmra.mrb[12].mxu0 %vm1273_vm3, %v937_v59 }
 0x3cf   : > { %2465 = vmatprep.mubr.msk.bf16.mxu0 %vm2654_vm2, %v2653_v9 }
 0x491   : > { %v1314_v60 = vpop.f32.mrb[4].mxu0 }
 0x492   : > { %v1458_v62 = vmul.f32 0.35355338, %v1314_v60  ;;  %v2437_v63 = vpop.f32.mrb[5].mxu0 }
 0x493   : > { %v1317_v0 = vpop.f32.mrb[6].mxu0 }
 0x494   : > { %v2438_v2 = vpop.f32.mrb[7].mxu0  ;;  %v1463_v3 = vadd.f32 %v1462_v61, %v1458_v62 }
 0x496   : > { %v1467_v4 = vsel %vm1273_vm3, %v1463_v3, -inf }
 0x497   : > { %1468 = vmax.xlane.f32.xlu0 %v1467_v4 }
 0x499   : > { %v1360_v5 = vpop.f32.mrb[8].mxu0 }
 0x49a   : > { %v1459_v6 = vmul.f32 0.35355338, %v1360_v5  ;;  %v2443_v7 = vpop.f32.mrb[9].mxu0 }
 0x49b   : > { %v1363_v8 = vpop.f32.mrb[10].mxu0 }
 0x49c   : > { %v2444_v10 = vpop.f32.mrb[11].mxu0  ;;  %v1464_v11 = vadd.f32 %v1462_v61, %v1459_v6 }
 0x49d   : > { %v1406_v12 = vpop.f32.mrb[0].mxu1 }
 0x49e   : > { %v1470_v13 = vsel %vm1273_vm3, %v1464_v11, -inf  ;;  %v1460_v14 = vmul.f32 0.35355338, %v1406_v12  ;;  %v2449_v15 = vpop.f32.mrb[1].mxu1 }
 0x49f   : > { %1471 = vmax.xlane.f32.xlu1 %v1470_v13  ;;  %v1409_v16 = vpop.f32.mrb[2].mxu1 }
 0x4a0   : > { %v2450_v17 = vpop.f32.mrb[3].mxu1  ;;  %v1465_v19 = vadd.f32 %v1462_v61, %v1460_v14 }
 0x4a1   : > { %v1452_v18 = vpop.f32.mrb[12].mxu0 }
 0x4a2   : > { %v1461_v20 = vmul.f32 0.35355338, %v1452_v18  ;;  %v2455_v21 = vpop.f32.mrb[13].mxu0  ;;  %v1473_v22 = vsel %vm1273_vm3, %v1465_v19, -inf }
 0x4a3   : > { %v1455_v24 = vpop.f32.mrb[14].mxu0  ;;  %1474 = vmax.xlane.f32.xlu1 %v1473_v22 }
 0x4a4   : > { %v2456_v25 = vpop.f32.mrb[15].mxu0  ;;  %v1466_v26 = vadd.f32 %v1462_v61, %v1461_v20 }
 0x4a6   : > { %v1476_v27 = vsel %vm1273_vm3, %v1466_v26, -inf }
 0x4a7   : > { %1477 = vmax.xlane.f32.xlu1 %v1476_v27 }
 0x4ad   : > { %1106 = vrot.lane.b32.xlu0 %v2865_v23, %s2656_s16 }
 0x524   : > { %v1469_v28 = vpop.xlane.xlu0 %1468 }
 0x525   : > { %v1479_v29 = vsub.f32 %v1463_v3, %v1469_v28 }
 0x527   : > { %v1483_v30 = vmul.f32 1.442695, %v1479_v29 }
 0x528   : > { %v1107_v47 = vpop.permute.xlu0 %1106 }
 0x529   : > { %2591 = vpow2.f32 %v1483_v30 }
 0x52c   : > { %v1472_v31 = vpop.xlane.xlu1 %1471 }
 0x52d   : > { %v1480_v32 = vsub.f32 %v1464_v11, %v1472_v31 }
 0x52f   : > { %v1485_v33 = vmul.f32 1.442695, %v1480_v32 }
 0x530   : > { %v1475_v34 = vpop.xlane.xlu1 %1474 }
 0x531   : > { %2593 = vpow2.f32 %v1485_v33  ;;  %v1481_v35 = vsub.f32 %v1465_v19, %v1475_v34  ;;  %v2577_v34 = vld [vmem:[%s2792_s0] sm:$0xff]  }
 0x533   : > { %v2592_v36 = vpop.eup %2591  ;;  %v1487_v37 = vmul.f32 1.442695, %v1481_v35 }
 0x534   : > { %v1491_v38 = vsel %vm1273_vm3, %v2592_v36, 0.0  ;;  %v1478_v39 = vpop.xlane.xlu1 %1477 }
 0x535   : > { %1492 = vadd.xlane.f32.xlu1 %v1491_v38  ;;  %2595 = vpow2.f32 %v1487_v37  ;;  %v1482_v40 = vsub.f32 %v1466_v26, %v1478_v39 }
 0x537   : > { %v1489_v41 = vmul.f32 1.442695, %v1482_v40 }
 0x539   : > { %2597 = vpow2.f32 %v1489_v41 }
 0x53b   : > { %v2594_v23 = vpop.eup %2593 }
 0x53c   : > { %v1494_v42 = vsel %vm1273_vm3, %v2594_v23, 0.0 }
 0x53d   : > { %1495 = vadd.xlane.f32.xlu1 %v1494_v42 }
 0x53f   : > { %v2596_v43 = vpop.eup %2595 }
 0x540   : > { %v1497_v44 = vsel %vm1273_vm3, %v2596_v43, 0.0 }
 0x541   : > { %1498 = vadd.xlane.f32.xlu1 %v1497_v44 }
 0x543   : > { %v2598_v45 = vpop.eup %2597 }
 0x544   : > { %v1500_v46 = vsel %vm1273_vm3, %v2598_v45, 0.0 }
 0x545   : > { %1501 = vadd.xlane.f32.xlu1 %v1500_v46 }
 0x578   : > { %1109 = vxpose.xlu1.b32.start.end [1/1] (short) (narrow) %v1107_v47, 32 }
 0x5c2   : > { %v1493_v48 = vpop.xlane.xlu1 %1492 }
 0x5c3   : > { %2599 = vrcp.f32 %v1493_v48 }
 0x5ca   : > { %v1496_v49 = vpop.xlane.xlu1 %1495 }
 0x5cb   : > { %2601 = vrcp.f32 %v1496_v49 }
 0x5cd   : > { %v2600_v56 = vpop.eup %2599 }
 0x5ce   : > { %v1499_v50 = vpop.xlane.xlu1 %1498  ;;  %v1507_v58 = vmul.f32 %v2600_v56, %v2592_v36  ;;  %v2578_v36 = vld [vmem:[%s2792_s0 + $0x8] sm:$0xff]  }
 0x5cf   : > { %2603 = vrcp.f32 %v1499_v50 }
 0x5d0   : > { %v1511_v2 = vpack.c.bf16 %v1507_v58, %v1507_v58 }
 0x5d2   : > { %v1502_v51 = vpop.xlane.xlu1 %1501 }
 0x5d3   : > { %2605 = vrcp.f32 %v1502_v51 }
 0x5d5   : > { %v2602_v60 = vpop.eup %2601 }
 0x5d6   : > { %v1508_v63 = vmul.f32 %v2602_v60, %v2594_v23  ;;  %v2369_v60 = vld [vmem:[%s3042_s24] ss:$0 sm:$0xff] }
 0x5d8   : > { %v1512_v8 = vpack.c.bf16 %v1508_v63, %v1508_v63 }
 0x5d9   : > { %v2604_v3 = vpop.eup %2603 }
 0x5da   : > { %v1509_v6 = vmul.f32 %v2604_v3, %v2596_v43  ;;  %v2368_v43 = vld [vmem:[%s3041_s6] ss:$0 sm:$0xff] }
 0x5db   : > { %v2581_v3 = vld [vmem:[%s2823_s27] sm:$0xff]  }
 0x5dc   : > { %v1513_v15 = vpack.c.bf16 %v1509_v6, %v1509_v6  ;;  %v2584_v6 = vld [vmem:[%s2823_s27 + $0x18] sm:$0xff]  }
 0x5dd   : > { %v2606_v10 = vpop.eup %2605 }
 0x5de   : > { %v1510_v13 = vmul.f32 %v2606_v10, %v2598_v45  ;;  %v2587_v10 = vld [vmem:[%s2823_s27 + $0x30] sm:$0xff]  }
 0x5e0   : > { %v1514_v17 = vpack.c.bf16 %v1510_v13, %v1510_v13 }
 0x5f8   : > { %v1125_v52 = vpop.trf.xlu1 }
 0x5f9   : > { %1141 = vxpose.xlu0.b32.start.end [1/1] (short) (narrow) %v1125_v52, 8 }
 0x5fc   : > { %v1126_v53 = vpop.trf.xlu1 }
 0x5fd   : > { %1173 = vxpose.xlu0.b32.start.end [1/1] (short) (narrow) %v1126_v53, 8 }
 0x600   : > { %v1127_v54 = vpop.trf.xlu1 }
 0x601   : > { %1205 = vxpose.xlu0.b32.start.end [1/1] (short) (narrow) %v1127_v54, 8 }
 0x604   : > { %v1128_v55 = vpop.trf.xlu1 }
 0x605   : > { %1237 = vxpose.xlu0.b32.start.end [1/1] (short) (narrow) %v1128_v55, 8  ;;  %v2580_v55 = vld [vmem:[%s2809_s30 + $0x8] sm:$0xff]  }
 0x679   : > { %v1157_v57 = vpop.trf.xlu0 }
 0x67a   : > { %v1269_v59 = vpack.c.bf16 %v1157_v57, %v1157_v57 }
 0x67c   : > { %v1520_v61 = vsel %vm1518_vm4, %v1269_v59, 0 }
 0x67d   : > { %2458 = vmatpush3.bf16.msra.mxu1 %v1520_v61  ;;  %v1189_v62 = vpop.trf.xlu0 }
 0x67e   : > { %v1270_v0 = vpack.c.bf16 %v1189_v62, %v1189_v62  ;;  %2469 = vmatprep.subr.bf16.mxu1 %v2653_v9  ;;  %v2370_v62 = vld [vmem:[%s3043_s23] ss:$0 sm:$0xff] }
 0x680   : > { %v1566_v4 = vsel %vm1518_vm4, %v1270_v0, 0  ;;  %2460 = vmatmul.mubr.msk.bf16.vlgmr.msra.gmra.mrb[4].mxu1 %vm1273_vm3, %v1511_v2 }
 0x681   : > { %2464 = vmatpush3.bf16.msra.mxu0 %v1566_v4  ;;  %v1221_v5 = vpop.trf.xlu0  ;;  %2471 = vmatprep.mubr.msk.bf16.mxu1 %vm2654_vm2, %v2653_v9  ;;  %v2582_v4 = vld [vmem:[%s2823_s27 + $0x8] sm:$0xff]  }
 0x682   : > { %v1271_v7 = vpack.c.bf16 %v1221_v5, %v1221_v5  ;;  %2475 = vmatprep.subr.bf16.mxu0 %v2653_v9  ;;  %v2583_v5 = vld [vmem:[%s2823_s27 + $0x10] sm:$0xff]  }
 0x684   : > { %v1612_v11 = vsel %vm1518_vm4, %v1271_v7, 0  ;;  %2466 = vmatmul.mubr.msk.bf16.vlgmr.msra.gmra.mrb[16].mxu0 %vm1273_vm3, %v1512_v8  ;;  %v2585_v7 = vld [vmem:[%s2823_s27 + $0x20] sm:$0xff]   ;;  %v2586_v8 = vld [vmem:[%s2823_s27 + $0x28] sm:$0xff]  }
 0x685   : > { %2470 = vmatpush3.bf16.msra.mxu1 %v1612_v11  ;;  %v1253_v12 = vpop.trf.xlu0  ;;  %2477 = vmatprep.mubr.msk.bf16.mxu0 %vm2654_vm2, %v2653_v9  ;;  %v2588_v11 = vld [vmem:[%s2823_s27 + $0x38] sm:$0xff]  }
 0x686   : > { %v1272_v14 = vpack.c.bf16 %v1253_v12, %v1253_v12  ;;  %2481 = vmatprep.subr.bf16.mxu1 %v2653_v9  ;;  %v2371_v12 = vld [vmem:[%s654_s14] ss:$0 sm:$0xff]  ;;  %s3044_s14 = sld [smem:[#allocation3_spill]] }
 0x688   : > { %v1658_v16 = vsel %vm1518_vm4, %v1272_v14, 0  ;;  %2472 = vmatmul.mubr.msk.bf16.vlgmr.msra.gmra.mrb[8].mxu1 %vm1273_vm3, %v1513_v15 }
 0x689   : > { %2476 = vmatpush3.bf16.msra.mxu0 %v1658_v16  ;;  %2485 = vmatprep.mubr.msk.bf16.mxu1 %vm2654_vm2, %v2653_v9 }
 0x68a   : > { %2489 = vmatprep.subr.bf16.mxu0 %v2653_v9  ;;  %2482 = vmatpush3.bf16.msra.mxu1 %v2577_v34 }
 0x68b   : > { %2483 = vmatprep.subr.bf16.mxu1 %v2653_v9 }
 0x68c   : > { %2478 = vmatmul.mubr.msk.bf16.vlgmr.msra.gmra.mrb[20].mxu0 %vm1273_vm3, %v1514_v17  ;;  %p2384_p8 = scmp.ne.s32.totalorder %s3044_s14, 1 }
 0x68d   : > { %2493 = vmatprep.mubr.msk.bf16.mxu0 %vm2654_vm2, %v2653_v9 }
 0x68e   : > { %2484 = vmatpush3.bf16.msra.mxu1 %v2578_v36 }
 0x68f   : > { %2497 = vmatprep.subr.bf16.mxu1 %v2653_v9 }
 0x753   : > { %v1556_v18 = vpop.f32.mrb[4].mxu1 }
 0x754   : > { %v2461_v19 = vpop.f32.mrb[5].mxu1  ;;  %1700 = vxpose.xlu0.b32.start.end [1/1] (short) (narrow) %v1556_v18, 8 }
 0x755   : > { %v1559_v20 = vpop.f32.mrb[6].mxu1 }
 0x756   : > { %v2462_v21 = vpop.f32.mrb[7].mxu1 }
 0x757   : > { %v1602_v22 = vpop.f32.mrb[16].mxu0 }
 0x758   : > { %1732 = vxpose.xlu0.b32.start.end [1/1] (short) (narrow) %v1602_v22, 8  ;;  %v2467_v24 = vpop.f32.mrb[17].mxu0 }
 0x759   : > { %v1605_v25 = vpop.f32.mrb[18].mxu0 }
 0x75a   : > { %v2468_v26 = vpop.f32.mrb[19].mxu0 }
 0x75b   : > { %v1648_v27 = vpop.f32.mrb[8].mxu1  ;;  %v2383_v26 = vld [vmem:[%s662_s19] ss:$0 sm:$0xff] }
 0x75c   : > { %1764 = vxpose.xlu1.b32.start.end [1/1] (short) (narrow) %v1648_v27, 8  ;;  %v2473_v28 = vpop.f32.mrb[9].mxu1 }
 0x75d   : > { %v1651_v29 = vpop.f32.mrb[10].mxu1 }
 0x75e   : > { %v2474_v30 = vpop.f32.mrb[11].mxu1 }
 0x75f   : > { %v1694_v31 = vpop.f32.mrb[20].mxu0 }
 0x760   : > { %1796 = vxpose.xlu0.b32.start.end [1/1] (short) (narrow) %v1694_v31, 8  ;;  %v2479_v32 = vpop.f32.mrb[21].mxu0 }
 0x761   : > { %v1697_v33 = vpop.f32.mrb[22].mxu0 }
 0x762   : > { %v2480_v35 = vpop.f32.mrb[23].mxu0 }
 0x7d4   : > { %v1716_v37 = vpop.trf.xlu0 }
 0x7d5   : > { %1828 = vxpose.xlu0.b32.start [1/4] (short) (narrow) %v1716_v37, 8 }
 0x7d8   : > { %v1748_v38 = vpop.trf.xlu0 }
 0x7d9   : > { %1829 = vxpose.xlu0.b32.cont [2/4] (short) (narrow) %v1748_v38, 8 }
 0x7dc   : > { %v1780_v39 = vpop.trf.xlu1 }
 0x7dd   : > { %1830 = vxpose.xlu0.b32.cont [3/4] (short) (narrow) %v1780_v39, 8 }
 0x7e0   : > { %v1812_v40 = vpop.trf.xlu0 }
 0x7e1   : > { %1831 = vxpose.xlu0.b32.end [4/4] (short) (narrow) %v1812_v40, 8 }
 0x855   : > { %v1844_v41 = vpop.trf.xlu0 }
 0x856   : > { %v1860_v23 = vpack.c.bf16 %v1844_v41, %v1844_v41 }
 0x858   : > { %2486 = vmatmul.mubr.msk.bf16.vlgmr.msra.gmra.mrb[12].mxu1 %vm678_vm1, %v1860_v23 }
 0x859   : > { %2513 = vmatprep.mubr.msk.bf16.mxu1 %vm2654_vm2, %v2653_v9  ;;  %2498 = vmatpush3.bf16.msra.mxu1 %v2581_v3 }
 0x85a   : > { %2499 = vmatprep.subr.bf16.mxu1 %v2653_v9 }
 0x85d   : > { %2500 = vmatpush3.bf16.msra.mxu1 %v2582_v4 }
 0x85e   : > { %2501 = vmatprep.subr.bf16.mxu1 %v2653_v9 }
 0x861   : > { %2502 = vmatpush3.bf16.msra.mxu1 %v2583_v5 }
 0x862   : > { %2503 = vmatprep.subr.bf16.mxu1 %v2653_v9 }
 0x865   : > { %2504 = vmatpush3.bf16.msra.mxu1 %v2584_v6 }
 0x866   : > { %2505 = vmatprep.subr.bf16.mxu1 %v2653_v9 }
 0x869   : > { %2506 = vmatpush3.bf16.msra.mxu1 %v2585_v7 }
 0x86a   : > { %2507 = vmatprep.subr.bf16.mxu1 %v2653_v9 }
 0x86d   : > { %2508 = vmatpush3.bf16.msra.mxu1 %v2586_v8 }
 0x86e   : > { %2509 = vmatprep.subr.bf16.mxu1 %v2653_v9 }
 0x871   : > { %2510 = vmatpush3.bf16.msra.mxu1 %v2587_v10 }
 0x872   : > { %2511 = vmatprep.subr.bf16.mxu1 %v2653_v9 }
 0x875   : > { %2512 = vmatpush3.bf16.msra.mxu1 %v2588_v11 }
 0x92b   : > { %v1914_v42 = vpop.f32.mrb[12].mxu1 }
 0x92c   : > { %v1920_v44 = vadd.f32 %v1914_v42, %v2831_v1  ;;  %v2487_v45 = vpop.f32.mrb[13].mxu1  ;;  %v2579_v1 = vld [vmem:[%s2809_s30] sm:$0xff]  }
 0x92d   : > { %v1917_v46 = vpop.f32.mrb[14].mxu1  ;;  %2490 = vmatpush3.bf16.msra.mxu0 %v2579_v1 }
 0x92e   : > { %v2934_v47 = vadd.f32 %v2368_v43, %v1920_v44  ;;  %v2488_v48 = vpop.f32.mrb[15].mxu1  ;;  %2491 = vmatprep.subr.bf16.mxu0 %v2653_v9 }
 0x930   : > { %v1931_v49 = vsel %vm678_vm1, %v2934_v47, 0.0 }
 0x931   : > { %1932 = vadd.xlane.f32.xlu1 %v1931_v49  ;;  %2492 = vmatpush3.bf16.msra.mxu0 %v2580_v55 }
 0x9be   : > { %v1933_v50 = vpop.xlane.xlu1 %1932 }
 0x9bf   : > { %v1934_v51 = vmul.f32 0.03125, %v1933_v50 }
 0x9c1   : > { %v1935_v52 = vsub.f32 %v2934_v47, %v1934_v51 }
 0x9c3   : > { %v1936_v53 = vmul.f32 %v1935_v52, %v1935_v52 }
 0x9c5   : > { %v1937_v54 = vsel %vm678_vm1, %v1936_v53, 0.0 }
 0x9c6   : > { %1938 = vadd.xlane.f32.xlu0 %v1937_v54 }
 0xa53   : > { %v1939_v56 = vpop.xlane.xlu0 %1938 }
 0xa54   : > { %v1940_v57 = vmul.f32 0.03125, %v1939_v56 }
 0xa56   : > { %v1941_v58 = vadd.f32 1e-05, %v1940_v57 }
 0xa58   : > { %2607 = vrsqrt.f32 %v1941_v58 }
 0xa62   : > { %v2608_v59 = vpop.eup %2607 }
 0xa63   : > { %v1943_v61 = vmul.f32 %v2608_v59, %v1935_v52 }
 0xa65   : > { %v1950_v63 = vmul.f32 %v2369_v60, %v1943_v61 }
 0xa67   : > { %v1957_v0 = vadd.f32 %v2370_v62, %v1950_v63 }
 0xa69   : > { %v1958_v2 = vpack.c.bf16 %v1957_v0, %v1957_v0 }
 0xa6b   : > { %2494 = vmatmul.mubr.msk.bf16.vlgmr.msra.gmra.mrb[24].mxu0 %vm678_vm1, %v1958_v2 }
 0xb3e   : > { %v2019_v13 = vpop.f32.mrb[24].mxu0 }
 0xb3f   : > { %v2020_v14 = vadd.f32 %v2371_v12, %v2019_v13  ;;  %v2495_v15 = vpop.f32.mrb[25].mxu0 }
 0xb40   : > { %v2022_v16 = vpop.f32.mrb[26].mxu0 }
 0xb41   : > { %v2025_v17 = vmul.f32 -1.702, %v2020_v14  ;;  %v2496_v18 = vpop.f32.mrb[27].mxu0 }
 0xb43   : > { %v2026_v19 = vmul.f32 1.442695, %v2025_v17 }
 0xb45   : > { %2609 = vpow2.f32 %v2026_v19 }
 0xb4f   : > { %v2610_v20 = vpop.eup %2609 }
 0xb50   : > { %v2028_v21 = vadd.f32 1.0, %v2610_v20 }
 0xb52   : > { %2611 = vrcp.f32 %v2028_v21 }
 0xb5c   : > { %v2612_v9 = vpop.eup %2611 }
 0xb5d   : > { %v2030_v22 = vmul.f32 %v2612_v9, %v2020_v14 }
 0xb5f   : > { %v2031_v24 = vpack.c.bf16 %v2030_v22, %v2030_v22 }
 0xb61   : > { %2514 = vmatmul.mubr.bf16.vlgmr.msra.gmra.mrb[16].mxu1 %v2031_v24 }
 0xc33   : > { %2149 = sbr.rel (%p2384_p8) target bundleno = 3130 (0xc3a), region = 84 }
 0xc34   : > { %v2130_v25 = vpop.f32.mrb[16].mxu1 }
 0xc35   : > { %v2136_v27 = vadd.f32 %v2130_v25, %v2934_v47  ;;  %v2515_v28 = vpop.f32.mrb[17].mxu1 }
 0xc36   : > { %v2133_v29 = vpop.f32.mrb[18].mxu1 }
 0xc37   : > { %v2144_v30 = vadd.f32 %v2383_v26, %v2136_v27  ;;  %v2516_v31 = vpop.f32.mrb[19].mxu1 }
 0xc39   : > { %2145 = vst.msk [vmem:[#allocation2] sm:$0xff] %vm678_vm1, %v2144_v30  ;;  %2150 = vst.msk [vmem:[%s2828_s3] sm:$0xff] (!%p2384_p8), %vm678_vm1, %v2144_v30 }
 0xc3a PF: > { %s3045_s18 = sld [smem:[#allocation6_spill]]  ;;  %s3046_s29 = sld [smem:[#allocation4_spill]] }
 0xc3b   : > { %s3047_s30 = sld [smem:[#allocation5_spill]]  ;;  %s3048_s15 = sld [smem:[#allocation7_spill]] }
 0xc3c   : > { %s3049_s16 = sld [smem:[#allocation8_spill]] }
 0xc40   : > { %s24_s17 = sadd.s32 1, %s3045_s18  }
 0xc41   : > { %p21_p9 = scmp.ge.s32.totalorder %s24_s17, 6  }
 0xc43   :  { %23 = sbr.rel (!%p21_p9) target bundleno = 7 (0x7), region = 150 }

</bundles_post_ra>
